<compile_context>
chip_gen: v7x
topology: tpu7x:2x2x1
jax: 0.10.0
libtpu: 0.0.40
codegen_flags: <defaults>
</compile_context>

<pallas_src>
import jax
import jax.numpy as jnp
from jax.experimental import pallas as pl
from jax.experimental.pallas import tpu as pltpu


def _round_up(x, m):
    return (x + m - 1) // m * m


@jax.jit
def classifier_forward(x_nchw, w1, b1, w2, b2):
    """Classifier.forward: features = backbone(x).

    Args:
      x_nchw: [B, Cin, H, W] float32 (PyTorch layout).
      w1:     [3, 3, Cin, C1] conv1 weights (HWIO).
      b1:     [C1] conv1 bias.
      w2:     [3, 3, C1, C2] conv2 weights (HWIO).
      b2:     [C2] conv2 bias.
    Returns:
      [B, C2] pooled backbone features (float32).
    """
    B, CIN, H, W = x_nchw.shape
    C1 = w1.shape[-1]
    C2 = w2.shape[-1]
    Hp, Wp = H + 2, W + 2                 # zero-padded spatial extents
    P = Hp * Wp                           # padded-flattened spatial length
    Pp = _round_up(P, 8)                  # sublane-aligned per-batch stride
    K1 = 9 * CIN
    K2 = 9 * C1
    # tap k = 3*dy + dx reads the row shifted by (dy-1)*Wp + (dx-1)
    OFFSETS = tuple((dy - 1) * Wp + (dx - 1)
                    for dy in range(3) for dx in range(3))
    # taps per K<=128 matmul chunk (keeps every pass within the v5e MXU depth)
    TPG = max(1, min(9, 128 // C1))
    inv_hw = 1.0 / float(H * W)

    # Batch grouping: G >= 2 "parallel" grid steps keep both TensorCores of a
    # 2-TC chip busy; batches inside a group are folded along sublanes (bigger
    # matmul M), which amortizes per-step overhead on single-TC chips.
    G = 2 if (B >= 2 and B % 2 == 0) else 1
    NB = B // G
    NP = NB * Pp

    # ------------- wrapper-side layout glue (XLA, no conv math) -------------
    x_nhwc = jnp.transpose(x_nchw, (0, 2, 3, 1)).astype(jnp.float32)
    x_pad = jnp.pad(x_nhwc, ((0, 0), (1, 1), (1, 1), (0, 0)))
    x_flat = jnp.pad(x_pad.reshape(B, P, CIN), ((0, 0), (0, Pp - P), (0, 0)))
    # conv1 im2col: taps concatenated along K.  Roll wrap-around only pollutes
    # halo / pad rows, which are masked before conv2 and excluded by the pool.
    patch1 = jnp.concatenate(
        [jnp.roll(x_flat, -off, axis=1) for off in OFFSETS], axis=-1)
    patch1 = patch1.reshape(G, NP, K1).astype(jnp.bfloat16)

    # interior mask in padded-flat layout (1 = real pixel, 0 = halo ring / pad)
    mask2d = jnp.zeros((Hp, Wp), jnp.float32).at[1:H + 1, 1:W + 1].set(1.0)
    mask_flat = jnp.pad(mask2d.reshape(P), (0, Pp - P))
    mask_col = jnp.tile(mask_flat, (NB,)).reshape(NP, 1)
    # masked global-average pool as one matmul: pool[b, b*Pp + p] = mask[p]/(H*W)
    pool = (jnp.eye(NB, dtype=jnp.float32)[:, :, None]
            * (mask_flat * inv_hw)[None, None, :]).reshape(NB, NP)
    pool = pool.astype(jnp.bfloat16)

    w1k = w1.reshape(K1, C1).astype(jnp.bfloat16)   # tap-major rows == patch1 K order
    w2k = w2.reshape(K2, C2).astype(jnp.bfloat16)
    b1r = b1.reshape(1, C1).astype(jnp.float32)
    b2r = b2.reshape(1, C2).astype(jnp.float32)

    def kernel(p1_ref, w1_ref, b1_ref, w2_ref, b2_ref, mask_ref, pool_ref,
               o_ref):
        # ---- conv1: ONE MXU matmul over the tap-concatenated K = 9*CIN -----
        acc1 = jnp.dot(p1_ref[...], w1_ref[...],
                       preferred_element_type=jnp.float32)
        # bias + ReLU + halo/pad masking (zeroed halo == conv2's zero padding)
        h1 = jnp.maximum(acc1 + b1_ref[...], 0.0) * mask_ref[...]

        # ---- conv2: tap-concat patch built with sublane rolls --------------
        # (wrap-around rows land only on halo/pad rows, which the pool matrix
        # zero-weights, so no staging scratch / re-zeroing is needed)
        taps = [h1 if off == 0 else pltpu.roll(h1, shift=(-off) % NP, axis=0)
                for off in OFFSETS]
        acc2 = None
        for t0 in range(0, 9, TPG):           # K chunks of <= 128 (v5e-safe)
            t1 = min(t0 + TPG, 9)
            slab = (taps[t0] if t1 - t0 == 1
                    else jnp.concatenate(taps[t0:t1], axis=1))
            part = jnp.dot(slab.astype(jnp.bfloat16),
                           w2_ref[t0 * C1:t1 * C1, :],
                           preferred_element_type=jnp.float32)
            acc2 = part if acc2 is None else acc2 + part
        h2 = jnp.maximum(acc2 + b2_ref[...], 0.0).astype(jnp.bfloat16)

        # ---- masked global-average pool as one MXU matmul ------------------
        o_ref[...] = jnp.dot(pool_ref[...], h2,
                             preferred_element_type=jnp.float32
                             ).astype(o_ref.dtype)

    grid_spec = pltpu.PrefetchScalarGridSpec(
        num_scalar_prefetch=0,
        grid=(G,),
        in_specs=[
            # per-group tap-concatenated conv1 patch (bf16)
            pl.BlockSpec((None, NP, K1), lambda g: (g, 0, 0)),
            # constant index_maps -> weights / biases / mask / pool stay resident
            pl.BlockSpec((K1, C1), lambda g: (0, 0)),
            pl.BlockSpec((1, C1), lambda g: (0, 0)),
            pl.BlockSpec((K2, C2), lambda g: (0, 0)),
            pl.BlockSpec((1, C2), lambda g: (0, 0)),
            pl.BlockSpec((NP, 1), lambda g: (0, 0)),
            pl.BlockSpec((NB, NP), lambda g: (0, 0)),
        ],
        out_specs=pl.BlockSpec((None, NB, C2), lambda g: (g, 0, 0)),
    )

    out = pl.pallas_call(
        kernel,
        grid_spec=grid_spec,
        out_shape=jax.ShapeDtypeStruct((G, NB, C2), jnp.float32),
        compiler_params=pltpu.CompilerParams(
            dimension_semantics=("parallel",)),
    )(patch1, w1k, b1r, w2k, b2r, mask_col, pool)
    return out.reshape(B, C2)


def _backbone_reference(x_nchw, w1, b1, w2, b2):
    """Pure-JAX f32 reference of the same backbone."""
    dn = ('NHWC', 'HWIO', 'NHWC')
    x = jnp.transpose(x_nchw, (0, 2, 3, 1)).astype(jnp.float32)
    h = jax.lax.conv_general_dilated(x, w1, (1, 1), 'SAME',
                                     dimension_numbers=dn)
    h = jnp.maximum(h + b1, 0.0)
    h = jax.lax.conv_general_dilated(h, w2, (1, 1), 'SAME',
                                     dimension_numbers=dn)
    h = jnp.maximum(h + b2, 0.0)
    return jnp.mean(h, axis=(1, 2))


if __name__ == "__main__":
    B, CIN, H, W = 2, 4, 16, 16
    C1, C2 = 16, 32

    key = jax.random.PRNGKey(0)
    kx, k1, k2, k3, k4 = jax.random.split(key, 5)
    x = jax.random.normal(kx, (B, CIN, H, W), jnp.float32)
    w1 = jax.random.normal(k1, (3, 3, CIN, C1), jnp.float32) * 0.2
    b1 = jax.random.normal(k2, (C1,), jnp.float32) * 0.1
    w2 = jax.random.normal(k3, (3, 3, C1, C2), jnp.float32) * 0.1
    b2 = jax.random.normal(k4, (C2,), jnp.float32) * 0.1

    feats = jax.block_until_ready(classifier_forward(x, w1, b1, w2, b2))
    assert feats.shape == (B, C2), feats.shape

    ref = _backbone_reference(x, w1, b1, w2, b2)
    max_err = float(jnp.max(jnp.abs(feats - ref)))
    assert max_err < 0.05, f"max abs error vs f32 reference: {max_err}"

    print("KERNEL_OK")
</pallas_src>

<mosaic_0001>
module attributes {stable_mosaic.version = 11 : i64} {
  func.func @kernel(%arg0: i32, %arg1: memref<1x328x36xbf16, #tpu.memory_space<vmem>>, %arg2: memref<36x16xbf16, #tpu.memory_space<vmem>>, %arg3: memref<1x16xf32, #tpu.memory_space<vmem>>, %arg4: memref<144x32xbf16, #tpu.memory_space<vmem>>, %arg5: memref<1x32xf32, #tpu.memory_space<vmem>>, %arg6: memref<328x1xf32, #tpu.memory_space<vmem>>, %arg7: memref<1x328xbf16, #tpu.memory_space<vmem>>, %arg8: memref<1x1x32xf32, #tpu.memory_space<vmem>>) attributes {dimension_semantics = [#tpu.dimension_semantics<parallel>], iteration_bounds = array<i64: 2>, scalar_prefetch = 0 : i64, scratch_operands = 0 : i64, tpu.core_type = #tpu.core_type<tc>, window_params = [{transform_indices = @transform_0, window_bounds = array<i64: 1, 328, 36>}, {pipeline_mode = #tpu.pipeline_mode<synchronous>, transform_indices = @transform_1, window_bounds = array<i64: 36, 16>}, {pipeline_mode = #tpu.pipeline_mode<synchronous>, transform_indices = @transform_2, window_bounds = array<i64: 1, 16>}, {pipeline_mode = #tpu.pipeline_mode<synchronous>, transform_indices = @transform_3, window_bounds = array<i64: 144, 32>}, {pipeline_mode = #tpu.pipeline_mode<synchronous>, transform_indices = @transform_4, window_bounds = array<i64: 1, 32>}, {pipeline_mode = #tpu.pipeline_mode<synchronous>, transform_indices = @transform_5, window_bounds = array<i64: 328, 1>}, {pipeline_mode = #tpu.pipeline_mode<synchronous>, transform_indices = @transform_6, window_bounds = array<i64: 1, 328>}, {transform_indices = @transform_7, window_bounds = array<i64: 1, 1, 32>}]} {
    %c0 = arith.constant 0 : index
    %c0_0 = arith.constant 0 : index
    %c0_1 = arith.constant 0 : index
    %0 = vector.load %arg1[%c0, %c0_0, %c0_1] : memref<1x328x36xbf16, #tpu.memory_space<vmem>>, vector<1x328x36xbf16>
    %1 = vector.shape_cast %0 : vector<1x328x36xbf16> to vector<328x36xbf16>
    %c0_2 = arith.constant 0 : index
    %c0_3 = arith.constant 0 : index
    %2 = vector.load %arg2[%c0_2, %c0_3] : memref<36x16xbf16, #tpu.memory_space<vmem>>, vector<36x16xbf16>
    %cst = arith.constant dense<0.000000e+00> : vector<328x16xf32>
    %3 = tpu.matmul %1, %2, %cst {dimension_numbers = #tpu.dot_dimension_numbers<[1], [0], [0], [1], [0, 0, 1, 1], [], []>} : vector<328x36xbf16>, vector<36x16xbf16>, vector<328x16xf32> -> vector<328x16xf32>
    %c0_4 = arith.constant 0 : index
    %c0_5 = arith.constant 0 : index
    %4 = vector.load %arg3[%c0_4, %c0_5] : memref<1x16xf32, #tpu.memory_space<vmem>>, vector<1x16xf32>
    %5 = vector.broadcast %4 : vector<1x16xf32> to vector<328x16xf32>
    %6 = arith.addf %3, %5 : vector<328x16xf32>
    %cst_6 = arith.constant 0.000000e+00 : f32
    %7 = vector.broadcast %cst_6 : f32 to vector<328x16xf32>
    %8 = arith.maximumf %6, %7 : vector<328x16xf32>
    %c0_7 = arith.constant 0 : index
    %c0_8 = arith.constant 0 : index
    %9 = vector.load %arg6[%c0_7, %c0_8] : memref<328x1xf32, #tpu.memory_space<vmem>>, vector<328x1xf32>
    %10 = vector.broadcast %9 : vector<328x1xf32> to vector<328x16xf32>
    %11 = arith.mulf %8, %10 : vector<328x16xf32>
    %c19_i32 = arith.constant 19 : i32
    %12 = tpu.dynamic_rotate %11 by %c19_i32 dim 0 : vector<328x16xf32>, i32 -> vector<328x16xf32>
    %c18_i32 = arith.constant 18 : i32
    %13 = tpu.dynamic_rotate %11 by %c18_i32 dim 0 : vector<328x16xf32>, i32 -> vector<328x16xf32>
    %c17_i32 = arith.constant 17 : i32
    %14 = tpu.dynamic_rotate %11 by %c17_i32 dim 0 : vector<328x16xf32>, i32 -> vector<328x16xf32>
    %c1_i32 = arith.constant 1 : i32
    %15 = tpu.dynamic_rotate %11 by %c1_i32 dim 0 : vector<328x16xf32>, i32 -> vector<328x16xf32>
    %c327_i32 = arith.constant 327 : i32
    %16 = tpu.dynamic_rotate %11 by %c327_i32 dim 0 : vector<328x16xf32>, i32 -> vector<328x16xf32>
    %c311_i32 = arith.constant 311 : i32
    %17 = tpu.dynamic_rotate %11 by %c311_i32 dim 0 : vector<328x16xf32>, i32 -> vector<328x16xf32>
    %c310_i32 = arith.constant 310 : i32
    %18 = tpu.dynamic_rotate %11 by %c310_i32 dim 0 : vector<328x16xf32>, i32 -> vector<328x16xf32>
    %c309_i32 = arith.constant 309 : i32
    %19 = tpu.dynamic_rotate %11 by %c309_i32 dim 0 : vector<328x16xf32>, i32 -> vector<328x16xf32>
    %20 = tpu.concatenate %12, %13, %14, %15, %11, %16, %17, %18 in 1 : vector<328x16xf32>, vector<328x16xf32>, vector<328x16xf32>, vector<328x16xf32>, vector<328x16xf32>, vector<328x16xf32>, vector<328x16xf32>, vector<328x16xf32> -> vector<328x128xf32>
    %21 = arith.truncf %20 : vector<328x128xf32> to vector<328x128xbf16>
    %c0_9 = arith.constant 0 : index
    %c0_10 = arith.constant 0 : index
    %22 = vector.load %arg4[%c0_9, %c0_10] : memref<144x32xbf16, #tpu.memory_space<vmem>>, vector<128x32xbf16>
    %cst_11 = arith.constant dense<0.000000e+00> : vector<328x32xf32>
    %23 = tpu.matmul %21, %22, %cst_11 {dimension_numbers = #tpu.dot_dimension_numbers<[1], [0], [0], [1], [0, 0, 1, 1], [], []>} : vector<328x128xbf16>, vector<128x32xbf16>, vector<328x32xf32> -> vector<328x32xf32>
    %24 = arith.truncf %19 : vector<328x16xf32> to vector<328x16xbf16>
    %c128 = arith.constant 128 : index
    %c0_12 = arith.constant 0 : index
    %25 = vector.load %arg4[%c128, %c0_12] : memref<144x32xbf16, #tpu.memory_space<vmem>>, vector<16x32xbf16>
    %cst_13 = arith.constant dense<0.000000e+00> : vector<328x32xf32>
    %26 = tpu.matmul %24, %25, %cst_13 {dimension_numbers = #tpu.dot_dimension_numbers<[1], [0], [0], [1], [0, 0, 1, 1], [], []>} : vector<328x16xbf16>, vector<16x32xbf16>, vector<328x32xf32> -> vector<328x32xf32>
    %27 = arith.addf %23, %26 : vector<328x32xf32>
    %c0_14 = arith.constant 0 : index
    %c0_15 = arith.constant 0 : index
    %28 = vector.load %arg5[%c0_14, %c0_15] : memref<1x32xf32, #tpu.memory_space<vmem>>, vector<1x32xf32>
    %29 = vector.broadcast %28 : vector<1x32xf32> to vector<328x32xf32>
    %30 = arith.addf %27, %29 : vector<328x32xf32>
    %cst_16 = arith.constant 0.000000e+00 : f32
    %31 = vector.broadcast %cst_16 : f32 to vector<328x32xf32>
    %32 = arith.maximumf %30, %31 : vector<328x32xf32>
    %33 = arith.truncf %32 : vector<328x32xf32> to vector<328x32xbf16>
    %c0_17 = arith.constant 0 : index
    %c0_18 = arith.constant 0 : index
    %34 = vector.load %arg7[%c0_17, %c0_18] : memref<1x328xbf16, #tpu.memory_space<vmem>>, vector<1x328xbf16>
    %cst_19 = arith.constant dense<0.000000e+00> : vector<1x32xf32>
    %35 = tpu.matmul %34, %33, %cst_19 {dimension_numbers = #tpu.dot_dimension_numbers<[1], [0], [0], [1], [0, 0, 1, 1], [], []>} : vector<1x328xbf16>, vector<328x32xbf16>, vector<1x32xf32> -> vector<1x32xf32>
    %c0_20 = arith.constant 0 : index
    %c0_21 = arith.constant 0 : index
    %c0_22 = arith.constant 0 : index
    %36 = vector.load %arg8[%c0_20, %c0_21, %c0_22] : memref<1x1x32xf32, #tpu.memory_space<vmem>>, vector<1x1x32xf32>
    %37 = vector.shape_cast %36 : vector<1x1x32xf32> to vector<1x32xf32>
    %38 = vector.shape_cast %35 : vector<1x32xf32> to vector<1x1x32xf32>
    tpu.vector_store %arg8[%c0_20, %c0_21, %c0_22], %38 {strides = array<i32>} : memref<1x1x32xf32, #tpu.memory_space<vmem>>, vector<1x1x32xf32>,
    return
  }
  func.func @transform_0(%arg0: i32) -> (i32, i32, i32) {
    %c0_i32 = arith.constant 0 : i32
    %c0_i32_0 = arith.constant 0 : i32
    %c0_i32_1 = arith.constant 0 : i32
    return %arg0, %c0_i32, %c0_i32_0 : i32, i32, i32
  }
  func.func @transform_1(%arg0: i32) -> (i32, i32) {
    %c0_i32 = arith.constant 0 : i32
    %c0_i32_0 = arith.constant 0 : i32
    %c0_i32_1 = arith.constant 0 : i32
    return %c0_i32, %c0_i32_0 : i32, i32
  }
  func.func @transform_2(%arg0: i32) -> (i32, i32) {
    %c0_i32 = arith.constant 0 : i32
    %c0_i32_0 = arith.constant 0 : i32
    %c0_i32_1 = arith.constant 0 : i32
    return %c0_i32, %c0_i32_0 : i32, i32
  }
  func.func @transform_3(%arg0: i32) -> (i32, i32) {
    %c0_i32 = arith.constant 0 : i32
    %c0_i32_0 = arith.constant 0 : i32
    %c0_i32_1 = arith.constant 0 : i32
    return %c0_i32, %c0_i32_0 : i32, i32
  }
  func.func @transform_4(%arg0: i32) -> (i32, i32) {
    %c0_i32 = arith.constant 0 : i32
    %c0_i32_0 = arith.constant 0 : i32
    %c0_i32_1 = arith.constant 0 : i32
    return %c0_i32, %c0_i32_0 : i32, i32
  }
  func.func @transform_5(%arg0: i32) -> (i32, i32) {
    %c0_i32 = arith.constant 0 : i32
    %c0_i32_0 = arith.constant 0 : i32
    %c0_i32_1 = arith.constant 0 : i32
    return %c0_i32, %c0_i32_0 : i32, i32
  }
  func.func @transform_6(%arg0: i32) -> (i32, i32) {
    %c0_i32 = arith.constant 0 : i32
    %c0_i32_0 = arith.constant 0 : i32
    %c0_i32_1 = arith.constant 0 : i32
    return %c0_i32, %c0_i32_0 : i32, i32
  }
  func.func @transform_7(%arg0: i32) -> (i32, i32, i32) {
    %c0_i32 = arith.constant 0 : i32
    %c0_i32_0 = arith.constant 0 : i32
    %c0_i32_1 = arith.constant 0 : i32
    return %arg0, %c0_i32, %c0_i32_0 : i32, i32, i32
  }
}

</mosaic_0001>

<bundles_post_ra>
// kernel: tile.0
= control target key start
LH: loop header
LB: loop body
LE: loop exit
PB: predicated region body
PF: predicated region fallthrough
CT: control target
= control target key end

     0   :  { %s519_s0 = inlined_call_operand.vmem [shape: f32[328], index: 0, kind: input, shape index: {}]   ;;  %s520_s1 = inlined_call_operand.vmem [shape: f32[328,1], index: 1, kind: output, shape index: {}]  }
   0x1   :  { %v4_v0 = vld [vmem:[%s519_s0] ss:$0 sm:$0xff]  ;;  %v327_v1 = vld [vmem:[%s519_s0 + $0x1] ss:$0 sm:$0xff]  ;;  %v359_v2 = vld [vmem:[%s519_s0 + $0x2] ss:$0 sm:$0xff] }
   0x2   :  { %6 = vbcast.lane.b32.xlu0 %v4_v0, 256  ;;  %19 = vbcast.lane.b32.xlu1 %v4_v0, 272 }
   0x6   :  { %12 = vbcast.lane.b32.xlu0 %v4_v0, 264  ;;  %26 = vbcast.lane.b32.xlu1 %v4_v0, 280 }
   0xa   :  { %33 = vbcast.lane.b32.xlu0 %v4_v0, 288  ;;  %40 = vbcast.lane.b32.xlu1 %v4_v0, 296 }
   0xe   :  { %47 = vbcast.lane.b32.xlu0 %v4_v0, 304  ;;  %54 = vbcast.lane.b32.xlu1 %v4_v0, 312 }
  0x12   :  { %61 = vbcast.lane.b32.xlu0 %v4_v0, 320  ;;  %68 = vbcast.lane.b32.xlu1 %v4_v0, 328 }
  0x16   :  { %75 = vbcast.lane.b32.xlu0 %v4_v0, 336  ;;  %82 = vbcast.lane.b32.xlu1 %v4_v0, 344 }
  0x1a   :  { %89 = vbcast.lane.b32.xlu0 %v4_v0, 352  ;;  %96 = vbcast.lane.b32.xlu1 %v4_v0, 360 }
  0x1e   :  { %103 = vbcast.lane.b32.xlu0 %v4_v0, 368  ;;  %110 = vbcast.lane.b32.xlu1 %v4_v0, 376 }
  0x22   :  { %117 = vbcast.lane.b32.xlu0 %v327_v1, 256  ;;  %125 = vbcast.lane.b32.xlu1 %v327_v1, 264 }
  0x26   :  { %133 = vbcast.lane.b32.xlu0 %v327_v1, 272  ;;  %141 = vbcast.lane.b32.xlu1 %v327_v1, 280 }
  0x2a   :  { %149 = vbcast.lane.b32.xlu0 %v327_v1, 288  ;;  %157 = vbcast.lane.b32.xlu1 %v327_v1, 296 }
  0x2e   :  { %165 = vbcast.lane.b32.xlu0 %v327_v1, 304  ;;  %173 = vbcast.lane.b32.xlu1 %v327_v1, 312 }
  0x32   :  { %181 = vbcast.lane.b32.xlu0 %v327_v1, 320  ;;  %189 = vbcast.lane.b32.xlu1 %v327_v1, 328 }
  0x36   :  { %197 = vbcast.lane.b32.xlu0 %v327_v1, 336  ;;  %205 = vbcast.lane.b32.xlu1 %v327_v1, 344 }
  0x3a   :  { %213 = vbcast.lane.b32.xlu0 %v327_v1, 352  ;;  %221 = vbcast.lane.b32.xlu1 %v327_v1, 360 }
  0x3e   :  { %229 = vbcast.lane.b32.xlu0 %v327_v1, 368  ;;  %237 = vbcast.lane.b32.xlu1 %v327_v1, 376 }
  0x42   :  { %244 = vbcast.lane.b32.xlu0 %v359_v2, 256  ;;  %252 = vbcast.lane.b32.xlu1 %v359_v2, 264 }
  0x46   :  { %260 = vbcast.lane.b32.xlu0 %v359_v2, 272  ;;  %268 = vbcast.lane.b32.xlu1 %v359_v2, 280 }
  0x4a   :  { %276 = vbcast.lane.b32.xlu0 %v359_v2, 288  ;;  %284 = vbcast.lane.b32.xlu1 %v359_v2, 296 }
  0x4e   :  { %292 = vbcast.lane.b32.xlu0 %v359_v2, 304  ;;  %300 = vbcast.lane.b32.xlu1 %v359_v2, 312 }
  0x52   :  { %308 = vbcast.lane.b32.xlu0 %v359_v2, 320 }
  0x74   :  { %v7_v3 = vpop.permute.xlu0 %6  ;;  %v20_v4 = vpop.permute.xlu1 %19 }
  0x75   :  { %8 = vst [vmem:[%s520_s1] sm:$0xff] %v7_v3  ;;  %313 = vst [vmem:[%s520_s1 + $0x10] sm:$0xff] %v20_v4 }
  0x78   :  { %v13_v5 = vpop.permute.xlu0 %12  ;;  %v27_v6 = vpop.permute.xlu1 %26 }
  0x79   :  { %312 = vst [vmem:[%s520_s1 + $0x8] sm:$0xff] %v13_v5  ;;  %314 = vst [vmem:[%s520_s1 + $0x18] sm:$0xff] %v27_v6 }
  0x7c   :  { %v34_v7 = vpop.permute.xlu0 %33  ;;  %v41_v8 = vpop.permute.xlu1 %40 }
  0x7d   :  { %315 = vst [vmem:[%s520_s1 + $0x20] sm:$0xff] %v34_v7  ;;  %316 = vst [vmem:[%s520_s1 + $0x28] sm:$0xff] %v41_v8 }
  0x80   :  { %v48_v9 = vpop.permute.xlu0 %47  ;;  %v55_v10 = vpop.permute.xlu1 %54 }
  0x81   :  { %317 = vst [vmem:[%s520_s1 + $0x30] sm:$0xff] %v48_v9  ;;  %318 = vst [vmem:[%s520_s1 + $0x38] sm:$0xff] %v55_v10 }
  0x84   :  { %v62_v11 = vpop.permute.xlu0 %61  ;;  %v69_v12 = vpop.permute.xlu1 %68 }
  0x85   :  { %319 = vst [vmem:[%s520_s1 + $0x40] sm:$0xff] %v62_v11  ;;  %320 = vst [vmem:[%s520_s1 + $0x48] sm:$0xff] %v69_v12 }
  0x88   :  { %v76_v13 = vpop.permute.xlu0 %75  ;;  %v83_v14 = vpop.permute.xlu1 %82 }
  0x89   :  { %321 = vst [vmem:[%s520_s1 + $0x50] sm:$0xff] %v76_v13  ;;  %322 = vst [vmem:[%s520_s1 + $0x58] sm:$0xff] %v83_v14 }
  0x8c   :  { %v90_v15 = vpop.permute.xlu0 %89  ;;  %v97_v16 = vpop.permute.xlu1 %96 }
  0x8d   :  { %323 = vst [vmem:[%s520_s1 + $0x60] sm:$0xff] %v90_v15  ;;  %324 = vst [vmem:[%s520_s1 + $0x68] sm:$0xff] %v97_v16 }
  0x90   :  { %v104_v17 = vpop.permute.xlu0 %103  ;;  %v111_v18 = vpop.permute.xlu1 %110 }
  0x91   :  { %325 = vst [vmem:[%s520_s1 + $0x70] sm:$0xff] %v104_v17  ;;  %326 = vst [vmem:[%s520_s1 + $0x78] sm:$0xff] %v111_v18 }
  0x94   :  { %v118_v19 = vpop.permute.xlu0 %117  ;;  %v126_v20 = vpop.permute.xlu1 %125 }
  0x95   :  { %328 = vst [vmem:[%s520_s1 + $0x80] sm:$0xff] %v118_v19  ;;  %330 = vst [vmem:[%s520_s1 + $0x88] sm:$0xff] %v126_v20 }
  0x98   :  { %v134_v21 = vpop.permute.xlu0 %133  ;;  %v142_v22 = vpop.permute.xlu1 %141 }
  0x99   :  { %332 = vst [vmem:[%s520_s1 + $0x90] sm:$0xff] %v134_v21  ;;  %334 = vst [vmem:[%s520_s1 + $0x98] sm:$0xff] %v142_v22 }
  0x9c   :  { %v150_v23 = vpop.permute.xlu0 %149  ;;  %v158_v24 = vpop.permute.xlu1 %157 }
  0x9d   :  { %336 = vst [vmem:[%s520_s1 + $0xa0] sm:$0xff] %v150_v23  ;;  %338 = vst [vmem:[%s520_s1 + $0xa8] sm:$0xff] %v158_v24 }
  0xa0   :  { %v166_v25 = vpop.permute.xlu0 %165  ;;  %v174_v26 = vpop.permute.xlu1 %173 }
  0xa1   :  { %340 = vst [vmem:[%s520_s1 + $0xb0] sm:$0xff] %v166_v25  ;;  %342 = vst [vmem:[%s520_s1 + $0xb8] sm:$0xff] %v174_v26 }
  0xa4   :  { %v182_v27 = vpop.permute.xlu0 %181  ;;  %v190_v28 = vpop.permute.xlu1 %189 }
  0xa5   :  { %344 = vst [vmem:[%s520_s1 + $0xc0] sm:$0xff] %v182_v27  ;;  %346 = vst [vmem:[%s520_s1 + $0xc8] sm:$0xff] %v190_v28 }
  0xa8   :  { %v198_v29 = vpop.permute.xlu0 %197  ;;  %v206_v30 = vpop.permute.xlu1 %205 }
  0xa9   :  { %348 = vst [vmem:[%s520_s1 + $0xd0] sm:$0xff] %v198_v29  ;;  %350 = vst [vmem:[%s520_s1 + $0xd8] sm:$0xff] %v206_v30 }
  0xac   :  { %v214_v31 = vpop.permute.xlu0 %213  ;;  %v222_v32 = vpop.permute.xlu1 %221 }
  0xad   :  { %352 = vst [vmem:[%s520_s1 + $0xe0] sm:$0xff] %v214_v31  ;;  %354 = vst [vmem:[%s520_s1 + $0xe8] sm:$0xff] %v222_v32 }
  0xb0   :  { %v230_v33 = vpop.permute.xlu0 %229  ;;  %v238_v34 = vpop.permute.xlu1 %237 }
  0xb1   :  { %356 = vst [vmem:[%s520_s1 + $0xf0] sm:$0xff] %v230_v33  ;;  %358 = vst [vmem:[%s520_s1 + $0xf8] sm:$0xff] %v238_v34 }
  0xb4   :  { %v245_v35 = vpop.permute.xlu0 %244  ;;  %v253_v36 = vpop.permute.xlu1 %252 }
  0xb5   :  { %360 = vst [vmem:[%s520_s1 + $0x100] sm:$0xff] %v245_v35  ;;  %362 = vst [vmem:[%s520_s1 + $0x108] sm:$0xff] %v253_v36 }
  0xb8   :  { %v261_v37 = vpop.permute.xlu0 %260  ;;  %v269_v38 = vpop.permute.xlu1 %268 }
  0xb9   :  { %364 = vst [vmem:[%s520_s1 + $0x110] sm:$0xff] %v261_v37  ;;  %366 = vst [vmem:[%s520_s1 + $0x118] sm:$0xff] %v269_v38 }
  0xbc   :  { %v277_v39 = vpop.permute.xlu0 %276  ;;  %v285_v40 = vpop.permute.xlu1 %284 }
  0xbd   :  { %368 = vst [vmem:[%s520_s1 + $0x120] sm:$0xff] %v277_v39  ;;  %370 = vst [vmem:[%s520_s1 + $0x128] sm:$0xff] %v285_v40 }
  0xc0   :  { %v293_v41 = vpop.permute.xlu0 %292  ;;  %v301_v42 = vpop.permute.xlu1 %300 }
  0xc1   :  { %372 = vst [vmem:[%s520_s1 + $0x130] sm:$0xff] %v293_v41  ;;  %374 = vst [vmem:[%s520_s1 + $0x138] sm:$0xff] %v301_v42 }
  0xc4   :  { %v309_v43 = vpop.permute.xlu0 %308 }
  0xc5   :  { %376 = vst [vmem:[%s520_s1 + $0x140] sm:$0xff] %v309_v43 }

// kernel: classifier_forward.1
= control target key start
LH: loop header
LB: loop body
LE: loop exit
PB: predicated region body
PF: predicated region fallthrough
CT: control target
= control target key end

     0   :  { %12 = vsyncpa [#allocation3], 0  ;;  %s8477_s0 = inlined_call_operand.vmem [shape: bf16[2,328,36], index: 0, kind: input, shape index: {}]   ;;  %s8478_s1 = inlined_call_operand.vmem [shape: bf16[36,16], index: 1, kind: input, shape index: {}]   ;;  %s8479_s2 = inlined_call_operand.vmem [shape: f32[1,16], index: 2, kind: input, shape index: {}]   ;;  %s8480_s3 = inlined_call_operand.vmem [shape: bf16[144,32], index: 3, kind: input, shape index: {}]   ;;  %s8481_s4 = inlined_call_operand.vmem [shape: f32[1,32], index: 4, kind: input, shape index: {}]   ;;  %s8482_s5 = inlined_call_operand.vmem [shape: f32[328,1], index: 5, kind: input, shape index: {}]   ;;  %s8483_s6 = inlined_call_operand.vmem [shape: bf16[1,328], index: 6, kind: input, shape index: {}]   ;;  %s8484_s7 = inlined_call_operand.hbm [shape: f32[2,1,32], index: 7, kind: output, shape index: {}]  }
   0x1   :  { %14 = vsyncpa [#allocation3 + $0x1], 0  ;;  %s5161_s24 = smov 0   ;;  %s5163_s25 = smov 0  }
   0x2   :  { %s5165_s26 = smov 0   ;;  %s5167_s27 = smov 0  }
   0x3 LB: > { %s5182_s28 = sadd.s32 4294967295, %s5107_s27   ;;  %s3776_s29 = sadd.s32 4294967294, %s5107_s27   ;;  %s5107_s27 = sphi %s5167_s27, %s8951_s27   ;;  %s5103_s26 = sphi %s5165_s26, %s8950_s26   ;;  %s5099_s25 = sphi %s5163_s25, %s8949_s25   ;;  %s5095_s24 = sphi %s5161_s24, %s8948_s24  }
   0x4   : > { %s5186_s30 = sadd.s32 1, %s5107_s27   ;;  %s179_s8 = sadd.s32 1, %s5103_s26 }
   0x5   : > { %s176_s9 = ssub.s32 %s5107_s27, %s5186_s30  ;;  %p189_p0 = scmp.ne.s32.totalorder %s5103_s26, %s5099_s25 }
   0x6   : > { %p177_p1 = scmp.eq.s32.totalorder %s176_s9, 0  ;;  %p190_p2 = scmp.eq.s32.totalorder %s5182_s28, 1 }
   0x7   : > { %p195_p3 = scmp.ne.s32.totalorder %s5099_s25, %s5095_s24  ;;  %p196_p4 = scmp.eq.s32.totalorder %s3776_s29, 1 }
   0x8   : > { %s5197_s10 = scalar_select %p177_p1, %s5103_s26, %s179_s8  }
   0x9   : > { %p5199_p5 = por %p190_p2, %p189_p0  ;;  %p5203_p6 = por %p196_p4, %p195_p3 }
   0xa   : > { %p3779_p7 = scmp.ge.s32.totalorder %s5107_s27, 1  ;;  %p240_p8 = scmp.lt.s32.totalorder %s5107_s27, 3 }
   0xc   : > { %p241_p9 = pnand %p3779_p7, %p240_p8 }
   0xe   : > { %244 = sbr.rel (%p241_p9) target bundleno = 1167 (0x48f), region = 48 }
  0x15   : > { %v5011_v0 = vld [vmem:[%s8478_s1] sm:$0xff]   ;;  %v8493_v1 = vmov 0.0   ;;  %v5012_v2 = vld [vmem:[%s8478_s1 + $0x8] sm:$0xff]   ;;  %v5013_v3 = vld [vmem:[%s8478_s1 + $0x10] ss:$0 sps:$4 sm:$0x33]  }
  0x16   : > { %3966 = vmatprep.subr.bf16.mxu0 %v8493_v1  ;;  %4256 = vmatprep.subr.bf16.mxu1 %v8493_v1  ;;  %vm5110_vm0 = vmmov 0   ;;  %p271_p10 = scmp.lt.s32.totalorder %s5182_s28, 1  ;;  %v775_v4 = vld [vmem:[%s8482_s5 + $0x90] sm:$0xff]  ;;  %v777_v5 = vld [vmem:[%s8482_s5 + $0xa0] sm:$0xff]  ;;  %vm512_vm1 = vcmask 1041408   ;;  %v5111_v6 = vmov 0  }
  0x17   : > { %3967 = vmatpush3.bf16.msra.mxu0 %v5011_v0  ;;  %3972 = vmatprep.mubr.msk.bf16.mxu0 %vm5110_vm0, %v8493_v1  ;;  %v776_v7 = vld [vmem:[%s8482_s5 + $0x98] sm:$0xff]  ;;  %v778_v8 = vld [vmem:[%s8482_s5 + $0xa8] sm:$0xff]  ;;  %v514_v9 = vsel %vm512_vm1, %v5013_v3, 0  ;;  %v779_v10 = vld [vmem:[%s8482_s5 + $0xb0] sm:$0xff]  ;;  %vm448_vm2 = vcmask 293888   ;;  %s5112_s16 = smov 64  }
  0x18   : > { %3968 = vmatprep.subr.bf16.mxu0 %v8493_v1  ;;  %4309 = vset.pattern.permute.xlu0 %v5111_v6  ;;  %s272_s23 = scalar_select %p271_p10, %s5182_s28, 1  ;;  %v780_v12 = vld [vmem:[%s8482_s5 + $0xb8] sm:$0xff]  ;;  %v781_v13 = vld [vmem:[%s8482_s5 + $0xc0] sm:$0xff]  ;;  %v782_v14 = vld [vmem:[%s8482_s5 + $0xc8] sm:$0xff]  ;;  %vm2610_vm8 = vcmask 130048   ;;  %vm2652_vm10 = vcmask 261120  }
  0x19   : > { %4310 = vset.pattern.permute.xlu1 %v5111_v6  ;;  %890 = vperm.xlu0 %4309, %v775_v4   ;;  %v783_v16 = vld [vmem:[%s8482_s5 + $0xd0] sm:$0xff]  ;;  %v784_v17 = vld [vmem:[%s8482_s5 + $0xd8] sm:$0xff]  ;;  %v785_v18 = vld [vmem:[%s8482_s5 + $0xe0] sm:$0xff]  ;;  %s5113_s18 = smov 48   ;;  %s5114_s19 = smov 80   ;;  %vm2694_vm11 = vcmask 392192  }
  0x1a   : > { %900 = vperm.xlu1 %4310, %v777_v5   ;;  %4090 = vmatprep.mubr.msk.bf16.mxu1 %vm5110_vm0, %v8493_v1  ;;  %s4258_s14 = smul.u32 164, %s272_s23  ;;  %v795_v19 = vld [vmem:[%s8482_s5 + $0x130] sm:$0xff]  ;;  %v796_v21 = vld [vmem:[%s8482_s5 + $0x138] sm:$0xff]  ;;  %v797_v22 = vld [vmem:[%s8482_s5 + $0x140] sm:$0xff]  ;;  %s5115_s20 = smov 32   ;;  %vm2736_vm12 = vcmask 523264  }
  0x1b   : > { %3969 = vmatpush3.bf16.msra.mxu0 %v5012_v2  ;;  %v786_v23 = vld [vmem:[%s8482_s5 + $0xe8] sm:$0xff]  ;;  %v787_v24 = vld [vmem:[%s8482_s5 + $0xf0] sm:$0xff]  ;;  %v757_v26 = vld [vmem:[%s8482_s5] sm:$0xff]  ;;  %s5116_s21 = smov 16   ;;  %s5117_s22 = smov 112   ;;  %vm2778_vm13 = vcmask 654336  }
  0x1c   : > { %3970 = vmatprep.subr.bf16.mxu0 %v8493_v1  ;;  %s5243_s17 = scalar_lea.vmem %s8477_s0, %s4258_s14  ;;  %v758_v27 = vld [vmem:[%s8482_s5 + $0x8] sm:$0xff]  ;;  %v759_v28 = vld [vmem:[%s8482_s5 + $0x10] sm:$0xff]  ;;  %v760_v29 = vld [vmem:[%s8482_s5 + $0x18] sm:$0xff]  ;;  %s5118_s23 = smov 96   ;;  %vm2820_vm14 = vcmask 785408   ;;  %vm2862_vm15 = vcmask 916480  }
  0x1d   : > { %895 = vperm.xlu0 %4309, %v776_v7   ;;  %v5014_v11 = vld [vmem:[%s5243_s17] sm:$0xff]   ;;  %v5015_v15 = vld [vmem:[%s5243_s17 + $0x8] sm:$0xff]   ;;  %v5016_v20 = vld [vmem:[%s5243_s17 + $0x10] sm:$0xff]   ;;  %vm3618_vm1 = vcmask 588800   ;;  %s5120_s9 = smov [#allocation2]  }
  0x1e   : > { %905 = vperm.xlu1 %4310, %v778_v8   ;;  %v5017_v25 = vld [vmem:[%s5243_s17 + $0x18] sm:$0xff]   ;;  %v5018_v30 = vld [vmem:[%s5243_s17 + $0x20] sm:$0xff]   ;;  %v762_v34 = vld [vmem:[%s8482_s5 + $0x28] sm:$0xff]  ;;  %s5049_s13 = sshll.u32 %s5120_s9, 4  ;;  %s5050_s13 = int_to_ptr.vmem [resolvable:$false] %s5049_s13 }
  0x1f   : > { %3971 = vmatpush3.bf16.msra.mxu0 %v514_v9  ;;  %v761_v31 = vld [vmem:[%s8482_s5 + $0x20] sm:$0xff]  ;;  %v788_v32 = vld [vmem:[%s8482_s5 + $0xf8] sm:$0xff]  ;;  %v5019_v35 = vld [vmem:[%s5243_s17 + $0x28] sm:$0xff]  }
  0x20   : > { %4056 = vmatprep.subr.bf16.mxu0 %v8493_v1  ;;  %v789_v33 = vld [vmem:[%s8482_s5 + $0x100] sm:$0xff]  ;;  %v763_v36 = vld [vmem:[%s8482_s5 + $0x30] sm:$0xff]  ;;  %v790_v37 = vld [vmem:[%s8482_s5 + $0x108] sm:$0xff] }
  0x21   : > { %910 = vperm.xlu0 %4309, %v779_v10   ;;  %v791_v38 = vld [vmem:[%s8482_s5 + $0x110] sm:$0xff]  ;;  %v764_v39 = vld [vmem:[%s8482_s5 + $0x38] sm:$0xff]  ;;  %v765_v41 = vld [vmem:[%s8482_s5 + $0x40] sm:$0xff] }
  0x22   : > { %3973 = vmatmul.mubr.msk.bf16.vlgmr.msra.gmra.mrb[0].mxu0 %vm448_vm2, %v5014_v11  ;;  %915 = vperm.xlu1 %4310, %v780_v12   ;;  %v5020_v40 = vld [vmem:[%s5243_s17 + $0x30] sm:$0xff]   ;;  %v792_v42 = vld [vmem:[%s8482_s5 + $0x118] sm:$0xff]  ;;  %v793_v43 = vld [vmem:[%s8482_s5 + $0x120] sm:$0xff] }
  0x23   : > { %3976 = vmatprep.mubr.msk.bf16.mxu0 %vm5110_vm0, %v8493_v1  ;;  %v766_v44 = vld [vmem:[%s8482_s5 + $0x48] sm:$0xff]  ;;  %v5021_v45 = vld [vmem:[%s5243_s17 + $0x38] sm:$0xff]   ;;  %v767_v46 = vld [vmem:[%s8482_s5 + $0x50] sm:$0xff] }
  0x24   : > { %v794_v47 = vld [vmem:[%s8482_s5 + $0x128] sm:$0xff]  ;;  %v768_v48 = vld [vmem:[%s8482_s5 + $0x58] sm:$0xff]  ;;  %v769_v49 = vld [vmem:[%s8482_s5 + $0x60] sm:$0xff] }
  0x25   : > { %920 = vperm.xlu0 %4309, %v781_v13   ;;  %v5022_v50 = vld [vmem:[%s5243_s17 + $0x40] sm:$0xff]   ;;  %v770_v51 = vld [vmem:[%s8482_s5 + $0x68] sm:$0xff]  ;;  %v771_v52 = vld [vmem:[%s8482_s5 + $0x70] sm:$0xff] }
  0x26   : > { %925 = vperm.xlu1 %4310, %v782_v14   ;;  %v772_v53 = vld [vmem:[%s8482_s5 + $0x78] sm:$0xff]  ;;  %v773_v54 = vld [vmem:[%s8482_s5 + $0x80] sm:$0xff]  ;;  %v5023_v55 = vld [vmem:[%s5243_s17 + $0x48] sm:$0xff]  }
  0x27   : > { %v774_v56 = vld [vmem:[%s8482_s5 + $0x88] sm:$0xff]  ;;  %v5024_v57 = vld [vmem:[%s5243_s17 + $0x50] sm:$0xff]   ;;  %v5025_v58 = vld [vmem:[%s5243_s17 + $0x58] sm:$0xff]  }
  0x28   : > { %v5026_v59 = vld [vmem:[%s5243_s17 + $0x60] sm:$0xff]   ;;  %v5027_v60 = vld [vmem:[%s5243_s17 + $0x68] sm:$0xff]   ;;  %v5028_v62 = vld [vmem:[%s5243_s17 + $0x70] sm:$0xff]  }
  0x29   : > { %930 = vperm.xlu0 %4309, %v783_v16   ;;  %v5035_v61 = vld [vmem:[%s8480_s3 + $0x40] sm:$0xff]   ;;  %v5029_v63 = vld [vmem:[%s5243_s17 + $0x78] sm:$0xff]   ;;  %v5031_v2 = vld [vmem:[%s5243_s17 + $0x88] sm:$0xff]  }
  0x2a   : > { %3977 = vmatmul.mubr.msk.bf16.gmra.mrb[4].mxu0 %vm448_vm2, %v5015_v15  ;;  %935 = vperm.xlu1 %4310, %v784_v17   ;;  %v5030_v0 = vld [vmem:[%s5243_s17 + $0x80] sm:$0xff]   ;;  %v5032_v3 = vld [vmem:[%s5243_s17 + $0x90] sm:$0xff]   ;;  %v5033_v4 = vld [vmem:[%s5243_s17 + $0x98] sm:$0xff]  }
  0x2b   : > { %3980 = vmatprep.mubr.msk.bf16.mxu0 %vm5110_vm0, %v8493_v1  ;;  %4057 = vmatpush3.bf16.msra.mxu0 %v5035_v61  ;;  %v5034_v6 = vld [vmem:[%s5243_s17 + $0xa0] ss:$0 sps:$4 sm:$0xff]  }
  0x2c   : > { %4257 = vmatpush3.bf16.msra.mxu1 %v5035_v61 }
  0x2d   : > { %940 = vperm.xlu0 %4309, %v785_v18   ;;  %4142 = vmatprep.subr.bf16.mxu1 %v8493_v1 }
  0x2e   : > { %990 = vperm.xlu1 %4310, %v795_v19  }
  0x31   : > { %995 = vperm.xlu0 %4309, %v796_v21  }
  0x32   : > { %3981 = vmatmul.mubr.msk.bf16.gmra.mrb[8].mxu0 %vm448_vm2, %v5016_v20  ;;  %1000 = vperm.xlu1 %4310, %v797_v22  }
  0x33   : > { %3984 = vmatprep.mubr.msk.bf16.mxu0 %vm5110_vm0, %v8493_v1 }
  0x35   : > { %945 = vperm.xlu0 %4309, %v786_v23  }
  0x36   : > { %950 = vperm.xlu1 %4310, %v787_v24  }
  0x39   : > { %800 = vperm.xlu0 %4309, %v757_v26  }
  0x3a   : > { %3985 = vmatmul.mubr.msk.bf16.gmra.mrb[12].mxu0 %vm448_vm2, %v5017_v25  ;;  %805 = vperm.xlu1 %4310, %v758_v27   ;;  %v5480_v25 = vld [vmem:[%s8479_s2] ss:$0 sm:$0xff] }
  0x3b   : > { %3988 = vmatprep.mubr.msk.bf16.mxu0 %vm5110_vm0, %v8493_v1 }
  0x3d   : > { %810 = vperm.xlu0 %4309, %v759_v28  }
  0x3e   : > { %815 = vperm.xlu1 %4310, %v760_v29  }
  0x41   : > { %820 = vperm.xlu0 %4309, %v761_v31  }
  0x42   : > { %3989 = vmatmul.mubr.msk.bf16.gmra.mrb[16].mxu0 %vm448_vm2, %v5018_v30  ;;  %955 = vperm.xlu1 %4310, %v788_v32  }
  0x43   : > { %3992 = vmatprep.mubr.msk.bf16.mxu0 %vm5110_vm0, %v8493_v1 }
  0x45   : > { %960 = vperm.xlu0 %4309, %v789_v33  }
  0x46   : > { %825 = vperm.xlu1 %4310, %v762_v34  }
  0x49   : > { %830 = vperm.xlu0 %4309, %v763_v36   ;;  %v1085_v36 = vlaneseq }
  0x4a   : > { %3993 = vmatmul.mubr.msk.bf16.gmra.mrb[20].mxu0 %vm448_vm2, %v5019_v35  ;;  %965 = vperm.xlu1 %4310, %v790_v37  }
  0x4b   : > { %3996 = vmatprep.mubr.msk.bf16.mxu0 %vm5110_vm0, %v8493_v1 }
  0x4d   : > { %970 = vperm.xlu0 %4309, %v791_v38  }
  0x4e   : > { %835 = vperm.xlu1 %4310, %v764_v39  }
  0x51   : > { %840 = vperm.xlu0 %4309, %v765_v41  }
  0x52   : > { %3997 = vmatmul.mubr.msk.bf16.gmra.mrb[24].mxu0 %vm448_vm2, %v5020_v40  ;;  %975 = vperm.xlu1 %4310, %v792_v42  }
  0x53   : > { %4000 = vmatprep.mubr.msk.bf16.mxu0 %vm5110_vm0, %v8493_v1 }
  0x55   : > { %980 = vperm.xlu0 %4309, %v793_v43  }
  0x56   : > { %845 = vperm.xlu1 %4310, %v766_v44   ;;  %v5493_v44 = vshrl.u32 %v1085_v36, 7 }
  0x58   : > { %vm1336_vm3 = vcmp.lt.s32.totalorder %v5493_v44, 7  ;;  %vm1253_vm4 = vcmp.lt.s32.totalorder %v5493_v44, 1  ;;  %vm1170_vm5 = vcmp.lt.s32.totalorder %v5493_v44, 2  ;;  %vm1502_vm6 = vcmp.lt.s32.totalorder %v5493_v44, 5 }
  0x59   : > { %850 = vperm.xlu0 %4309, %v767_v46   ;;  %vm1419_vm7 = vcmp.lt.s32.totalorder %v5493_v44, 6  ;;  %vm1087_vm9 = vcmp.lt.s32.totalorder %v5493_v44, 3 }
  0x5a   : > { %4001 = vmatmul.mubr.msk.bf16.gmra.mrb[28].mxu0 %vm448_vm2, %v5021_v45  ;;  %985 = vperm.xlu1 %4310, %v794_v47  }
  0x5b   : > { %4004 = vmatprep.mubr.msk.bf16.mxu0 %vm5110_vm0, %v8493_v1 }
  0x5d   : > { %855 = vperm.xlu0 %4309, %v768_v48  }
  0x5e   : > { %860 = vperm.xlu1 %4310, %v769_v49  }
  0x61   : > { %865 = vperm.xlu0 %4309, %v770_v51  }
  0x62   : > { %4005 = vmatmul.mubr.msk.bf16.gmra.mrb[32].mxu0 %vm448_vm2, %v5022_v50  ;;  %870 = vperm.xlu1 %4310, %v771_v52  }
  0x63   : > { %4008 = vmatprep.mubr.msk.bf16.mxu0 %vm5110_vm0, %v8493_v1 }
  0x65   : > { %875 = vperm.xlu0 %4309, %v772_v53  }
  0x66   : > { %880 = vperm.xlu1 %4310, %v773_v54  }
  0x69   : > { %885 = vperm.xlu0 %4309, %v774_v56  }
  0x6a   : > { %4009 = vmatmul.mubr.msk.bf16.gmra.mrb[36].mxu0 %vm448_vm2, %v5023_v55 }
  0x6b   : > { %4012 = vmatprep.mubr.msk.bf16.mxu0 %vm5110_vm0, %v8493_v1 }
  0x72   : > { %4013 = vmatmul.mubr.msk.bf16.gmra.mrb[40].mxu0 %vm448_vm2, %v5024_v57 }
  0x73   : > { %4016 = vmatprep.mubr.msk.bf16.mxu0 %vm5110_vm0, %v8493_v1 }
  0x7a   : > { %4017 = vmatmul.mubr.msk.bf16.gmra.mrb[44].mxu0 %vm448_vm2, %v5025_v58 }
  0x7b   : > { %4020 = vmatprep.mubr.msk.bf16.mxu0 %vm5110_vm0, %v8493_v1 }
  0x82   : > { %4021 = vmatmul.mubr.msk.bf16.gmra.mrb[48].mxu0 %vm448_vm2, %v5026_v59 }
  0x83   : > { %4024 = vmatprep.mubr.msk.bf16.mxu0 %vm5110_vm0, %v8493_v1 }
  0x8a   : > { %4025 = vmatmul.mubr.msk.bf16.gmra.mrb[52].mxu0 %vm448_vm2, %v5027_v60 }
  0x8b   : > { %4028 = vmatprep.mubr.msk.bf16.mxu0 %vm5110_vm0, %v8493_v1 }
  0x92   : > { %4029 = vmatmul.mubr.msk.bf16.gmra.mrb[56].mxu0 %vm448_vm2, %v5028_v62 }
  0x93   : > { %4032 = vmatprep.mubr.msk.bf16.mxu0 %vm5110_vm0, %v8493_v1 }
  0x98   : > { %v5441_v5 = vpop.permute.xlu0 %890 }
  0x99   : > { %v5444_v7 = vpop.permute.xlu1 %900 }
  0x9a   : > { %4033 = vmatmul.mubr.msk.bf16.gmra.mrb[60].mxu0 %vm448_vm2, %v5029_v63 }
  0x9b   : > { %4036 = vmatprep.mubr.msk.bf16.mxu0 %vm5110_vm0, %v8493_v1 }
  0x9c   : > { %v5447_v8 = vpop.permute.xlu0 %895 }
  0x9d   : > { %v5451_v9 = vpop.permute.xlu1 %905 }
  0xa0   : > { %v5453_v10 = vpop.permute.xlu0 %910 }
  0xa1   : > { %v5455_v11 = vpop.permute.xlu1 %915 }
  0xa2   : > { %4037 = vmatmul.mubr.msk.bf16.gmra.mrb[64].mxu0 %vm448_vm2, %v5030_v0 }
  0xa3   : > { %4040 = vmatprep.mubr.msk.bf16.mxu0 %vm5110_vm0, %v8493_v1 }
  0xa4   : > { %v5457_v12 = vpop.permute.xlu0 %920 }
  0xa5   : > { %v5459_v13 = vpop.permute.xlu1 %925 }
  0xa8   : > { %v5461_v14 = vpop.permute.xlu0 %930 }
  0xa9   : > { %v5463_v15 = vpop.permute.xlu1 %935 }
  0xaa   : > { %4041 = vmatmul.mubr.msk.bf16.gmra.mrb[68].mxu0 %vm448_vm2, %v5031_v2 }
  0xab   : > { %4044 = vmatprep.mubr.msk.bf16.mxu0 %vm5110_vm0, %v8493_v1 }
  0xac   : > { %v5465_v16 = vpop.permute.xlu0 %940 }
  0xad   : > { %v5467_v17 = vpop.permute.xlu1 %990 }
  0xb0   : > { %v5469_v18 = vpop.permute.xlu0 %995 }
  0xb1   : > { %v5471_v19 = vpop.permute.xlu1 %1000 }
  0xb2   : > { %4045 = vmatmul.mubr.msk.bf16.gmra.mrb[72].mxu0 %vm448_vm2, %v5032_v3 }
  0xb3   : > { %4048 = vmatprep.mubr.msk.bf16.mxu0 %vm5110_vm0, %v8493_v1 }
  0xb4   : > { %v5473_v20 = vpop.permute.xlu0 %945 }
  0xb5   : > { %v5475_v21 = vpop.permute.xlu1 %950 }
  0xb8   : > { %v801_v22 = vpop.permute.xlu0 %800 }
  0xb9   : > { %v806_v23 = vpop.permute.xlu1 %805 }
  0xba   : > { %4049 = vmatmul.mubr.msk.bf16.gmra.mrb[76].mxu0 %vm448_vm2, %v5033_v4 }
  0xbb   : > { %4052 = vmatprep.mubr.msk.bf16.mxu0 %vm5110_vm0, %v8493_v1 }
  0xbc   : > { %v811_v24 = vpop.permute.xlu0 %810 }
  0xbd   : > { %v816_v29 = vpop.permute.xlu1 %815 }
  0xc0   : > { %v821_v34 = vpop.permute.xlu0 %820 }
  0xc1   : > { %v5488_v39 = vpop.permute.xlu1 %955 }
  0xc2   : > { %4053 = vmatmul.mubr.msk.bf16.gmra.mrb[80].mxu0 %vm448_vm2, %v5034_v6  ;;  %vm3706_vm2 = vcmask 253952  }
  0xc3   : > { %4058 = vmatprep.mubr.msk.bf16.mxu0 %vm5110_vm0, %v8493_v1 }
  0xc4   : > { %v5495_v45 = vpop.permute.xlu0 %960 }
  0xc5   : > { %v826_v53 = vpop.permute.xlu1 %825 }
  0xc8   : > { %v5512_v60 = vpop.permute.xlu0 %830 }
  0xf5   : > { %v550_v26 = vpop.f32.mrb[0].mxu0 }
  0xf6   : > { %v551_v27 = vadd.f32 %v5480_v25, %v550_v26  ;;  %v3974_v28 = vpop.f32.mrb[1].mxu0 }
  0xf7   : > { %v553_v30 = vpop.f32.mrb[2].mxu0 }
  0xf8   : > { %v716_v31 = vmax.f32 %v551_v27, 0.0  ;;  %v554_v32 = vadd.f32 %v5480_v25, %v553_v30  ;;  %v3975_v33 = vpop.f32.mrb[3].mxu0 }
  0xfa   : > { %v717_v35 = vmax.f32 %v554_v32, 0.0  ;;  %v5484_v37 = vmul.f32 %v801_v22, %v716_v31 }
  0xfc   : > { %8605 = vst [vmem:[#allocation5_spill] sm:$0xff] %v5484_v37  ;;  %v5486_v38 = vmul.f32 %v806_v23, %v717_v35  ;;  %v8486_v55 = vrot.slane %v5484_v37, 1  ;;  %v5549_v35 = vpop.permute.xlu1 %965 }
  0xfd   : > { %v558_v40 = vpop.f32.mrb[4].mxu0 }
  0xfe   : > { %8606 = vst [vmem:[#allocation6_spill] sm:$0xff] %v5486_v38  ;;  %v559_v41 = vadd.f32 %v5480_v25, %v558_v40  ;;  %v3978_v42 = vpop.f32.mrb[5].mxu0  ;;  %v4311_v43 = vpack.i.bf16 %v5486_v38, %v5484_v37  ;;  %v1296_v50 = vrot.slane %v5486_v38, 1  ;;  %v8488_v54 = vrot.slane %v5486_v38, 7 }
  0xff   : > { %v561_v46 = vpop.f32.mrb[6].mxu0  ;;  %v8489_v63 = vrot.slane %v5486_v38, 6 }
 0x100   : > { %v718_v47 = vmax.f32 %v559_v41, 0.0  ;;  %v562_v48 = vadd.f32 %v5480_v25, %v561_v46  ;;  %4312 = vrot.lane.b32.xlu0 %v4311_v43, %s5112_s16  ;;  %v3979_v49 = vpop.f32.mrb[7].mxu0  ;;  %v5518_v62 = vsel %vm1336_vm3, %v8486_v55, %v1296_v50 }
 0x101   : > { %8609 = vst [vmem:[#allocation9_spill] sm:$0xff] %v5518_v62 }
 0x102   : > { %v5500_v51 = vmul.f32 %v811_v24, %v718_v47  ;;  %v719_v52 = vmax.f32 %v562_v48, 0.0  ;;  %v5562_v48 = vpop.permute.xlu0 %970 }
 0x104   : > { %8607 = vst [vmem:[#allocation7_spill] sm:$0xff] %v5500_v51  ;;  %v5507_v56 = vmul.f32 %v816_v29, %v719_v52  ;;  %v1214_v57 = vrot.slane %v5500_v51, 7  ;;  %v1297_v58 = vrot.slane %v5500_v51, 1  ;;  %v1131_v59 = vrot.slane %v5500_v51, 6 }
 0x105   : > { %v566_v61 = vpop.f32.mrb[8].mxu0  ;;  %v8487_v0 = vrot.slane %v5500_v51, 3  ;;  %v8485_v49 = vrot.slane %v5500_v51, 2 }
 0x106   : > { %8608 = vst [vmem:[#allocation8_spill] sm:$0xff] %v5507_v56  ;;  %v567_v2 = vadd.f32 %v5480_v25, %v566_v61  ;;  %v3982_v3 = vpop.f32.mrb[9].mxu0  ;;  %v4316_v4 = vpack.i.bf16 %v5507_v56, %v5500_v51  ;;  %v1215_v6 = vrot.slane %v5507_v56, 7  ;;  %v1292_v22 = vsel %vm1253_vm4, %v8488_v54, %v1214_v57 }
 0x107   : > { %v569_v23 = vpop.f32.mrb[10].mxu0  ;;  %v5533_v24 = vsel %vm1336_vm3, %v1296_v50, %v1297_v58  ;;  %v1132_v26 = vrot.slane %v5507_v56, 6  ;;  %v1209_v27 = vsel %vm1170_vm5, %v8489_v63, %v1131_v59  ;;  %v1464_v28 = vrot.slane %v5507_v56, 3 }
 0x108   : > { %8610 = vst [vmem:[#allocation10_spill] sm:$0xff] %v5533_v24  ;;  %v720_v29 = vmax.f32 %v567_v2, 0.0  ;;  %v570_v30 = vadd.f32 %v5480_v25, %v569_v23  ;;  %4317 = vrot.lane.b32.xlu1 %v4316_v4, %s5112_s16  ;;  %v3983_v31 = vpop.f32.mrb[11].mxu0  ;;  %v1291_v32 = vsel %vm1253_vm4, %v1214_v57, %v1215_v6  ;;  %v4321_v33 = vpack.i.bf16 %v5533_v24, %v5518_v62 }
 0x109   : > { %v4326_v36 = vpack.i.bf16 %v1291_v32, %v1292_v22  ;;  %v1208_v40 = vsel %vm1170_vm5, %v1131_v59, %v1132_v26  ;;  %v1540_v41 = vsel %vm1502_vm6, %v8487_v0, %v1464_v28  ;;  %v1381_v47 = vrot.slane %v5507_v56, 2 }
 0x10a   : > { %v5559_v42 = vmul.f32 %v821_v34, %v720_v29  ;;  %v721_v43 = vmax.f32 %v570_v30, 0.0  ;;  %v4331_v46 = vpack.i.bf16 %v1208_v40, %v1209_v27  ;;  %v1298_v50 = vrot.slane %v5507_v56, 1  ;;  %v836_v29 = vpop.permute.xlu1 %835 }
 0x10b   : > { %4327 = vrot.lane.b32.xlu0 %v4326_v36, %s5113_s18  ;;  %v1457_v61 = vsel %vm1419_vm7, %v8485_v49, %v1381_v47 }
 0x10c   : > { %8611 = vst [vmem:[#allocation11_spill] sm:$0xff] %v5559_v42  ;;  %v5567_v52 = vmul.f32 %v826_v53, %v721_v43  ;;  %4322 = vrot.lane.b32.xlu1 %v4321_v33, %s5114_s19  ;;  %v1465_v34 = vrot.slane %v5559_v42, 3  ;;  %v1382_v57 = vrot.slane %v5559_v42, 2  ;;  %v1299_v2 = vrot.slane %v5559_v42, 1 }
 0x10d   : > { %v574_v59 = vpop.f32.mrb[12].mxu0  ;;  %v1374_v53 = vsel %vm1336_vm3, %v1297_v58, %v1298_v50  ;;  %v1216_v23 = vrot.slane %v5559_v42, 7  ;;  %v1133_v27 = vrot.slane %v5559_v42, 6 }
 0x10e   : > { %8612 = vst [vmem:[#allocation12_spill] sm:$0xff] %v5567_v52  ;;  %v575_v3 = vadd.f32 %v5480_v25, %v574_v59  ;;  %v3986_v4 = vpop.f32.mrb[13].mxu0  ;;  %v1539_v22 = vsel %vm1502_vm6, %v1464_v28, %v1465_v34  ;;  %v1456_v58 = vsel %vm1419_vm7, %v1381_v47, %v1382_v57  ;;  %v1373_v28 = vsel %vm1336_vm3, %v1298_v50, %v1299_v2  ;;  %v841_v59 = vpop.permute.xlu0 %840 }
 0x10f   : > { %4337 = vrot.lane.b32.xlu0 %v4326_v36, %s5115_s20  ;;  %v577_v30 = vpop.f32.mrb[14].mxu0  ;;  %v2941_v31 = vpack.c.bf16 %v1539_v22, %v1540_v41  ;;  %v1217_v32 = vrot.slane %v5567_v52, 7  ;;  %v4341_v41 = vpack.i.bf16 %v5567_v52, %v5559_v42  ;;  %v4346_v43 = vpack.i.bf16 %v1373_v28, %v1374_v53 }
 0x110   : > { %v722_v33 = vmax.f32 %v575_v3, 0.0  ;;  %v578_v40 = vadd.f32 %v5480_v25, %v577_v30  ;;  %4332 = vrot.lane.b32.xlu1 %v4331_v46, %s5116_s21  ;;  %v3987_v36 = vpop.f32.mrb[15].mxu0  ;;  %v1466_v50 = vrot.slane %v5567_v52, 3  ;;  %v8496_v3 = vrot.slane %v5567_v52, 6 }
 0x111   : > { %4059 = vmatmul.mubr.msk.bf16.vlgmr.msra.gmra.mrb[84].mxu0 %vm2610_vm8, %v2941_v31  ;;  %v1289_v47 = vsel %vm1253_vm4, %v1216_v23, %v1217_v32  ;;  %v4351_v22 = vpack.i.bf16 %v1456_v58, %v1457_v61  ;;  %v1290_v53 = vsel %vm1253_vm4, %v1215_v6, %v1216_v23  ;;  %v8492_v31 = vrot.slane %v5500_v51, 5  ;;  %v5628_v58 = vpop.permute.xlu1 %975 }
 0x112   : > { %v5607_v4 = vmul.f32 %v5512_v60, %v722_v33  ;;  %v723_v46 = vmax.f32 %v578_v40, 0.0  ;;  %4062 = vmatprep.mubr.msk.bf16.mxu0 %vm5110_vm0, %v8493_v1  ;;  %v4361_v30 = vpack.i.bf16 %v1289_v47, %v1290_v53  ;;  %v8491_v60 = vrot.slane %v5507_v56, 5 }
 0x113   : > { %4342 = vrot.lane.b32.xlu0 %v4341_v41, %s5112_s16  ;;  %v1206_v6 = vsel %vm1170_vm5, %v1133_v27, %v8496_v3  ;;  %v1538_v40 = vsel %vm1502_vm6, %v1465_v34, %v1466_v50  ;;  %v1300_v36 = vrot.slane %v5567_v52, 1  ;;  %v1207_v53 = vsel %vm1170_vm5, %v1132_v26, %v1133_v27  ;;  %v5643_v34 = vpop.permute.xlu0 %980 }
 0x114   : > { %8613 = vst [vmem:[#allocation13_spill] sm:$0xff] %v5607_v4  ;;  %v5619_v28 = vmul.f32 %v836_v29, %v723_v46  ;;  %4352 = vrot.lane.b32.xlu1 %v4351_v22, %s5117_s22  ;;  %v1467_v61 = vrot.slane %v5607_v4, 3  ;;  %v8495_v23 = vrot.slane %v5607_v4, 2  ;;  %v1383_v29 = vrot.slane %v5567_v52, 2 }
 0x115   : > { %v582_v33 = vpop.f32.mrb[16].mxu0  ;;  %v8490_v41 = vrot.slane %v5607_v4, 1  ;;  %v4366_v54 = vpack.i.bf16 %v1206_v6, %v1207_v53 }
 0x116   : > { %8614 = vst [vmem:[#allocation14_spill] sm:$0xff] %v5619_v28  ;;  %v583_v47 = vadd.f32 %v5480_v25, %v582_v33  ;;  %v3990_v46 = vpop.f32.mrb[17].mxu0  ;;  %v1537_v22 = vsel %vm1502_vm6, %v1466_v50, %v1467_v61  ;;  %v1468_v49 = vrot.slane %v5619_v28, 3  ;;  %v1218_v33 = vrot.slane %v5607_v4, 7 }
 0x117   : > { %4347 = vrot.lane.b32.xlu0 %v4346_v43, %s5118_s23  ;;  %v585_v55 = vpop.f32.mrb[18].mxu0  ;;  %v2942_v0 = vpack.c.bf16 %v1537_v22, %v1538_v40  ;;  %v1454_v26 = vsel %vm1419_vm7, %v1383_v29, %v8495_v23  ;;  %v1371_v27 = vsel %vm1336_vm3, %v1300_v36, %v8490_v41  ;;  %v4376_v6 = vpack.i.bf16 %v5619_v28, %v5607_v4  ;;  %v846_v41 = vpop.permute.xlu1 %845 }
 0x118   : > { %v724_v46 = vmax.f32 %v583_v47, 0.0  ;;  %v586_v50 = vadd.f32 %v5480_v25, %v585_v55  ;;  %4362 = vrot.lane.b32.xlu1 %v4361_v30, %s5113_s18  ;;  %v3991_v63 = vpop.f32.mrb[19].mxu0  ;;  %v1455_v55 = vsel %vm1419_vm7, %v1382_v57, %v1383_v29  ;;  %v1219_v40 = vrot.slane %v5619_v28, 7 }
 0x119   : > { %4063 = vmatmul.mubr.msk.bf16.gmra.mrb[88].mxu0 %vm2610_vm8, %v2942_v0  ;;  %v1372_v63 = vsel %vm1336_vm3, %v1299_v2, %v1300_v36  ;;  %v1536_v0 = vsel %vm1502_vm6, %v1467_v61, %v1468_v49  ;;  %v1136_v53 = vrot.slane %v5619_v28, 6  ;;  %v4386_v57 = vpack.i.bf16 %v1454_v26, %v1455_v55 }
 0x11a   : > { %v5669_v47 = vmul.f32 %v841_v59, %v724_v46  ;;  %v725_v22 = vmax.f32 %v586_v50, 0.0  ;;  %4066 = vmatprep.mubr.msk.bf16.mxu0 %vm5110_vm0, %v8493_v1  ;;  %v5677_v29 = vpack.i.bf16 %v1371_v27, %v1372_v63  ;;  %v1135_v2 = vrot.slane %v5607_v4, 6  ;;  %v851_v50 = vpop.permute.xlu0 %850 }
 0x11b   : > { %4357 = vrot.lane.b32.xlu0 %v4346_v43, %s5114_s19  ;;  %v5686_v59 = vsel %vm1087_vm9, %v8492_v31, %v8491_v60  ;;  %v1287_v43 = vsel %vm1253_vm4, %v1218_v33, %v1219_v40  ;;  %v1288_v46 = vsel %vm1253_vm4, %v1217_v32, %v1218_v33  ;;  %v8619_v56 = vrot.slane %v5619_v28, 1 }
 0x11c   : > { %8615 = vst [vmem:[#allocation15_spill] sm:$0xff] %v5686_v59  ;;  %v5688_v36 = vmul.f32 %v846_v41, %v725_v22  ;;  %4372 = vrot.lane.b32.xlu1 %v4361_v30, %s5115_s20  ;;  %v1469_v61 = vrot.slane %v5669_v47, 3  ;;  %v5700_v27 = vsel %vm1170_vm5, %v1135_v2, %v1136_v53  ;;  %v1385_v41 = vrot.slane %v5619_v28, 2 }
 0x11d   : > { %v590_v26 = vpop.f32.mrb[20].mxu0  ;;  %v1386_v32 = vrot.slane %v5669_v47, 2  ;;  %v4396_v1 = vpack.i.bf16 %v1287_v43, %v1288_v46  ;;  %v8617_v43 = vrot.slane %v5607_v4, 2 }
 0x11e   : > { %v591_v55 = vadd.f32 %v5480_v25, %v590_v26  ;;  %v3994_v63 = vpop.f32.mrb[21].mxu0  ;;  %v1535_v22 = vsel %vm1502_vm6, %v1468_v49, %v1469_v61  ;;  %v1470_v60 = vrot.slane %v5688_v36, 3 }
 0x11f   : > { %4367 = vrot.lane.b32.xlu0 %v4366_v54, %s5116_s21  ;;  %v593_v33 = vpop.f32.mrb[22].mxu0  ;;  %v2943_v31 = vpack.c.bf16 %v1535_v22, %v1536_v0  ;;  %v8616_v63 = vrot.slane %v5567_v52, 6  ;;  %v5726_v46 = vsel %vm1419_vm7, %v8617_v43, %v1385_v41 }
 0x120   : > { %v726_v3 = vmax.f32 %v591_v55, 0.0  ;;  %v594_v30 = vadd.f32 %v5480_v25, %v593_v33  ;;  %4377 = vrot.lane.b32.xlu1 %v4376_v6, %s5112_s16  ;;  %v3995_v26 = vpop.f32.mrb[23].mxu0  ;;  %v1534_v49 = vsel %vm1502_vm6, %v1469_v61, %v1470_v60  ;;  %v1220_v6 = vrot.slane %v5669_v47, 7 }
 0x121   : > { %v1205_v54 = vsel %vm1170_vm5, %v8616_v63, %v1135_v2  ;;  %4067 = vmatmul.mubr.msk.bf16.gmra.mrb[92].mxu0 %vm2610_vm8, %v2943_v31  ;;  %v1221_v55 = vrot.slane %v5688_v36, 7  ;;  %v8618_v33 = vmov 0.0   ;;  %v5736_v31 = vsel %vm1419_vm7, %v1385_v41, %v1386_v32  ;;  %v856_v26 = vpop.permute.xlu0 %855 }
 0x122   : > { %v4401_v0 = vpack.i.bf16 %v5700_v27, %v1205_v54  ;;  %v5730_v61 = vmul.f32 %v851_v50, %v726_v3  ;;  %v727_v22 = vmax.f32 %v594_v30, 0.0  ;;  %4070 = vmatprep.mubr.msk.bf16.mxu0 %vm5110_vm0, %v8618_v33  ;;  %v1303_v2 = vrot.slane %v5669_v47, 1  ;;  %v5739_v27 = vpop.permute.xlu1 %985 }
 0x123   : > { %4387 = vrot.lane.b32.xlu0 %v4386_v57, %s5117_s22  ;;  %v1285_v63 = vsel %vm1253_vm4, %v1220_v6, %v1221_v55  ;;  %v1286_v3 = vsel %vm1253_vm4, %v1219_v40, %v1220_v6  ;;  %v1137_v50 = vrot.slane %v5669_v47, 6  ;;  %v1138_v30 = vrot.slane %v5688_v36, 6 }
 0x124   : > { %v5748_v54 = vmul.f32 %v856_v26, %v727_v22  ;;  %4382 = vrot.lane.b32.xlu1 %v5677_v29, %s5118_s23  ;;  %v1471_v41 = vrot.slane %v5730_v61, 3  ;;  %v5753_v43 = vpack.i.bf16 %v1285_v63, %v1286_v3  ;;  %v1387_v6 = vrot.slane %v5688_v36, 2 }
 0x125   : > { %v598_v57 = vpop.f32.mrb[24].mxu0  ;;  %v5757_v23 = vsel %vm1170_vm5, %v1137_v50, %v1138_v30  ;;  %v5761_v40 = vsel %vm1170_vm5, %v1136_v53, %v1137_v50  ;;  %v4421_v3 = vpack.i.bf16 %v5736_v31, %v5726_v46  ;;  %v1369_v22 = vsel %vm1336_vm3, %v8619_v56, %v1303_v2  ;;  %v866_v52 = vpop.permute.xlu0 %865 }
 0x126   : > { %v599_v26 = vadd.f32 %v5480_v25, %v598_v57  ;;  %v3998_v24 = vpop.f32.mrb[25].mxu0  ;;  %v1533_v63 = vsel %vm1502_vm6, %v1470_v60, %v1471_v41  ;;  %v5785_v46 = vsel %vm1419_vm7, %v1386_v32, %v1387_v6  ;;  %v861_v62 = vpop.permute.xlu1 %860  ;;  %v8504_v32 = vrot.slane %v5730_v61, 1 }
 0x127   : > { %4397 = vrot.lane.b32.xlu0 %v4396_v1, %s5113_s18  ;;  %v601_v53 = vpop.f32.mrb[26].mxu0  ;;  %v2944_v50 = vpack.c.bf16 %v1533_v63, %v1534_v49  ;;  %v8620_v24 = vrot.slane %v5730_v61, 2  ;;  %v1472_v63 = vrot.slane %v5748_v54, 3  ;;  %v1140_v56 = vrot.slane %v5748_v54, 6 }
 0x128   : > { %v728_v31 = vmax.f32 %v599_v26, 0.0  ;;  %v602_v57 = vadd.f32 %v5480_v25, %v601_v53  ;;  %4392 = vrot.lane.b32.xlu1 %v5677_v29, %s5114_s19  ;;  %v3999_v49 = vpop.f32.mrb[27].mxu0  ;;  %v1223_v26 = vrot.slane %v5748_v54, 7 }
 0x129   : > { %v5781_v60 = vsel %vm1419_vm7, %v1387_v6, %v8620_v24  ;;  %4071 = vmatmul.mubr.msk.bf16.gmra.mrb[96].mxu0 %vm2610_vm8, %v2944_v50  ;;  %v1304_v24 = vrot.slane %v5688_v36, 1  ;;  %v1222_v6 = vrot.slane %v5730_v61, 7  ;;  %v1139_v49 = vrot.slane %v5730_v61, 6 }
 0x12a   : > { %v5798_v53 = vmul.f32 %v861_v62, %v728_v31  ;;  %v729_v29 = vmax.f32 %v602_v57, 0.0  ;;  %4074 = vmatprep.mubr.msk.bf16.mxu0 %vm5110_vm0, %v8618_v33 }
 0x12b   : > { %4407 = vrot.lane.b32.xlu0 %v4396_v1, %s5115_s20  ;;  %v1367_v50 = vsel %vm1336_vm3, %v1304_v24, %v8504_v32  ;;  %v1368_v62 = vsel %vm1336_vm3, %v1303_v2, %v1304_v24  ;;  %v1283_v31 = vsel %vm1253_vm4, %v1222_v6, %v1223_v26  ;;  %v1284_v57 = vsel %vm1253_vm4, %v1221_v55, %v1222_v6 }
 0x12c   : > { %v5815_v42 = vmul.f32 %v866_v52, %v729_v29  ;;  %4402 = vrot.lane.b32.xlu1 %v4401_v0, %s5116_s21  ;;  %v1473_v1 = vrot.slane %v5798_v53, 3  ;;  %v5819_v59 = vpack.i.bf16 %v1367_v50, %v1368_v62  ;;  %v5821_v51 = vpack.i.bf16 %v1283_v31, %v1284_v57 }
 0x12d   : > { %v606_v32 = vpop.f32.mrb[28].mxu0  ;;  %v5825_v2 = vsel %vm1170_vm5, %v1139_v49, %v1140_v56  ;;  %v5829_v24 = vsel %vm1170_vm5, %v1138_v30, %v1139_v49  ;;  %v1532_v6 = vsel %vm1502_vm6, %v1471_v41, %v1472_v63  ;;  %v8621_v50 = vpack.i.bf16 %v5688_v36, %v5669_v47 }
 0x12e   : > { %v607_v52 = vadd.f32 %v5480_v25, %v606_v32  ;;  %v4002_v55 = vpop.f32.mrb[29].mxu0  ;;  %v1531_v0 = vsel %vm1502_vm6, %v1472_v63, %v1473_v1  ;;  %v8622_v57 = vrot.slane %v5619_v28, 1  ;;  %v8623_v41 = vrot.slane %v5607_v4, 1 }
 0x12f   : > { %4412 = vrot.lane.b32.xlu0 %v8621_v50, %s5112_s16  ;;  %v609_v62 = vpop.f32.mrb[30].mxu0  ;;  %v2945_v30 = vpack.c.bf16 %v1531_v0, %v1532_v6  ;;  %v871_v55 = vpop.permute.xlu1 %870  ;;  %v1474_v50 = vrot.slane %v5815_v42, 3 }
 0x130   : > { %v730_v49 = vmax.f32 %v607_v52, 0.0  ;;  %v610_v32 = vadd.f32 %v5480_v25, %v609_v62  ;;  %4422 = vrot.lane.b32.xlu1 %v4421_v3, %s5117_s22  ;;  %v4003_v31 = vpop.f32.mrb[31].mxu0  ;;  %v1370_v63 = vsel %vm1336_vm3, %v8623_v41, %v8622_v57  ;;  %v1224_v52 = vrot.slane %v5798_v53, 7 }
 0x131   : > { %4075 = vmatmul.mubr.msk.bf16.gmra.mrb[100].mxu0 %vm2610_vm8, %v2945_v30  ;;  %v4416_v29 = vpack.i.bf16 %v1369_v22, %v1370_v63  ;;  %v1225_v3 = vrot.slane %v5815_v42, 7  ;;  %v1141_v62 = vrot.slane %v5798_v53, 6  ;;  %v876_v30 = vpop.permute.xlu0 %875  ;;  %v1142_v41 = vrot.slane %v5815_v42, 6 }
 0x132   : > { %v5853_v0 = vmul.f32 %v871_v55, %v730_v49  ;;  %v731_v6 = vmax.f32 %v610_v32, 0.0  ;;  %4078 = vmatprep.mubr.msk.bf16.mxu0 %vm5110_vm0, %v8618_v33  ;;  %v1530_v49 = vsel %vm1502_vm6, %v1473_v1, %v1474_v50  ;;  %v1282_v57 = vsel %vm1253_vm4, %v1223_v26, %v1224_v52 }
 0x133   : > { %4417 = vrot.lane.b32.xlu0 %v4416_v29, %s5118_s23  ;;  %v1281_v32 = vsel %vm1253_vm4, %v1224_v52, %v1225_v3  ;;  %v5884_v26 = vsel %vm1170_vm5, %v1141_v62, %v1142_v41  ;;  %v5888_v52 = vsel %vm1170_vm5, %v1140_v56, %v1141_v62  ;;  %v4446_v56 = vpack.i.bf16 %v5748_v54, %v5730_v61 }
 0x134   : > { %4432 = vrot.lane.b32.xlu1 %v5753_v43, %s5113_s18  ;;  %v1475_v22 = vrot.slane %v5853_v0, 3  ;;  %v5872_v63 = vmul.f32 %v876_v30, %v731_v6  ;;  %v5877_v38 = vpack.i.bf16 %v1281_v32, %v1282_v57 }
 0x135   : > { %v614_v31 = vpop.f32.mrb[32].mxu0 }
 0x136   : > { %v615_v55 = vadd.f32 %v5480_v25, %v614_v31  ;;  %v4006_v4 = vpop.f32.mrb[33].mxu0  ;;  %v1529_v28 = vsel %vm1502_vm6, %v1474_v50, %v1475_v22  ;;  %v1476_v62 = vrot.slane %v5872_v63, 3 }
 0x137   : > { %4427 = vrot.lane.b32.xlu0 %v4416_v29, %s5114_s19  ;;  %v617_v1 = vpop.f32.mrb[34].mxu0  ;;  %v2946_v37 = vpack.c.bf16 %v1529_v28, %v1530_v49  ;;  %v4506_v28 = vpack.i.bf16 %v5884_v26, %v5888_v52  ;;  %v881_v29 = vpop.permute.xlu1 %880 }
 0x138   : > { %v732_v4 = vmax.f32 %v615_v55, 0.0  ;;  %v618_v6 = vadd.f32 %v5480_v25, %v617_v1  ;;  %4442 = vrot.lane.b32.xlu1 %v5753_v43, %s5115_s20  ;;  %v4007_v50 = vpop.f32.mrb[35].mxu0  ;;  %v8624_v43 = vpack.i.bf16 %v5757_v23, %v5761_v40  ;;  %v886_v49 = vpop.permute.xlu0 %885  ;;  %v8626_v23 = vpack.i.bf16 %v5781_v60, %v5785_v46 }
 0x139   : > { %4079 = vmatmul.mubr.msk.bf16.gmra.mrb[104].mxu0 %vm2610_vm8, %v2946_v37  ;;  %v1389_v46 = vrot.slane %v5748_v54, 2 }
 0x13a   : > { %v5896_v30 = vmul.f32 %v881_v29, %v732_v4  ;;  %v733_v31 = vmax.f32 %v618_v6, 0.0  ;;  %4082 = vmatprep.mubr.msk.bf16.mxu0 %vm5110_vm0, %v8618_v33  ;;  %v1528_v6 = vsel %vm1502_vm6, %v1475_v22, %v1476_v62 }
 0x13b   : > { %4437 = vrot.lane.b32.xlu0 %v8624_v43, %s5116_s21  ;;  %v1390_v43 = vrot.slane %v5798_v53, 2 }
 0x13c   : > { %4447 = vrot.lane.b32.xlu1 %v4446_v56, %s5112_s16  ;;  %v1477_v37 = vrot.slane %v5896_v30, 3  ;;  %v5909_v57 = vmul.f32 %v886_v49, %v733_v31 }
 0x13d   : > { %v622_v32 = vpop.f32.mrb[36].mxu0 }
 0x13e   : > { %8625 = vst [vmem:[#allocation16_spill] sm:$0xff] %v5909_v57  ;;  %v623_v55 = vadd.f32 %v5480_v25, %v622_v32  ;;  %v4010_v1 = vpop.f32.mrb[37].mxu0  ;;  %v1527_v4 = vsel %vm1502_vm6, %v1476_v62, %v1477_v37  ;;  %v1478_v60 = vrot.slane %v5909_v57, 3 }
 0x13f   : > { %4457 = vrot.lane.b32.xlu0 %v8626_v23, %s5117_s22  ;;  %v625_v40 = vpop.f32.mrb[38].mxu0  ;;  %v2947_v50 = vpack.c.bf16 %v1527_v4, %v1528_v6 }
 0x140   : > { %v734_v29 = vmax.f32 %v623_v55, 0.0  ;;  %v626_v31 = vadd.f32 %v5480_v25, %v625_v40  ;;  %4452 = vrot.lane.b32.xlu1 %v5819_v59, %s5118_s23  ;;  %v4011_v56 = vpop.f32.mrb[39].mxu0  ;;  %v1307_v55 = vrot.slane %v5798_v53, 1 }
 0x141   : > { %4083 = vmatmul.mubr.msk.bf16.gmra.mrb[108].mxu0 %vm2610_vm8, %v2947_v50 }
 0x142   : > { %v5926_v22 = vmul.f32 %v5441_v5, %v734_v29  ;;  %v735_v62 = vmax.f32 %v626_v31, 0.0  ;;  %4086 = vmatprep.mubr.msk.bf16.mxu0 %vm5110_vm0, %v8618_v33  ;;  %v1448_v5 = vsel %vm1419_vm7, %v1389_v46, %v1390_v43 }
 0x143   : > { %4467 = vrot.lane.b32.xlu0 %v5821_v51, %s5113_s18 }
 0x144   : > { %8627 = vst [vmem:[#allocation17_spill] sm:$0xff] %v5926_v22  ;;  %4462 = vrot.lane.b32.xlu1 %v5819_v59, %s5114_s19  ;;  %v1479_v49 = vrot.slane %v5926_v22, 3  ;;  %v5943_v1 = vmul.f32 %v5447_v8, %v735_v62  ;;  %v1526_v59 = vsel %vm1502_vm6, %v1477_v37, %v1478_v60  ;;  %v8629_v8 = vpack.i.bf16 %v5825_v2, %v5829_v24 }
 0x145   : > { %v630_v32 = vpop.f32.mrb[40].mxu0  ;;  %v8630_v62 = vrot.slane %v5730_v61, 2  ;;  %v1306_v37 = vrot.slane %v5748_v54, 1 }
 0x146   : > { %8628 = vst [vmem:[#allocation18_spill] sm:$0xff] %v5943_v1  ;;  %v631_v4 = vadd.f32 %v5480_v25, %v630_v32  ;;  %v4014_v6 = vpop.f32.mrb[41].mxu0  ;;  %v1525_v23 = vsel %vm1502_vm6, %v1478_v60, %v1479_v49  ;;  %v1480_v24 = vrot.slane %v5943_v1, 3 }
 0x147   : > { %4477 = vrot.lane.b32.xlu0 %v5821_v51, %s5115_s20  ;;  %v633_v40 = vpop.f32.mrb[42].mxu0  ;;  %v2948_v50 = vpack.c.bf16 %v1525_v23, %v1526_v59  ;;  %v1449_v32 = vsel %vm1419_vm7, %v8630_v62, %v1389_v46  ;;  %v4481_v51 = vpack.i.bf16 %v5815_v42, %v5798_v53  ;;  %v1365_v2 = vsel %vm1336_vm3, %v1306_v37, %v1307_v55 }
 0x148   : > { %v736_v29 = vmax.f32 %v631_v4, 0.0  ;;  %v634_v31 = vadd.f32 %v5480_v25, %v633_v40  ;;  %4472 = vrot.lane.b32.xlu1 %v8629_v8, %s5116_s21  ;;  %v4015_v56 = vpop.f32.mrb[43].mxu0  ;;  %v4491_v60 = vpack.i.bf16 %v1448_v5, %v1449_v32  ;;  %v8632_v46 = vrot.slane %v5730_v61, 1 }
 0x149   : > { %4087 = vmatmul.mubr.msk.bf16.gmra.mrb[112].mxu0 %vm2610_vm8, %v2948_v50  ;;  %v1524_v8 = vsel %vm1502_vm6, %v1479_v49, %v1480_v24  ;;  %v5036_v56 = vld [vmem:[%s8480_s3] sm:$0xff]   ;;  %v1309_v49 = vrot.slane %v5853_v0, 1 }
 0x14a   : > { %v5966_v4 = vmul.f32 %v5444_v7, %v736_v29  ;;  %v737_v6 = vmax.f32 %v634_v31, 0.0  ;;  %v1366_v5 = vsel %vm1336_vm3, %v8632_v46, %v1306_v37  ;;  %v5037_v46 = vld [vmem:[%s8480_s3 + $0x8] sm:$0xff]  }
 0x14b   : > { %4482 = vrot.lane.b32.xlu0 %v4481_v51, %s5112_s16  ;;  %v4486_v59 = vpack.i.bf16 %v1365_v2, %v1366_v5  ;;  %v1391_v5 = vrot.slane %v5815_v42, 2 }
 0x14c   : > { %8631 = vst [vmem:[#allocation19_spill] sm:$0xff] %v5966_v4  ;;  %4492 = vrot.lane.b32.xlu1 %v4491_v60, %s5117_s22  ;;  %v1481_v7 = vrot.slane %v5966_v4, 3  ;;  %v5981_v40 = vmul.f32 %v5451_v9, %v737_v6  ;;  %v1392_v60 = vrot.slane %v5853_v0, 2 }
 0x14d   : > { %v638_v23 = vpop.f32.mrb[44].mxu0 }
 0x14e   : > { %8633 = vst [vmem:[#allocation20_spill] sm:$0xff] %v5981_v40  ;;  %v639_v50 = vadd.f32 %v5480_v25, %v638_v23  ;;  %v4018_v29 = vpop.f32.mrb[45].mxu0  ;;  %v1523_v31 = vsel %vm1502_vm6, %v1480_v24, %v1481_v7  ;;  %v1482_v24 = vrot.slane %v5981_v40, 3  ;;  %v1308_v23 = vrot.slane %v5815_v42, 1 }
 0x14f   : > { %4487 = vrot.lane.b32.xlu0 %v4486_v59, %s5118_s23  ;;  %v641_v62 = vpop.f32.mrb[46].mxu0  ;;  %v2949_v32 = vpack.c.bf16 %v1523_v31, %v1524_v8  ;;  %v4516_v29 = vpack.i.bf16 %v5872_v63, %v5853_v0  ;;  %v1227_v8 = vrot.slane %v5872_v63, 7 }
 0x150   : > { %v738_v37 = vmax.f32 %v639_v50, 0.0  ;;  %v642_v9 = vadd.f32 %v5480_v25, %v641_v62  ;;  %4502 = vrot.lane.b32.xlu1 %v5877_v38, %s5113_s18  ;;  %v4019_v51 = vpop.f32.mrb[47].mxu0  ;;  %v1363_v31 = vsel %vm1336_vm3, %v1308_v23, %v1309_v49  ;;  %v1364_v26 = vsel %vm1336_vm3, %v1307_v55, %v1308_v23 }
 0x151   : > { %4091 = vmatmul.mubr.msk.bf16.vlgmr.msra.gmra.mrb[0].mxu1 %vm2610_vm8, %v2949_v32  ;;  %v4521_v52 = vpack.i.bf16 %v1363_v31, %v1364_v26  ;;  %v1143_v23 = vrot.slane %v5853_v0, 6 }
 0x152   : > { %v5999_v6 = vmul.f32 %v5453_v10, %v738_v37  ;;  %v739_v2 = vmax.f32 %v642_v9, 0.0  ;;  %4094 = vmatprep.mubr.msk.bf16.mxu1 %vm5110_vm0, %v8618_v33  ;;  %4143 = vmatpush3.bf16.msra.mxu1 %v5036_v56  ;;  %v1522_v37 = vsel %vm1502_vm6, %v1481_v7, %v1482_v24  ;;  %v5038_v9 = vld [vmem:[%s8480_s3 + $0x10] sm:$0xff]  }
 0x153   : > { %4497 = vrot.lane.b32.xlu0 %v4486_v59, %s5114_s19  ;;  %4144 = vmatprep.subr.bf16.mxu1 %v8618_v33  ;;  %v1446_v59 = vsel %vm1419_vm7, %v1391_v5, %v1392_v60 }
 0x154   : > { %8634 = vst [vmem:[#allocation21_spill] sm:$0xff] %v5999_v6  ;;  %4512 = vrot.lane.b32.xlu1 %v5877_v38, %s5115_s20  ;;  %v1483_v10 = vrot.slane %v5999_v6, 3  ;;  %v6026_v38 = vmul.f32 %v5455_v11, %v739_v2  ;;  %v1447_v2 = vsel %vm1419_vm7, %v1390_v43, %v1391_v5  ;;  %v8516_v43 = vrot.slane %v5669_v47, 5 }
 0x155   : > { %v646_v50 = vpop.f32.mrb[48].mxu0  ;;  %v8512_v5 = vrot.slane %v5688_v36, 5 }
 0x156   : > { %8635 = vst [vmem:[#allocation22_spill] sm:$0xff] %v6026_v38  ;;  %v647_v56 = vadd.f32 %v5480_v25, %v646_v50  ;;  %v4022_v62 = vpop.f32.mrb[49].mxu0  ;;  %v1521_v32 = vsel %vm1502_vm6, %v1482_v24, %v1483_v10  ;;  %4145 = vmatpush3.bf16.msra.mxu1 %v5037_v46  ;;  %v1226_v50 = vrot.slane %v5853_v0, 7  ;;  %v1484_v55 = vrot.slane %v6026_v38, 3 }
 0x157   : > { %4507 = vrot.lane.b32.xlu0 %v4506_v28, %s5116_s21  ;;  %v649_v11 = vpop.f32.mrb[50].mxu0  ;;  %v2950_v51 = vpack.c.bf16 %v1521_v32, %v1522_v37  ;;  %4146 = vmatprep.subr.bf16.mxu1 %v8618_v33  ;;  %v4526_v62 = vpack.i.bf16 %v1446_v59, %v1447_v2  ;;  %v1144_v28 = vrot.slane %v5872_v63, 6 }
 0x158   : > { %v740_v7 = vmax.f32 %v647_v56, 0.0  ;;  %v650_v24 = vadd.f32 %v5480_v25, %v649_v11  ;;  %4517 = vrot.lane.b32.xlu1 %v4516_v29, %s5112_s16  ;;  %v4023_v46 = vpop.f32.mrb[51].mxu0  ;;  %v1279_v59 = vsel %vm1253_vm4, %v1226_v50, %v1227_v8  ;;  %v1280_v31 = vsel %vm1253_vm4, %v1225_v3, %v1226_v50 }
 0x159   : > { %4095 = vmatmul.mubr.msk.bf16.gmra.mrb[4].mxu1 %vm2610_vm8, %v2950_v51  ;;  %v1196_v11 = vsel %vm1170_vm5, %v1143_v23, %v1144_v28  ;;  %v1394_v51 = vrot.slane %v5896_v30, 2  ;;  %v1520_v50 = vsel %vm1502_vm6, %v1483_v10, %v1484_v55 }
 0x15a   : > { %v6057_v56 = vmul.f32 %v5457_v12, %v740_v7  ;;  %v741_v29 = vmax.f32 %v650_v24, 0.0  ;;  %4098 = vmatprep.mubr.msk.bf16.mxu1 %vm5110_vm0, %v8618_v33  ;;  %4147 = vmatpush3.bf16.msra.mxu1 %v5038_v9  ;;  %v6074_v12 = vsel %vm1087_vm9, %v8516_v43, %v8512_v5  ;;  %v4536_v9 = vpack.i.bf16 %v1279_v59, %v1280_v31 }
 0x15b   : > { %4527 = vrot.lane.b32.xlu0 %v4526_v62, %s5117_s22  ;;  %4148 = vmatprep.subr.bf16.mxu1 %v8618_v33  ;;  %v1393_v31 = vrot.slane %v5872_v63, 2 }
 0x15c   : > { %8636 = vst [vmem:[#allocation23_spill] sm:$0xff] %v6057_v56  ;;  %4522 = vrot.lane.b32.xlu1 %v4521_v52, %s5118_s23  ;;  %v1485_v32 = vrot.slane %v6057_v56, 3  ;;  %v6089_v2 = vmul.f32 %v5459_v13, %v741_v29  ;;  %v1197_v29 = vsel %vm1170_vm5, %v1142_v41, %v1143_v23 }
 0x15d   : > { %v654_v37 = vpop.f32.mrb[52].mxu0  ;;  %v4541_v10 = vpack.i.bf16 %v1196_v11, %v1197_v29  ;;  %v1444_v41 = vsel %vm1419_vm7, %v1393_v31, %v1394_v51  ;;  %v1310_v11 = vrot.slane %v5872_v63, 1 }
 0x15e   : > { %8637 = vst [vmem:[#allocation24_spill] sm:$0xff] %v6089_v2  ;;  %v655_v7 = vadd.f32 %v5480_v25, %v654_v37  ;;  %v4026_v24 = vpop.f32.mrb[53].mxu0  ;;  %v1519_v3 = vsel %vm1502_vm6, %v1484_v55, %v1485_v32  ;;  %v1311_v55 = vrot.slane %v5896_v30, 1  ;;  %v5039_v37 = vld [vmem:[%s8480_s3 + $0x18] sm:$0xff]   ;;  %v1486_v23 = vrot.slane %v6089_v2, 3 }
 0x15f   : > { %4537 = vrot.lane.b32.xlu0 %v4536_v9, %s5113_s18  ;;  %v657_v46 = vpop.f32.mrb[54].mxu0  ;;  %v2951_v62 = vpack.c.bf16 %v1519_v3, %v1520_v50  ;;  %v1229_v24 = vrot.slane %v5909_v57, 7  ;;  %4149 = vmatpush3.bf16.msra.mxu1 %v5039_v37 }
 0x160   : > { %v742_v26 = vmax.f32 %v655_v7, 0.0  ;;  %v658_v59 = vadd.f32 %v5480_v25, %v657_v46  ;;  %4532 = vrot.lane.b32.xlu1 %v4521_v52, %s5114_s19  ;;  %v4027_v13 = vpop.f32.mrb[55].mxu0  ;;  %v4551_v46 = vpack.i.bf16 %v5909_v57, %v5896_v30  ;;  %4150 = vmatprep.subr.bf16.mxu1 %v8618_v33 }
 0x161   : > { %4099 = vmatmul.mubr.msk.bf16.gmra.mrb[8].mxu1 %vm2610_vm8, %v2951_v62 }
 0x162   : > { %v6110_v7 = vmul.f32 %v5461_v14, %v742_v26  ;;  %v743_v52 = vmax.f32 %v658_v59, 0.0  ;;  %4102 = vmatprep.mubr.msk.bf16.mxu1 %vm5110_vm0, %v8618_v33  ;;  %v1445_v14 = vsel %vm1419_vm7, %v1392_v60, %v1393_v31  ;;  %v1228_v26 = vrot.slane %v5896_v30, 7 }
 0x163   : > { %4547 = vrot.lane.b32.xlu0 %v4536_v9, %s5115_s20  ;;  %v4561_v62 = vpack.i.bf16 %v1444_v41, %v1445_v14  ;;  %v1361_v9 = vsel %vm1336_vm3, %v1310_v11, %v1311_v55  ;;  %v1518_v31 = vsel %vm1502_vm6, %v1485_v32, %v1486_v23  ;;  %v1362_v32 = vsel %vm1336_vm3, %v1309_v49, %v1310_v11 }
 0x164   : > { %8638 = vst [vmem:[#allocation25_spill] sm:$0xff] %v6110_v7  ;;  %4542 = vrot.lane.b32.xlu1 %v4541_v10, %s5116_s21  ;;  %v1487_v3 = vrot.slane %v6110_v7, 3  ;;  %v6137_v59 = vmul.f32 %v5463_v15, %v743_v52  ;;  %v1277_v41 = vsel %vm1253_vm4, %v1228_v26, %v1229_v24  ;;  %v1145_v11 = vrot.slane %v5896_v30, 6 }
 0x165   : > { %v662_v50 = vpop.f32.mrb[56].mxu0 }
 0x166   : > { %8639 = vst [vmem:[#allocation26_spill] sm:$0xff] %v6137_v59  ;;  %v663_v60 = vadd.f32 %v5480_v25, %v662_v50  ;;  %v4030_v13 = vpop.f32.mrb[57].mxu0  ;;  %v1517_v29 = vsel %vm1502_vm6, %v1486_v23, %v1487_v3  ;;  %v4556_v23 = vpack.i.bf16 %v1361_v9, %v1362_v32  ;;  %v1278_v50 = vsel %vm1253_vm4, %v1227_v8, %v1228_v26 }
 0x167   : > { %4552 = vrot.lane.b32.xlu0 %v4551_v46, %s5112_s16  ;;  %v665_v10 = vpop.f32.mrb[58].mxu0  ;;  %v2952_v37 = vpack.c.bf16 %v1517_v29, %v1518_v31  ;;  %v8514_v46 = vrot.slane %v5909_v57, 6  ;;  %v1488_v49 = vrot.slane %v6137_v59, 3  ;;  %v1396_v26 = vrot.slane %v5926_v22, 2  ;;  %v6183_v31 = vld [vmem:[%s8479_s2] ss:$0 sm:$0xff] }
 0x168   : > { %v744_v15 = vmax.f32 %v663_v60, 0.0  ;;  %v666_v52 = vadd.f32 %v5480_v25, %v665_v10  ;;  %4562 = vrot.lane.b32.xlu1 %v4561_v62, %s5117_s22  ;;  %v4031_v14 = vpop.f32.mrb[59].mxu0  ;;  %v4571_v60 = vpack.i.bf16 %v1277_v41, %v1278_v50  ;;  %v1313_v13 = vrot.slane %v5926_v22, 1 }
 0x169   : > { %4103 = vmatmul.mubr.msk.bf16.gmra.mrb[12].mxu1 %vm2610_vm8, %v2952_v37 }
 0x16a   : > { %v6162_v25 = vmul.f32 %v5465_v16, %v744_v15  ;;  %v745_v62 = vmax.f32 %v666_v52, 0.0  ;;  %4106 = vmatprep.mubr.msk.bf16.mxu1 %vm5110_vm0, %v8618_v33  ;;  %v1194_v16 = vsel %vm1170_vm5, %v1145_v11, %v8514_v46  ;;  %v1516_v15 = vsel %vm1502_vm6, %v1487_v3, %v1488_v49  ;;  %v5040_v3 = vld [vmem:[%s8480_s3 + $0x20] sm:$0xff]  }
 0x16b   : > { %4557 = vrot.lane.b32.xlu0 %v4556_v23, %s5118_s23  ;;  %4151 = vmatpush3.bf16.msra.mxu1 %v5040_v3 }
 0x16c   : > { %8640 = vst [vmem:[#allocation27_spill] sm:$0xff] %v6162_v25  ;;  %4572 = vrot.lane.b32.xlu1 %v4571_v60, %s5113_s18  ;;  %v1489_v8 = vrot.slane %v6162_v25, 3  ;;  %v6178_v29 = vmul.f32 %v5473_v20, %v745_v62  ;;  %v1395_v20 = vrot.slane %v5909_v57, 2  ;;  %4152 = vmatprep.subr.bf16.mxu1 %v8618_v33 }
 0x16d   : > { %v670_v9 = vpop.f32.mrb[60].mxu0 }
 0x16e   : > { %8641 = vst [vmem:[#allocation28_spill] sm:$0xff] %v6178_v29  ;;  %v671_v10 = vadd.f32 %v6183_v31, %v670_v9  ;;  %v4034_v37 = vpop.f32.mrb[61].mxu0  ;;  %v1515_v41 = vsel %vm1502_vm6, %v1488_v49, %v1489_v8  ;;  %v1195_v9 = vsel %vm1170_vm5, %v1144_v28, %v1145_v11  ;;  %v4586_v49 = vpack.i.bf16 %v5943_v1, %v5926_v22 }
 0x16f   : > { %4567 = vrot.lane.b32.xlu0 %v4556_v23, %s5114_s19  ;;  %v673_v52 = vpop.f32.mrb[62].mxu0  ;;  %v2953_v14 = vpack.c.bf16 %v1515_v41, %v1516_v15  ;;  %v1312_v37 = vrot.slane %v5909_v57, 1  ;;  %v4576_v23 = vpack.i.bf16 %v1194_v16, %v1195_v9  ;;  %v1490_v16 = vrot.slane %v6178_v29, 3 }
 0x170   : > { %v746_v32 = vmax.f32 %v671_v10, 0.0  ;;  %v674_v50 = vadd.f32 %v6183_v31, %v673_v52  ;;  %4582 = vrot.lane.b32.xlu1 %v4571_v60, %s5115_s20  ;;  %v4035_v62 = vpop.f32.mrb[63].mxu0  ;;  %v1442_v60 = vsel %vm1419_vm7, %v1395_v20, %v1396_v26  ;;  %v8513_v10 = vrot.slane %v5943_v1, 7 }
 0x171   : > { %4107 = vmatmul.mubr.msk.bf16.gmra.mrb[16].mxu1 %vm2610_vm8, %v2953_v14  ;;  %v1359_v41 = vsel %vm1336_vm3, %v1312_v37, %v1313_v13  ;;  %v1230_v15 = vrot.slane %v5926_v22, 7  ;;  %v1360_v14 = vsel %vm1336_vm3, %v1311_v55, %v1312_v37  ;;  %v8517_v9 = vrot.slane %v5966_v4, 2 }
 0x172   : > { %v6211_v28 = vmul.f32 %v5475_v21, %v746_v32  ;;  %v747_v11 = vmax.f32 %v674_v50, 0.0  ;;  %4110 = vmatprep.mubr.msk.bf16.mxu1 %vm5110_vm0, %v8618_v33  ;;  %v1443_v21 = vsel %vm1419_vm7, %v1394_v51, %v1395_v20  ;;  %v4591_v62 = vpack.i.bf16 %v1359_v41, %v1360_v14 }
 0x173   : > { %4577 = vrot.lane.b32.xlu0 %v4576_v23, %s5116_s21  ;;  %v4596_v52 = vpack.i.bf16 %v1442_v60, %v1443_v21  ;;  %v1275_v51 = vsel %vm1253_vm4, %v1230_v15, %v8513_v10  ;;  %v8515_v20 = vrot.slane %v5966_v4, 1  ;;  %v1514_v37 = vsel %vm1502_vm6, %v1489_v8, %v1490_v16  ;;  %v6256_v8 = vpop.permute.xlu0 %4312  ;;  %v5042_v10 = vld [vmem:[%s8480_s3 + $0x30] sm:$0xff]  }
 0x174   : > { %8642 = vst [vmem:[#allocation29_spill] sm:$0xff] %v6211_v28  ;;  %4587 = vrot.lane.b32.xlu1 %v4586_v49, %s5112_s16  ;;  %v1491_v32 = vrot.slane %v6211_v28, 3  ;;  %v6240_v3 = vmul.f32 %v5488_v39, %v747_v11  ;;  %v1314_v21 = vrot.slane %v5943_v1, 1  ;;  %v1276_v11 = vsel %vm1253_vm4, %v1229_v24, %v1230_v15  ;;  %8644 = vst [vmem:[#allocation31_spill] sm:$0xff] %v6256_v8 }
 0x175   : > { %v678_v50 = vpop.f32.mrb[64].mxu0 }
 0x176   : > { %8643 = vst [vmem:[#allocation30_spill] sm:$0xff] %v6240_v3  ;;  %v679_v23 = vadd.f32 %v6183_v31, %v678_v50  ;;  %v4038_v49 = vpop.f32.mrb[65].mxu0  ;;  %v1513_v55 = vsel %vm1502_vm6, %v1490_v16, %v1491_v32  ;;  %v1397_v50 = vrot.slane %v5943_v1, 2  ;;  %v6259_v16 = vpack.i.bf16 %v1275_v51, %v1276_v11 }
 0x177   : > { %4597 = vrot.lane.b32.xlu0 %v4596_v52, %s5117_s22  ;;  %v681_v60 = vpop.f32.mrb[66].mxu0  ;;  %v2954_v41 = vpack.c.bf16 %v1513_v55, %v1514_v37  ;;  %v1357_v52 = vsel %vm1336_vm3, %v1314_v21, %v8515_v20  ;;  %v1492_v15 = vrot.slane %v6240_v3, 3 }
 0x178   : > { %v748_v14 = vmax.f32 %v679_v23, 0.0  ;;  %v682_v5 = vadd.f32 %v6183_v31, %v681_v60  ;;  %4592 = vrot.lane.b32.xlu1 %v4591_v62, %s5118_s23  ;;  %v4039_v39 = vpop.f32.mrb[67].mxu0  ;;  %v1440_v24 = vsel %vm1419_vm7, %v1397_v50, %v8517_v9  ;;  %v1441_v51 = vsel %vm1419_vm7, %v1396_v26, %v1397_v50 }
 0x179   : > { %4111 = vmatmul.mubr.msk.bf16.gmra.mrb[20].mxu1 %vm2610_vm8, %v2954_v41  ;;  %v4616_v39 = vpack.i.bf16 %v1440_v24, %v1441_v51  ;;  %v1512_v50 = vsel %vm1502_vm6, %v1491_v32, %v1492_v15 }
 0x17a   : > { %v6266_v23 = vmul.f32 %v5495_v45, %v748_v14  ;;  %v749_v49 = vmax.f32 %v682_v5, 0.0  ;;  %v6268_v55 = vpop.permute.xlu1 %4317  ;;  %4114 = vmatprep.mubr.msk.bf16.mxu1 %vm5110_vm0, %v8618_v33  ;;  %v5041_v45 = vld [vmem:[%s8480_s3 + $0x28] sm:$0xff]   ;;  %v1358_v5 = vsel %vm1336_vm3, %v1313_v13, %v1314_v21 }
 0x17b   : > { %8646 = vst [vmem:[#allocation33_spill] sm:$0xff] %v6268_v55  ;;  %4607 = vrot.lane.b32.xlu0 %v6259_v16, %s5113_s18  ;;  %v6294_v14 = vpack.i.bf16 %v1357_v52, %v1358_v5  ;;  %4153 = vmatpush3.bf16.msra.mxu1 %v5041_v45  ;;  %v1233_v55 = vrot.slane %v5981_v40, 7 }
 0x17c   : > { %8645 = vst [vmem:[#allocation32_spill] sm:$0xff] %v6266_v23  ;;  %4602 = vrot.lane.b32.xlu1 %v4591_v62, %s5114_s19  ;;  %v1493_v37 = vrot.slane %v6266_v23, 3  ;;  %v6297_v62 = vmul.f32 %v5549_v35, %v749_v49  ;;  %4154 = vmatprep.subr.bf16.mxu1 %v8618_v33 }
 0x17d   : > { %v6292_v60 = vpop.permute.xlu0 %4327  ;;  %v686_v41 = vpop.f32.mrb[68].mxu0 }
 0x17e   : > { %8647 = vst [vmem:[#allocation34_spill] sm:$0xff] %v6292_v60  ;;  %8648 = vst [vmem:[#allocation35_spill] sm:$0xff] %v6297_v62  ;;  %v687_v11 = vadd.f32 %v6183_v31, %v686_v41  ;;  %v6300_v13 = vpop.permute.xlu1 %4322  ;;  %v4042_v21 = vpop.f32.mrb[69].mxu0  ;;  %v1511_v26 = vsel %vm1502_vm6, %v1492_v15, %v1493_v37  ;;  %v1494_v41 = vrot.slane %v6297_v62, 3  ;;  %v8679_v60 = vld [vmem:[#allocation14_spill] sm:$0xff]  ;;  %v1401_v62 = vrot.slane %v6026_v38, 2 }
 0x17f   : > { %8649 = vst [vmem:[#allocation36_spill] sm:$0xff] %v6300_v13  ;;  %4612 = vrot.lane.b32.xlu0 %v6294_v14, %s5118_s23  ;;  %v689_v52 = vpop.f32.mrb[70].mxu0  ;;  %v2955_v24 = vpack.c.bf16 %v1511_v26, %v1512_v50  ;;  %4155 = vmatpush3.bf16.msra.mxu1 %v5042_v10 }
 0x180   : > { %v750_v35 = vmax.f32 %v687_v11, 0.0  ;;  %v690_v49 = vadd.f32 %v6183_v31, %v689_v52  ;;  %4617 = vrot.lane.b32.xlu1 %v4616_v39, %s5117_s22  ;;  %v4043_v45 = vpop.f32.mrb[71].mxu0  ;;  %4156 = vmatprep.subr.bf16.mxu1 %v8618_v33 }
 0x181   : > { %v6311_v5 = vpop.permute.xlu0 %4337  ;;  %4115 = vmatmul.mubr.msk.bf16.gmra.mrb[24].mxu1 %vm2610_vm8, %v2955_v24 }
 0x182   : > { %v6315_v51 = vmul.f32 %v5562_v48, %v750_v35  ;;  %v751_v32 = vmax.f32 %v690_v49, 0.0  ;;  %v6317_v15 = vpop.permute.xlu1 %4332  ;;  %4118 = vmatprep.mubr.msk.bf16.mxu1 %vm5110_vm0, %v8618_v33  ;;  %v1510_v35 = vsel %vm1502_vm6, %v1493_v37, %v1494_v41 }
 0x184   : > { %8650 = vst [vmem:[#allocation37_spill] sm:$0xff] %v6315_v51  ;;  %v1495_v11 = vrot.slane %v6315_v51, 3  ;;  %v6326_v26 = vmul.f32 %v5628_v58, %v751_v32 }
 0x185   : > { %v6323_v21 = vpop.permute.xlu0 %4342  ;;  %v694_v39 = vpop.f32.mrb[72].mxu0 }
 0x186   : > { %8651 = vst [vmem:[#allocation38_spill] sm:$0xff] %v6326_v26  ;;  %v695_v50 = vadd.f32 %v6183_v31, %v694_v39  ;;  %v6329_v48 = vpop.permute.xlu1 %4352  ;;  %v4046_v52 = vpop.f32.mrb[73].mxu0  ;;  %v1509_v24 = vsel %vm1502_vm6, %v1494_v41, %v1495_v11  ;;  %v1496_v37 = vrot.slane %v6326_v26, 3 }
 0x187   : > { %8652 = vst [vmem:[#allocation39_spill] sm:$0xff] %v6329_v48  ;;  %v697_v49 = vpop.f32.mrb[74].mxu0  ;;  %v2956_v45 = vpack.c.bf16 %v1509_v24, %v1510_v35 }
 0x188   : > { %v752_v46 = vmax.f32 %v695_v50, 0.0  ;;  %v698_v58 = vadd.f32 %v6183_v31, %v697_v49  ;;  %v4047_v32 = vpop.f32.mrb[75].mxu0  ;;  %v1508_v10 = vsel %vm1502_vm6, %v1495_v11, %v1496_v37 }
 0x189   : > { %v6339_v39 = vpop.permute.xlu0 %4347  ;;  %4119 = vmatmul.mubr.msk.bf16.gmra.mrb[28].mxu1 %vm2610_vm8, %v2956_v45 }
 0x18a   : > { %8653 = vst [vmem:[#allocation40_spill] sm:$0xff] %v6339_v39  ;;  %v6343_v52 = vmul.f32 %v5643_v34, %v752_v46  ;;  %v753_v20 = vmax.f32 %v698_v58, 0.0  ;;  %v6345_v43 = vpop.permute.xlu1 %4362  ;;  %4122 = vmatprep.mubr.msk.bf16.mxu1 %vm5110_vm0, %v8618_v33 }
 0x18c   : > { %8654 = vst [vmem:[#allocation41_spill] sm:$0xff] %v6343_v52  ;;  %v1497_v41 = vrot.slane %v6343_v52, 3  ;;  %v6355_v35 = vmul.f32 %v5739_v27, %v753_v20 }
 0x18d   : > { %v6352_v50 = vpop.permute.xlu0 %4357  ;;  %v702_v24 = vpop.f32.mrb[76].mxu0 }
 0x18e   : > { %8655 = vst [vmem:[#allocation42_spill] sm:$0xff] %v6352_v50  ;;  %v703_v34 = vadd.f32 %v6183_v31, %v702_v24  ;;  %v6358_v46 = vpop.permute.xlu1 %4372  ;;  %v4050_v49 = vpop.f32.mrb[77].mxu0  ;;  %v1507_v45 = vsel %vm1502_vm6, %v1496_v37, %v1497_v41  ;;  %v1498_v11 = vrot.slane %v6355_v35, 3 }
 0x18f   : > { %8656 = vst [vmem:[#allocation43_spill] sm:$0xff] %v6358_v46  ;;  %v705_v58 = vpop.f32.mrb[78].mxu0  ;;  %v2957_v32 = vpack.c.bf16 %v1507_v45, %v1508_v10 }
 0x190   : > { %v754_v9 = vmax.f32 %v703_v34, 0.0  ;;  %v706_v26 = vadd.f32 %v6183_v31, %v705_v58  ;;  %v4051_v52 = vpop.f32.mrb[79].mxu0  ;;  %v1506_v10 = vsel %vm1502_vm6, %v1497_v41, %v1498_v11 }
 0x191   : > { %v6365_v50 = vpop.permute.xlu0 %4367  ;;  %4123 = vmatmul.mubr.msk.bf16.gmra.mrb[32].mxu1 %vm2610_vm8, %v2957_v32 }
 0x192   : > { %8657 = vst [vmem:[#allocation44_spill] sm:$0xff] %v6365_v50  ;;  %v6369_v27 = vmul.f32 %v5467_v17, %v754_v9  ;;  %v755_v20 = vmax.f32 %v706_v26, 0.0  ;;  %v6371_v24 = vpop.permute.xlu1 %4377  ;;  %4126 = vmatprep.mubr.msk.bf16.mxu1 %vm5110_vm0, %v8618_v33  ;;  %v1148_v50 = vrot.slane %v5943_v1, 6 }
 0x193   : > { %8658 = vst [vmem:[#allocation45_spill] sm:$0xff] %v6371_v24 }
 0x194   : > { %v1499_v37 = vrot.slane %v6369_v27, 3  ;;  %v6380_v49 = vmul.f32 %v5469_v18, %v755_v20  ;;  %v5043_v18 = vld [vmem:[%s8480_s3 + $0x38] sm:$0xff]  }
 0x195   : > { %v6377_v34 = vpop.permute.xlu0 %4387  ;;  %v710_v52 = vpop.f32.mrb[80].mxu0  ;;  %4157 = vmatpush3.bf16.msra.mxu1 %v5043_v18 }
 0x196   : > { %8659 = vst [vmem:[#allocation46_spill] sm:$0xff] %v6377_v34  ;;  %8660 = vst [vmem:[#allocation47_spill] sm:$0xff] %v6380_v49  ;;  %v711_v45 = vadd.f32 %v6183_v31, %v710_v52  ;;  %v6383_v17 = vpop.permute.xlu1 %4382  ;;  %v4054_v9 = vpop.f32.mrb[81].mxu0  ;;  %v1505_v26 = vsel %vm1502_vm6, %v1498_v11, %v1499_v37  ;;  %v1500_v41 = vrot.slane %v6380_v49, 3 }
 0x197   : > { %8661 = vst [vmem:[#allocation48_spill] sm:$0xff] %v6383_v17  ;;  %v713_v58 = vpop.f32.mrb[82].mxu0  ;;  %v2958_v32 = vpack.c.bf16 %v1505_v26, %v1506_v10  ;;  %v1168_v26 = vrot.slane %v6380_v49, 6 }
 0x198   : > { %v756_v24 = vmax.f32 %v711_v45, 0.0  ;;  %v4055_v46 = vpop.f32.mrb[83].mxu0  ;;  %v8665_v58 = vld [vmem:[#allocation5_spill] sm:$0xff]  ;;  %v1504_v45 = vsel %vm1502_vm6, %v1499_v37, %v1500_v41 }
 0x199   : > { %v6392_v20 = vpop.permute.xlu0 %4397  ;;  %4127 = vmatmul.mubr.msk.bf16.gmra.mrb[36].mxu1 %vm2610_vm8, %v2958_v32  ;;  %v1251_v46 = vrot.slane %v6380_v49, 7  ;;  %v1129_v32 = vrot.slane %v8665_v58, 6  ;;  %v8668_v49 = vrot.slane %v6369_v27, 7  ;;  %v1212_v39 = vrot.slane %v8665_v58, 7 }
 0x19a   : > { %8662 = vst [vmem:[#allocation49_spill] sm:$0xff] %v6392_v20  ;;  %v6396_v31 = vmul.f32 %v5471_v19, %v756_v24  ;;  %v6398_v52 = vpop.permute.xlu1 %4392  ;;  %4130 = vmatprep.mubr.msk.bf16.mxu1 %vm5110_vm0, %v8618_v33  ;;  %v8670_v20 = vrot.slane %v6369_v27, 6 }
 0x19b   : > { %v6427_v24 = vsel %vm1253_vm4, %v8668_v49, %v1251_v46 }
 0x19c   : > { %8663 = vst [vmem:[#allocation50_spill] sm:$0xff] %v6396_v31  ;;  %v1501_v11 = vrot.slane %v6396_v31, 3  ;;  %v1252_v9 = vrot.slane %v6396_v31, 7  ;;  %v1169_v10 = vrot.slane %v6396_v31, 6  ;;  %8669 = vst [vmem:[#allocation54_spill] sm:$0xff] %v6427_v24  ;;  %v1172_v37 = vsel %vm1170_vm5, %v8670_v20, %v1168_v26 }
 0x19d   : > { %v6408_v19 = vpop.permute.xlu0 %4407 }
 0x19e   : > { %8664 = vst [vmem:[#allocation51_spill] sm:$0xff] %v6408_v19  ;;  %v6413_v17 = vpop.permute.xlu1 %4402  ;;  %v1503_v18 = vsel %vm1502_vm6, %v1500_v41, %v1501_v11  ;;  %v6421_v34 = vsel %vm1253_vm4, %v1251_v46, %v1252_v9  ;;  %v1171_v19 = vsel %vm1170_vm5, %v1168_v26, %v1169_v10  ;;  %v1211_v41 = vsel %vm1170_vm5, %v1169_v10, %v1129_v32 }
 0x19f   : > { %8666 = vst [vmem:[#allocation52_spill] sm:$0xff] %v6413_v17  ;;  %8667 = vst [vmem:[#allocation53_spill] sm:$0xff] %v6421_v34  ;;  %v2959_v31 = vpack.c.bf16 %v1503_v18, %v1504_v45  ;;  %v4626_v17 = vpack.i.bf16 %v6421_v34, %v6427_v24  ;;  %v4621_v49 = vpack.i.bf16 %v1171_v19, %v1172_v37  ;;  %v8672_v45 = vld [vmem:[#allocation6_spill] sm:$0xff]  ;;  %v1461_v26 = vrot.slane %v8665_v58, 3 }
 0x1a0   : > { %v8673_v18 = vrot.slane %v8672_v45, 6  ;;  %v1294_v20 = vsel %vm1253_vm4, %v1252_v9, %v1212_v39  ;;  %v8541_v10 = vrot.slane %v8672_v45, 5  ;;  %v8674_v37 = vrot.slane %v8672_v45, 7 }
 0x1a1   : > { %v6440_v48 = vpop.permute.xlu0 %4412  ;;  %4131 = vmatmul.mubr.msk.bf16.gmra.mrb[40].mxu1 %vm2610_vm8, %v2959_v31  ;;  %4627 = vrot.lane.b32.xlu0 %v4626_v17, %s5115_s20  ;;  %v1462_v31 = vrot.slane %v8672_v45, 3  ;;  %v1543_v9 = vsel %vm1502_vm6, %v1501_v11, %v1461_v26  ;;  %v1405_v24 = vrot.slane %v6137_v59, 2 }
 0x1a2   : > { %8671 = vst [vmem:[#allocation55_spill] sm:$0xff] %v6440_v48  ;;  %v6444_v46 = vpop.permute.xlu1 %4422  ;;  %v1210_v34 = vsel %vm1170_vm5, %v1129_v32, %v8673_v18  ;;  %4134 = vmatprep.mubr.msk.bf16.mxu1 %vm5110_vm0, %v8618_v33  ;;  %4622 = vrot.lane.b32.xlu1 %v4621_v49, %s5116_s21  ;;  %v1293_v32 = vsel %vm1253_vm4, %v1212_v39, %v8674_v37  ;;  %v1399_v49 = vrot.slane %v5981_v40, 2  ;;  %v8678_v37 = vrot.slane %v5999_v6, 2 }
 0x1a3   : > { %v4636_v17 = vpack.i.bf16 %v1210_v34, %v1211_v41  ;;  %v4631_v48 = vpack.i.bf16 %v1293_v32, %v1294_v20  ;;  %v1317_v34 = vrot.slane %v5999_v6, 1  ;;  %v8675_v41 = vld [vmem:[#allocation7_spill] sm:$0xff]  ;;  %v1542_v11 = vsel %vm1502_vm6, %v1461_v26, %v1462_v31 }
 0x1a4   : > { %v8676_v19 = vrot.slane %v8675_v41, 5  ;;  %v2960_v20 = vpack.c.bf16 %v1542_v11, %v1543_v9  ;;  %v1438_v32 = vsel %vm1419_vm7, %v1399_v49, %v8678_v37  ;;  %v1147_v26 = vrot.slane %v5926_v22, 6 }
 0x1a5   : > { %v6465_v18 = vpop.permute.xlu0 %4417  ;;  %4637 = vrot.lane.b32.xlu0 %v4636_v17, %s5116_s21  ;;  %v1316_v17 = vrot.slane %v5981_v40, 1  ;;  %v8682_v9 = vrot.slane %v5966_v4, 2 }
 0x1a6   : > { %v6476_v13 = vsel %vm1087_vm9, %v8541_v10, %v8676_v19  ;;  %v6478_v39 = vpop.permute.xlu1 %4432  ;;  %4632 = vrot.lane.b32.xlu1 %v4631_v48, %s5113_s18  ;;  %v8680_v10 = vrot.slane %v8675_v41, 3  ;;  %v8683_v19 = vrot.slane %v5669_v47, 5  ;;  %v8684_v41 = vrot.slane %v8679_v60, 5 }
 0x1a7   : > { %8677 = vst [vmem:[#allocation56_spill] sm:$0xff] %v6478_v39  ;;  %v1439_v11 = vsel %vm1419_vm7, %v8682_v9, %v1399_v49  ;;  %v1355_v37 = vsel %vm1336_vm3, %v1316_v17, %v1317_v34  ;;  %v1232_v9 = vrot.slane %v5966_v4, 7 }
 0x1a8   : > { %v1541_v39 = vsel %vm1502_vm6, %v1462_v31, %v8680_v10  ;;  %v1192_v31 = vsel %vm1170_vm5, %v1147_v26, %v1148_v50 }
 0x1a9   : > { %v6496_v8 = vpop.permute.xlu0 %4427  ;;  %4135 = vmatmul.mubr.msk.bf16.gmra.mrb[44].mxu1 %vm2610_vm8, %v2960_v20  ;;  %4642 = vrot.lane.b32.xlu0 %v6294_v14, %s5114_s19  ;;  %v6516_v20 = vsel %vm1087_vm9, %v8684_v41, %v8683_v19  ;;  %v4656_v14 = vpack.i.bf16 %v1438_v32, %v1439_v11  ;;  %v2961_v47 = vpack.c.bf16 %v1541_v39, %v1541_v39  ;;  %v1318_v41 = vrot.slane %v6026_v38, 1 }
 0x1aa   : > { %8681 = vst [vmem:[#allocation57_spill] sm:$0xff] %v6496_v8  ;;  %v6508_v10 = vpop.permute.xlu1 %4442  ;;  %v8685_v8 = vrot.slane %v5966_v4, 1  ;;  %4138 = vmatprep.mubr.msk.bf16.mxu1 %vm5110_vm0, %v8618_v33  ;;  %4647 = vrot.lane.b32.xlu1 %v4631_v48, %s5115_s20  ;;  %v8686_v11 = vrot.slane %v5909_v57, 6  ;;  %v8687_v48 = vrot.slane %v6057_v56, 1  ;;  %v1149_v32 = vrot.slane %v5966_v4, 6 }
 0x1ac   : > { %v1356_v49 = vsel %vm1336_vm3, %v8685_v8, %v1316_v17  ;;  %v1193_v8 = vsel %vm1170_vm5, %v8686_v11, %v1147_v26  ;;  %v1273_v17 = vsel %vm1253_vm4, %v1232_v9, %v1233_v55  ;;  %v1353_v39 = vsel %vm1336_vm3, %v1318_v41, %v8687_v48 }
 0x1ad   : > { %v6530_v19 = vpack.i.bf16 %v1355_v37, %v1356_v49  ;;  %v6538_v22 = vpop.permute.xlu0 %4437  ;;  %4657 = vrot.lane.b32.xlu0 %v4656_v14, %s5117_s22  ;;  %v1054_v37 = vrot.slane %v5730_v61, 5  ;;  %v1055_v49 = vrot.slane %v5748_v54, 5  ;;  %v4661_v26 = vpack.i.bf16 %v1192_v31, %v1193_v8 }
 0x1ae   : > { %v6548_v60 = vpop.permute.xlu1 %4447  ;;  %v4676_v11 = vpack.i.bf16 %v5981_v40, %v5966_v4  ;;  %v1402_v14 = vrot.slane %v6057_v56, 2  ;;  %v8689_v48 = vrot.slane %v5943_v1, 7  ;;  %v1354_v54 = vsel %vm1336_vm3, %v1317_v34, %v1318_v41 }
 0x1af   : > { %8688 = vst [vmem:[#allocation58_spill] sm:$0xff] %v6548_v60  ;;  %4652 = vrot.lane.b32.xlu1 %v6530_v19, %s5118_s23  ;;  %v8690_v31 = vrot.slane %v5981_v40, 6  ;;  %v1235_v4 = vrot.slane %v6026_v38, 7  ;;  %v6571_v51 = vpack.i.bf16 %v1353_v39, %v1354_v54  ;;  %v1234_v1 = vrot.slane %v5999_v6, 7 }
 0x1b0   : > { %v1274_v61 = vsel %vm1253_vm4, %v8689_v48, %v1232_v9  ;;  %v8692_v34 = vrot.slane %v5688_v36, 5  ;;  %v6587_v41 = vsel %vm1087_vm9, %v1054_v37, %v1055_v49  ;;  %v8558_v39 = vrot.slane %v6110_v7, 2 }
 0x1b1   : > { %v6566_v8 = vsel %vm1170_vm5, %v1149_v32, %v8690_v31  ;;  %v6569_v45 = vpack.i.bf16 %v1273_v17, %v1274_v61  ;;  %v6574_v58 = vpop.permute.xlu0 %4457  ;;  %4139 = vmatmul.mubr.msk.bf16.gmra.mrb[48].mxu1 %vm2610_vm8, %v2961_v47  ;;  %4667 = vrot.lane.b32.xlu0 %v6259_v16, %s5115_s20  ;;  %v1191_v17 = vsel %vm1170_vm5, %v1148_v50, %v1149_v32  ;;  %v8694_v16 = vrot.slane %v5999_v6, 2 }
 0x1b2   : > { %8691 = vst [vmem:[#allocation59_spill] sm:$0xff] %v6574_v58  ;;  %v6583_v9 = vsel %vm1087_vm9, %v8692_v34, %v1054_v37  ;;  %v6592_v48 = vpop.permute.xlu1 %4452  ;;  %v4696_v47 = vpack.i.bf16 %v6566_v8, %v1191_v17  ;;  %v6597_v36 = vsel %vm1419_vm7, %v1401_v62, %v1402_v14  ;;  %v1056_v37 = vrot.slane %v5798_v53, 5  ;;  %4158 = vmatprep.mubr.msk.bf16.mxu1 %vm5110_vm0, %v8618_v33 }
 0x1b3   : > { %8693 = vst [vmem:[#allocation60_spill] sm:$0xff] %v6592_v48  ;;  %v1437_v61 = vsel %vm1419_vm7, %v8694_v16, %v1401_v62  ;;  %4662 = vrot.lane.b32.xlu1 %v4661_v26, %s5116_s21  ;;  %v1271_v50 = vsel %vm1253_vm4, %v1234_v1, %v1235_v4  ;;  %v1057_v32 = vrot.slane %v5815_v42, 5  ;;  %v1403_v54 = vrot.slane %v6089_v2, 2 }
 0x1b4   : > { %v1321_v31 = vrot.slane %v6110_v7, 1  ;;  %v1272_v8 = vsel %vm1253_vm4, %v1233_v55, %v1234_v1  ;;  %v1320_v62 = vrot.slane %v6089_v2, 1  ;;  %v1152_v34 = vrot.slane %v6026_v38, 6 }
 0x1b5   : > { %v6615_v53 = vpop.permute.xlu0 %4467  ;;  %4677 = vrot.lane.b32.xlu0 %v4676_v11, %s5112_s16  ;;  %v6624_v42 = vsel %vm1419_vm7, %v1403_v54, %v8558_v39  ;;  %v4691_v55 = vpack.i.bf16 %v6597_v36, %v1437_v61  ;;  %v6631_v16 = vpack.i.bf16 %v1271_v50, %v1272_v8  ;;  %v6635_v11 = vsel %vm1087_vm9, %v1055_v49, %v1056_v37 }
 0x1b6   : > { %v6628_v1 = vpop.permute.xlu1 %4462  ;;  %v1151_v26 = vrot.slane %v5999_v6, 6  ;;  %v6642_v39 = vsel %vm1087_vm9, %v1056_v37, %v1057_v32  ;;  %v6646_v17 = vsel %vm1419_vm7, %v1402_v14, %v1403_v54  ;;  %v1351_v36 = vsel %vm1336_vm3, %v1320_v62, %v1321_v31 }
 0x1b7   : > { %8695 = vst [vmem:[#allocation61_spill] sm:$0xff] %v6628_v1  ;;  %4672 = vrot.lane.b32.xlu1 %v6569_v45, %s5113_s18  ;;  %v1236_v61 = vrot.slane %v6057_v56, 7  ;;  %v8696_v50 = vrot.slane %v6057_v56, 1  ;;  %v8697_v54 = vrot.slane %v6089_v2, 7  ;;  %v1322_v58 = vrot.slane %v6137_v59, 1 }
 0x1b8   : > { %v6664_v14 = vsel %vm1170_vm5, %v1151_v26, %v1152_v34  ;;  %v8698_v48 = vrot.slane %v5981_v40, 6  ;;  %v1058_v60 = vrot.slane %v5853_v0, 5  ;;  %v8699_v0 = vrot.slane %v6162_v25, 1 }
 0x1b9   : > { %v1352_v8 = vsel %vm1336_vm3, %v8696_v50, %v1320_v62  ;;  %v6658_v1 = vpop.permute.xlu0 %4477  ;;  %4687 = vrot.lane.b32.xlu0 %v6571_v51, %s5118_s23  ;;  %v1269_v49 = vsel %vm1253_vm4, %v1236_v61, %v8697_v54  ;;  %v1153_v62 = vrot.slane %v6057_v56, 6  ;;  %v4335_v54 = vunpack.i.h.bf16 %v6317_v15 }
 0x1ba   : > { %v6672_v50 = vpop.permute.xlu1 %4472  ;;  %v6674_v37 = vpack.i.bf16 %v1351_v36, %v1352_v8  ;;  %v6680_v33 = vsel %vm1170_vm5, %v8698_v48, %v1151_v26  ;;  %v1270_v36 = vsel %vm1253_vm4, %v1235_v4, %v1236_v61  ;;  %v4334_v4 = vunpack.i.l.bf16 %v6317_v15 }
 0x1bb   : > { %4682 = vrot.lane.b32.xlu1 %v6530_v19, %s5114_s19  ;;  %v6694_v26 = vpack.i.bf16 %v1269_v49, %v1270_v36  ;;  %v1349_v19 = vsel %vm1336_vm3, %v1322_v58, %v8699_v0  ;;  %v1350_v49 = vsel %vm1336_vm3, %v1321_v31, %v1322_v58  ;;  %v8700_v36 = vrot.slane %v6089_v2, 6 }
 0x1bc   : > { %v6718_v8 = vsel %vm1087_vm9, %v1057_v32, %v1058_v60  ;;  %v8703_v15 = vrot.slane %v6162_v25, 2  ;;  %v1238_v58 = vrot.slane %v6110_v7, 7  ;;  %v6728_v31 = vpack.i.bf16 %v1349_v19, %v1350_v49 }
 0x1bd   : > { %v6703_v61 = vpop.permute.xlu0 %4482  ;;  %4697 = vrot.lane.b32.xlu0 %v4696_v47, %s5116_s21  ;;  %v6712_v48 = vsel %vm1170_vm5, %v1153_v62, %v8700_v36  ;;  %8702 = vst [vmem:[#allocation63_spill] sm:$0xff] %v6718_v8  ;;  %v8705_v36 = vrot.slane %v5872_v63, 5  ;;  %v6738_v32 = vsel %vm1170_vm5, %v1152_v34, %v1153_v62  ;;  %v4339_v8 = vunpack.i.l.bf16 %v6311_v5  ;;  %v8709_v62 = vld [vmem:[#allocation15_spill] sm:$0xff] }
 0x1be   : > { %v6714_v0 = vpop.permute.xlu1 %4492  ;;  %v6724_v47 = vsel %vm1419_vm7, %v1405_v24, %v8703_v15  ;;  %v4340_v15 = vunpack.i.h.bf16 %v6311_v5  ;;  %v8707_v19 = vrot.slane %v6110_v7, 2  ;;  %v2615_v34 = vsel %vm2610_vm8, %v6476_v13, %v4334_v4 }
 0x1bf   : > { %8701 = vst [vmem:[#allocation62_spill] sm:$0xff] %v6714_v0  ;;  %8704 = vst [vmem:[#allocation64_spill] sm:$0xff] %v6724_v47  ;;  %4692 = vrot.lane.b32.xlu1 %v4691_v55, %s5117_s22  ;;  %v6734_v40 = vsel %vm1087_vm9, %v1058_v60, %v8705_v36  ;;  %v2616_v49 = vsel %vm2610_vm8, %v8709_v62, %v4335_v54  ;;  %v4364_v36 = vunpack.i.l.bf16 %v6345_v43  ;;  %v4365_v55 = vunpack.i.h.bf16 %v6345_v43 }
 0x1c0   : > { %8706 = vst [vmem:[#allocation65_spill] sm:$0xff] %v6734_v40  ;;  %v6749_v60 = vsel %vm1419_vm7, %v8707_v19, %v1405_v24  ;;  %v8711_v19 = vrot.slane %v6089_v2, 7  ;;  %v4345_v54 = vunpack.i.h.bf16 %v6323_v21  ;;  %v8712_v4 = vrot.slane %v6137_v59, 7 }
 0x1c1   : > { %8708 = vst [vmem:[#allocation66_spill] sm:$0xff] %v6749_v60  ;;  %v6756_v0 = vpop.permute.xlu0 %4487  ;;  %4707 = vrot.lane.b32.xlu0 %v6631_v16, %s5113_s18  ;;  %v1325_v43 = vrot.slane %v6211_v28, 1  ;;  %v2658_v40 = vsel %vm2652_vm10, %v2616_v49, %v4340_v15  ;;  %v8571_v60 = vrot.slane %v5909_v57, 5  ;;  %v4395_v49 = vunpack.i.h.bf16 %v6398_v52 }
 0x1c2   : > { %8710 = vst [vmem:[#allocation15_spill] sm:$0xff] %v6756_v0  ;;  %v6763_v24 = vpop.permute.xlu1 %4502  ;;  %v1268_v13 = vsel %vm1253_vm4, %v8711_v19, %v1238_v58  ;;  %v1267_v62 = vsel %vm1253_vm4, %v1238_v58, %v8712_v4  ;;  %v2657_v0 = vsel %vm2652_vm10, %v2615_v34, %v4339_v8  ;;  %v1060_v19 = vrot.slane %v5896_v30, 5 }
 0x1c3   : > { %4702 = vrot.lane.b32.xlu1 %v6569_v45, %s5115_s20  ;;  %v2699_v47 = vsel %vm2694_vm11, %v2657_v0, %v4364_v36  ;;  %v1407_v58 = vrot.slane %v6178_v29, 2  ;;  %v1324_v4 = vrot.slane %v6178_v29, 1  ;;  %v4344_v8 = vunpack.i.l.bf16 %v6323_v21 }
 0x1c4   : > { %v2700_v15 = vsel %vm2694_vm11, %v2658_v40, %v4365_v55  ;;  %v6794_v34 = vpack.i.bf16 %v1267_v62, %v1268_v13  ;;  %v8714_v36 = vrot.slane %v6211_v28, 2  ;;  %v1155_v55 = vrot.slane %v6110_v7, 6 }
 0x1c5   : > { %v6783_v45 = vpop.permute.xlu0 %4497  ;;  %4717 = vrot.lane.b32.xlu0 %v6571_v51, %s5114_s19  ;;  %v8713_v51 = vpack.i.bf16 %v6026_v38, %v5999_v6  ;;  %v1347_v40 = vsel %vm1336_vm3, %v1324_v4, %v1325_v43  ;;  %v2741_v13 = vsel %vm2736_vm12, %v2699_v47, %v4344_v8  ;;  %v4394_v62 = vunpack.i.l.bf16 %v6398_v52 }
 0x1c6   : > { %v6792_v30 = vpop.permute.xlu1 %4512  ;;  %v6807_v21 = vsel %vm1419_vm7, %v1407_v58, %v8714_v36  ;;  %v8715_v0 = vrot.slane %v5872_v63, 5  ;;  %v6824_v36 = vsel %vm1087_vm9, %v1060_v19, %v8571_v60  ;;  %v8716_v47 = vpack.i.bf16 %v6624_v42, %v6646_v17 }
 0x1c7   : > { %4712 = vrot.lane.b32.xlu1 %v8713_v51, %s5112_s16  ;;  %v8717_v52 = vrot.slane %v6162_v25, 2  ;;  %v8718_v8 = vrot.slane %v6162_v25, 1  ;;  %v8574_v42 = vrot.slane %v6178_v29, 7  ;;  %v2742_v17 = vsel %vm2736_vm12, %v2700_v15, %v4345_v54 }
 0x1c8   : > { %v6818_v51 = vsel %vm1087_vm9, %v8715_v0, %v1060_v19  ;;  %v8719_v19 = vrot.slane %v6137_v59, 6  ;;  %v6857_v38 = vsel %vm2778_vm13, %v2742_v17, %v4395_v49  ;;  %v1240_v54 = vrot.slane %v6162_v25, 7 }
 0x1c9   : > { %v6826_v5 = vpop.permute.xlu0 %4507  ;;  %4727 = vrot.lane.b32.xlu0 %v8716_v47, %s5117_s22  ;;  %v6836_v63 = vsel %vm1419_vm7, %v8717_v52, %v1407_v58  ;;  %v1348_v0 = vsel %vm1336_vm3, %v8718_v8, %v1324_v4  ;;  %v8720_v4 = vrot.slane %v6089_v2, 6  ;;  %v1326_v15 = vrot.slane %v6240_v3, 1 }
 0x1ca   : > { %v6846_v60 = vsel %vm1170_vm5, %v1155_v55, %v8719_v19  ;;  %v6850_v47 = vpop.permute.xlu1 %4517  ;;  %v6854_v52 = vpack.i.bf16 %v1347_v40, %v1348_v0  ;;  %v6870_v19 = vsel %vm2778_vm13, %v2741_v13, %v4394_v62  ;;  %v4474_v17 = vunpack.i.l.bf16 %v6672_v50 }
 0x1cb   : > { %4722 = vrot.lane.b32.xlu1 %v6674_v37, %s5118_s23  ;;  %v6865_v8 = vsel %vm1170_vm5, %v8720_v4, %v1155_v55  ;;  %v1265_v55 = vsel %vm1253_vm4, %v1240_v54, %v8574_v42  ;;  %v4475_v40 = vunpack.i.h.bf16 %v6672_v50  ;;  %v8721_v6 = vpack.i.bf16 %v6664_v14, %v6680_v33 }
 0x1cc   : > { %v8722_v42 = vrot.slane %v6137_v59, 7  ;;  %v1346_v4 = vsel %vm1336_vm3, %v1325_v43, %v1326_v15  ;;  %v1157_v50 = vrot.slane %v6162_v25, 6  ;;  %v4440_v13 = vunpack.i.h.bf16 %v6538_v22 }
 0x1cd   : > { %v6877_v58 = vpop.permute.xlu0 %4527  ;;  %4737 = vrot.lane.b32.xlu0 %v6631_v16, %s5115_s20  ;;  %v4439_v16 = vunpack.i.l.bf16 %v6538_v22  ;;  %v8724_v43 = vpack.i.bf16 %v6089_v2, %v6057_v56  ;;  %v8726_v22 = vrot.slane %v6178_v29, 6  ;;  %v4480_v33 = vunpack.i.h.bf16 %v6658_v1 }
 0x1ce   : > { %v6890_v49 = vpop.permute.xlu1 %4522  ;;  %v1266_v62 = vsel %vm1253_vm4, %v8722_v42, %v1240_v54  ;;  %v8725_v42 = vrot.slane %v6266_v23, 1  ;;  %v4485_v56 = vunpack.i.h.bf16 %v6703_v61 }
 0x1cf   : > { %4732 = vrot.lane.b32.xlu1 %v8721_v6, %s5116_s21  ;;  %v6908_v57 = vpack.i.bf16 %v1265_v55, %v1266_v62  ;;  %v2623_v6 = vsel %vm2610_vm8, %v6583_v9, %v4474_v17  ;;  %v6925_v55 = vsel %vm1170_vm5, %v1157_v50, %v8726_v22  ;;  %v2624_v9 = vsel %vm2610_vm8, %v6587_v41, %v4475_v40 }
 0x1d0   : > { %v1345_v54 = vsel %vm1336_vm3, %v1326_v15, %v8725_v42  ;;  %v4505_v17 = vunpack.i.h.bf16 %v6763_v24  ;;  %v4504_v62 = vunpack.i.l.bf16 %v6763_v24  ;;  %v4479_v15 = vunpack.i.l.bf16 %v6658_v1 }
 0x1d1   : > { %8723 = vst [vmem:[#allocation67_spill] sm:$0xff] %v6908_v57  ;;  %v4538_v14 = vpop.permute.xlu0 %4537  ;;  %4747 = vrot.lane.b32.xlu0 %v8724_v43, %s5112_s16  ;;  %v4509_v43 = vunpack.i.l.bf16 %v6826_v5  ;;  %v4510_v42 = vunpack.i.h.bf16 %v6826_v5  ;;  %v8727_v22 = vrot.slane %v6137_v59, 6  ;;  %v6945_v24 = vsel %vm2610_vm8, %v6516_v20, %v4439_v16 }
 0x1d2   : > { %v4533_v0 = vpop.permute.xlu1 %4532  ;;  %v6949_v40 = vsel %vm2610_vm8, %v6074_v12, %v4440_v13  ;;  %v6951_v1 = vpack.i.bf16 %v1345_v54, %v1346_v4  ;;  %v8580_v16 = vrot.slane %v6355_v35, 7 }
 0x1d3   : > { %4742 = vrot.lane.b32.xlu1 %v6694_v26, %s5113_s18  ;;  %v6941_v41 = vsel %vm1170_vm5, %v8727_v22, %v1157_v50  ;;  %v2665_v50 = vsel %vm2652_vm10, %v2623_v6, %v4479_v15  ;;  %v2666_v22 = vsel %vm2652_vm10, %v2624_v9, %v4480_v33  ;;  %v2625_v13 = vsel %vm2610_vm8, %v6635_v11, %v4509_v43 }
 0x1d4   : > { %v2708_v12 = vsel %vm2694_vm11, %v2666_v22, %v4505_v17  ;;  %v2707_v20 = vsel %vm2694_vm11, %v2665_v50, %v4504_v62  ;;  %v2626_v54 = vsel %vm2610_vm8, %v6642_v39, %v4510_v42  ;;  %v4540_v6 = vunpack.i.h.bf16 %v4538_v14 }
 0x1d5   : > { %v4548_v57 = vpop.permute.xlu0 %4547  ;;  %4757 = vrot.lane.b32.xlu0 %v6728_v31, %s5118_s23  ;;  %v4539_v15 = vunpack.i.l.bf16 %v4538_v14  ;;  %v4535_v33 = vunpack.i.h.bf16 %v4533_v0  ;;  %v4515_v9 = vunpack.i.h.bf16 %v6792_v30  ;;  %v4514_v17 = vunpack.i.l.bf16 %v6792_v30  ;;  %v8730_v30 = vld [vmem:[#allocation54_spill] sm:$0xff] }
 0x1d6   : > { %v4543_v4 = vpop.permute.xlu1 %4542  ;;  %v4534_v62 = vunpack.i.l.bf16 %v4533_v0  ;;  %v8728_v50 = vrot.slane %v6369_v27, 7  ;;  %v4484_v39 = vunpack.i.l.bf16 %v6703_v61 }
 0x1d7   : > { %4752 = vrot.lane.b32.xlu1 %v6674_v37, %s5114_s19  ;;  %v4545_v14 = vunpack.i.h.bf16 %v4543_v4  ;;  %v4544_v43 = vunpack.i.l.bf16 %v4543_v4  ;;  %v8729_v37 = vpack.i.bf16 %v6712_v48, %v6738_v32  ;;  %v2667_v22 = vsel %vm2652_vm10, %v2625_v13, %v4514_v17  ;;  %v8731_v32 = vld [vmem:[#allocation64_spill] sm:$0xff] }
 0x1d8   : > { %v6978_v11 = vsel %vm1253_vm4, %v8580_v16, %v8728_v50  ;;  %v2668_v5 = vsel %vm2652_vm10, %v2626_v54, %v4515_v9  ;;  %v2750_v50 = vsel %vm2736_vm12, %v2708_v12, %v4485_v56  ;;  %v2709_v4 = vsel %vm2694_vm11, %v2667_v22, %v4539_v15 }
 0x1d9   : > { %v4553_v42 = vpop.permute.xlu0 %4552  ;;  %4767 = vrot.lane.b32.xlu0 %v8729_v37, %s5116_s21  ;;  %v2710_v61 = vsel %vm2694_vm11, %v2668_v5, %v4540_v6  ;;  %v2749_v2 = vsel %vm2736_vm12, %v2707_v20, %v4484_v39  ;;  %v2792_v48 = vsel %vm2778_vm13, %v2750_v50, %v4535_v33  ;;  %v8732_v37 = vld [vmem:[#allocation66_spill] sm:$0xff]  ;;  %v4550_v54 = vunpack.i.h.bf16 %v4548_v57  ;;  %v8736_v6 = vld [vmem:[#allocation63_spill] sm:$0xff]  ;;  %v8737_v33 = vld [vmem:[#allocation65_spill] sm:$0xff] }
 0x1da   : > { %v6990_v16 = vpop.permute.xlu1 %4562  ;;  %v8733_v0 = vpack.i.bf16 %v8731_v32, %v8732_v37  ;;  %v2791_v13 = vsel %vm2778_vm13, %v2749_v2, %v4534_v62  ;;  %v8734_v56 = vunpack.i.l.bf16 %v6465_v18  ;;  %v8735_v5 = vunpack.i.h.bf16 %v6465_v18 }
 0x1db   : > { %v2627_v15 = vsel %vm2610_vm8, %v8736_v6, %v4544_v43  ;;  %v2628_v9 = vsel %vm2610_vm8, %v8737_v33, %v4545_v14  ;;  %v8738_v2 = vunpack.i.l.bf16 %v6444_v46  ;;  %v8739_v18 = vunpack.i.h.bf16 %v6444_v46 }
 0x1dc   : > { %4762 = vrot.lane.b32.xlu1 %v8733_v0, %s5117_s22  ;;  %v2825_v12 = vsel %vm2820_vm14, %v6870_v19, %v8734_v56  ;;  %v2826_v20 = vsel %vm2820_vm14, %v6857_v38, %v8735_v5  ;;  %v4549_v38 = vunpack.i.l.bf16 %v4548_v57  ;;  %v4555_v22 = vunpack.i.h.bf16 %v4553_v42 }
 0x1dd   : > { %v4558_v17 = vpop.permute.xlu0 %4557  ;;  %4777 = vrot.lane.b32.xlu0 %v6794_v34, %s5113_s18  ;;  %v7018_v62 = vsel %vm2862_vm15, %v2825_v12, %v8738_v2  ;;  %v7023_v19 = vsel %vm2862_vm15, %v2826_v20, %v8739_v18  ;;  %v4554_v50 = vunpack.i.l.bf16 %v4553_v42  ;;  %v2670_v12 = vsel %vm2652_vm10, %v2628_v9, %v4550_v54 }
 0x1de   : > { %v4560_v39 = vunpack.i.h.bf16 %v4558_v17  ;;  %v4559_v43 = vunpack.i.l.bf16 %v4558_v17  ;;  %v4573_v0 = vpop.permute.xlu1 %4572  ;;  %v2669_v57 = vsel %vm2652_vm10, %v2627_v15, %v4549_v38  ;;  %v4520_v5 = vunpack.i.h.bf16 %v6850_v47 }
 0x1df   : > { %v4575_v32 = vunpack.i.h.bf16 %v4573_v0  ;;  %v4574_v37 = vunpack.i.l.bf16 %v4573_v0  ;;  %v4519_v20 = vunpack.i.l.bf16 %v6850_v47  ;;  %v4469_v15 = vunpack.i.l.bf16 %v6615_v53 }
 0x1e0   : > { %4772 = vrot.lane.b32.xlu1 %v6694_v26, %s5115_s20  ;;  %v7030_v56 = vsel %vm2820_vm14, %v2792_v48, %v4560_v39  ;;  %v7033_v46 = vsel %vm2820_vm14, %v2791_v13, %v4559_v43  ;;  %v2752_v9 = vsel %vm2736_vm12, %v2710_v61, %v4520_v5  ;;  %v8740_v2 = vpack.i.bf16 %v6137_v59, %v6110_v7  ;;  %v8818_v59 = vld [vmem:[#allocation18_spill] sm:$0xff] }
 0x1e1   : > { %v2712_v42 = vsel %vm2694_vm11, %v2670_v12, %v4575_v32  ;;  %v2711_v26 = vsel %vm2694_vm11, %v2669_v57, %v4574_v37  ;;  %v4568_v6 = vpop.permute.xlu0 %4567  ;;  %4787 = vrot.lane.b32.xlu0 %v6728_v31, %s5114_s19  ;;  %v2751_v47 = vsel %vm2736_vm12, %v2709_v4, %v4519_v20  ;;  %v1409_v31 = vrot.slane %v6240_v3, 2  ;;  %v8742_v4 = vld [vmem:[#allocation58_spill] sm:$0xff] }
 0x1e2   : > { %v4570_v48 = vunpack.i.h.bf16 %v4568_v6  ;;  %v4569_v33 = vunpack.i.l.bf16 %v4568_v6  ;;  %v4583_v13 = vpop.permute.xlu1 %4582  ;;  %v7044_v17 = vsel %vm2736_vm12, %v2711_v26, %v4554_v50  ;;  %v7047_v54 = vsel %vm2736_vm12, %v2712_v42, %v4555_v22 }
 0x1e3   : > { %v1410_v43 = vrot.slane %v6266_v23, 2  ;;  %v1242_v0 = vrot.slane %v6211_v28, 7  ;;  %v4450_v22 = vunpack.i.h.bf16 %v8742_v4  ;;  %v8743_v61 = vunpack.i.l.bf16 %v6508_v10 }
 0x1e4   : > { %4782 = vrot.lane.b32.xlu1 %v8740_v2, %s5112_s16  ;;  %v2794_v18 = vsel %vm2778_vm13, %v2752_v9, %v4570_v48  ;;  %v2793_v38 = vsel %vm2778_vm13, %v2751_v47, %v4569_v33  ;;  %v7059_v39 = vpop.f32.mrb[84].mxu0  ;;  %v8744_v32 = vunpack.i.h.bf16 %v6508_v10  ;;  %v8745_v12 = vpack.i.bf16 %v6807_v21, %v6836_v63 }
 0x1e5   : > { %8741 = vst [vmem:[#allocation54_spill] sm:$0xff] %v7059_v39  ;;  %v2663_v50 = vsel %vm2652_vm10, %v6945_v24, %v8743_v61  ;;  %v4578_v57 = vpop.permute.xlu0 %4577  ;;  %v4060_v5 = vpop.f32.mrb[85].mxu0  ;;  %v8583_v20 = vrot.slane %v6240_v3, 7  ;;  %v8746_v42 = vunpack.i.h.bf16 %v6615_v53  ;;  %v4500_v24 = vunpack.i.h.bf16 %v6783_v45 }
 0x1e6   : > { %v2664_v37 = vsel %vm2652_vm10, %v6949_v40, %v8744_v32  ;;  %4797 = vrot.lane.b32.xlu0 %v8745_v12, %s5117_s22  ;;  %v4580_v6 = vunpack.i.h.bf16 %v4578_v57  ;;  %v4579_v10 = vunpack.i.l.bf16 %v4578_v57  ;;  %v7081_v48 = vpop.permute.xlu1 %4587  ;;  %v7083_v40 = vpop.f32.mrb[86].mxu0  ;;  %v2705_v33 = vsel %vm2694_vm11, %v2663_v50, %v4469_v15 }
 0x1e7   : > { %v2706_v26 = vsel %vm2694_vm11, %v2664_v37, %v8746_v42  ;;  %8747 = vst [vmem:[#allocation64_spill] sm:$0xff] %v7083_v40  ;;  %v4499_v21 = vunpack.i.l.bf16 %v6783_v45  ;;  %v4585_v63 = vunpack.i.h.bf16 %v4583_v13  ;;  %v4584_v47 = vunpack.i.l.bf16 %v4583_v13  ;;  %v4061_v53 = vpop.f32.mrb[87].mxu0 }
 0x1e8   : > { %4792 = vrot.lane.b32.xlu1 %v6854_v52, %s5118_s23  ;;  %v4449_v9 = vunpack.i.l.bf16 %v8742_v4  ;;  %v4524_v2 = vunpack.i.l.bf16 %v6890_v49  ;;  %v2629_v61 = vsel %vm2610_vm8, %v6818_v51, %v4579_v10  ;;  %v2630_v32 = vsel %vm2610_vm8, %v6824_v36, %v4580_v6 }
 0x1e9   : > { %v2748_v15 = vsel %vm2736_vm12, %v2706_v26, %v4450_v22  ;;  %v4525_v45 = vunpack.i.h.bf16 %v6890_v49  ;;  %v7097_v50 = vpop.permute.xlu0 %4597  ;;  %v2671_v13 = vsel %vm2652_vm10, %v2629_v61, %v4584_v47  ;;  %v2672_v4 = vsel %vm2652_vm10, %v2630_v32, %v4585_v63 }
 0x1ea   : > { %4807 = vrot.lane.b32.xlu0 %v6794_v34, %s5115_s20  ;;  %v2747_v37 = vsel %vm2736_vm12, %v2705_v33, %v4449_v9  ;;  %v2790_v51 = vsel %vm2778_vm13, %v2748_v15, %v4500_v24  ;;  %v4593_v57 = vpop.permute.xlu1 %4592  ;;  %v7109_v36 = vsel %vm1419_vm7, %v1409_v31, %v1410_v43  ;;  %v8748_v49 = vrot.slane %v6211_v28, 2  ;;  %v8753_v15 = vld [vmem:[#allocation67_spill] sm:$0xff] }
 0x1eb   : > { %v2789_v22 = vsel %vm2778_vm13, %v2747_v37, %v4499_v21  ;;  %v4530_v12 = vunpack.i.h.bf16 %v6877_v58  ;;  %v8749_v5 = vpack.i.bf16 %v6846_v60, %v6865_v8  ;;  %v4595_v42 = vunpack.i.h.bf16 %v4593_v57 }
 0x1ec   : > { %v7115_v34 = vsel %vm1419_vm7, %v8748_v49, %v1409_v31  ;;  %v4594_v26 = vunpack.i.l.bf16 %v4593_v57  ;;  %v4529_v24 = vunpack.i.l.bf16 %v6877_v58  ;;  %v4565_v6 = vunpack.i.h.bf16 %v6990_v16  ;;  %v7126_v33 = vpop.f32.mrb[88].mxu0 }
 0x1ed   : > { %4802 = vrot.lane.b32.xlu1 %v8749_v5, %s5116_s21  ;;  %v4564_v10 = vunpack.i.l.bf16 %v6990_v16  ;;  %8750 = vst [vmem:[#allocation66_spill] sm:$0xff] %v7126_v33  ;;  %v2831_v31 = vsel %vm2820_vm14, %v2789_v22, %v4524_v2  ;;  %v4590_v21 = vunpack.i.h.bf16 %v7081_v48  ;;  %v2836_v63 = vsel %vm2820_vm14, %v2794_v18, %v4595_v42  ;;  %v4608_v60 = vpop.permute.xlu0 %4607  ;;  %v4064_v58 = vpop.f32.mrb[89].mxu0 }
 0x1ee   : > { %v2835_v47 = vsel %vm2820_vm14, %v2793_v38, %v4594_v26  ;;  %v8751_v8 = vpack.i.bf16 %v6178_v29, %v6162_v25  ;;  %v2832_v53 = vsel %vm2820_vm14, %v2790_v51, %v4525_v45  ;;  %v4610_v16 = vunpack.i.h.bf16 %v4608_v60  ;;  %v4603_v61 = vpop.permute.xlu1 %4602  ;;  %v7137_v32 = vpop.f32.mrb[90].mxu0 }
 0x1ef   : > { %v4609_v9 = vunpack.i.l.bf16 %v4608_v60  ;;  %8752 = vst [vmem:[#allocation63_spill] sm:$0xff] %v7137_v32  ;;  %v7140_v2 = vsel %vm2862_vm15, %v2831_v31, %v4529_v24  ;;  %v7143_v18 = vsel %vm2862_vm15, %v2832_v53, %v4530_v12  ;;  %v4589_v38 = vunpack.i.l.bf16 %v7081_v48  ;;  %v4065_v49 = vpop.f32.mrb[91].mxu0 }
 0x1f0   : > { %4817 = vrot.lane.b32.xlu0 %v8751_v8, %s5112_s16  ;;  %v4605_v37 = vunpack.i.h.bf16 %v4603_v61  ;;  %v4604_v57 = vunpack.i.l.bf16 %v4603_v61  ;;  %v4599_v51 = vunpack.i.l.bf16 %v7097_v50  ;;  %v2714_v22 = vsel %vm2694_vm11, %v2672_v4, %v4610_v16  ;;  %v8779_v16 = vld [vmem:[#allocation44_spill] sm:$0xff] }
 0x1f1   : > { %4812 = vrot.lane.b32.xlu1 %v8753_v15, %s5113_s18  ;;  %v2713_v5 = vsel %vm2694_vm11, %v2671_v13, %v4609_v9  ;;  %v7155_v12 = vsel %vm2862_vm15, %v7033_v46, %v4564_v10  ;;  %v4613_v26 = vpop.permute.xlu0 %4612  ;;  %v7167_v4 = vsel %vm2736_vm12, %v2714_v22, %v4590_v21  ;;  %v4600_v13 = vunpack.i.h.bf16 %v7097_v50 }
 0x1f2   : > { %8754 = vst [vmem:[#allocation65_spill] sm:$0xff] %v7155_v12  ;;  %v2796_v48 = vsel %vm2778_vm13, %v7047_v54, %v4605_v37  ;;  %v2795_v42 = vsel %vm2778_vm13, %v7044_v17, %v4604_v57  ;;  %v7164_v24 = vsel %vm2736_vm12, %v2713_v5, %v4589_v38  ;;  %v4615_v46 = vunpack.i.h.bf16 %v4613_v26  ;;  %v4618_v31 = vpop.permute.xlu1 %4617  ;;  %v8760_v38 = vld [vmem:[#allocation11_spill] sm:$0xff]  ;;  %v8761_v57 = vld [vmem:[#allocation12_spill] sm:$0xff] }
 0x1f3   : > { %v4614_v10 = vunpack.i.l.bf16 %v4613_v26  ;;  %v1263_v17 = vsel %vm1253_vm4, %v1242_v0, %v8583_v20  ;;  %v4620_v54 = vunpack.i.h.bf16 %v4618_v31  ;;  %v4619_v60 = vunpack.i.l.bf16 %v4618_v31  ;;  %v8781_v26 = vld [vmem:[#allocation36_spill] sm:$0xff]  ;;  %v8795_v20 = vld [vmem:[#allocation38_spill] sm:$0xff] }
 0x1f4   : > { %4827 = vrot.lane.b32.xlu0 %v6951_v1, %s5118_s23  ;;  %v7180_v21 = vsel %vm2862_vm15, %v7030_v56, %v4565_v6  ;;  %v7183_v50 = vsel %vm2862_vm15, %v2835_v47, %v4599_v51  ;;  %v2838_v8 = vsel %vm2820_vm14, %v2796_v48, %v4615_v46  ;;  %v7187_v53 = vpop.f32.mrb[92].mxu0  ;;  %v8758_v56 = vpack.i.bf16 %v6925_v55, %v6941_v41  ;;  %v8766_v48 = vld [vmem:[#allocation5_spill] sm:$0xff] }
 0x1f5   : > { %4822 = vrot.lane.b32.xlu1 %v6854_v52, %s5114_s19  ;;  %8755 = vst [vmem:[#allocation58_spill] sm:$0xff] %v7183_v50  ;;  %v2837_v58 = vsel %vm2820_vm14, %v2795_v42, %v4614_v10  ;;  %8756 = vst [vmem:[#allocation67_spill] sm:$0xff] %v7187_v53  ;;  %v7192_v52 = vsel %vm2862_vm15, %v2836_v63, %v4600_v13  ;;  %v4831_v6 = vpack.i.bf16 %v7109_v36, %v7115_v34  ;;  %v4068_v47 = vpop.f32.mrb[93].mxu0  ;;  %v8765_v34 = vld [vmem:[#allocation13_spill] sm:$0xff]  ;;  %v8768_v10 = vld [vmem:[#allocation6_spill] sm:$0xff] }
 0x1f6   : > { %8757 = vst [vmem:[#allocation68_spill] sm:$0xff] %v7192_v52  ;;  %v7203_v61 = vsel %vm2862_vm15, %v2837_v58, %v4619_v60  ;;  %v1048_v37 = vrot.slane %v8760_v38, 5  ;;  %v1049_v63 = vrot.slane %v8761_v57, 5  ;;  %v7207_v49 = vpop.f32.mrb[94].mxu0  ;;  %v8763_v55 = vrot.slane %v6178_v29, 7  ;;  %v8767_v13 = vld [vmem:[#allocation37_spill] sm:$0xff] }
 0x1f7   : > { %8759 = vst [vmem:[#allocation69_spill] sm:$0xff] %v7203_v61  ;;  %8762 = vst [vmem:[#allocation11_spill] sm:$0xff] %v7207_v49  ;;  %v7216_v36 = vsel %vm2862_vm15, %v2838_v8, %v4620_v54  ;;  %v1050_v51 = vrot.slane %v8765_v34, 5  ;;  %v4069_v22 = vpop.f32.mrb[95].mxu0  ;;  %v8581_v42 = vrot.slane %v8766_v48, 5  ;;  %v8582_v46 = vrot.slane %v8767_v13, 2 }
 0x1f8   : > { %4837 = vrot.lane.b32.xlu0 %v8758_v56, %s5116_s21  ;;  %v1264_v41 = vsel %vm1253_vm4, %v8763_v55, %v1242_v0  ;;  %8764 = vst [vmem:[#allocation12_spill] sm:$0xff] %v7216_v36  ;;  %v8769_v0 = vrot.slane %v8768_v10, 5  ;;  %v8770_v54 = vld [vmem:[#allocation8_spill] sm:$0xff]  ;;  %v1123_v8 = vsel %vm1087_vm9, %v1048_v37, %v1049_v63  ;;  %v8772_v58 = vld [vmem:[#allocation35_spill] sm:$0xff]  ;;  %v8774_v55 = vld [vmem:[#allocation14_spill] sm:$0xff]  ;;  %v4369_v45 = vunpack.i.l.bf16 %v8779_v16 }
 0x1f9   : > { %4832 = vrot.lane.b32.xlu1 %v4831_v6, %s5117_s22  ;;  %v4846_v5 = vpack.i.bf16 %v1263_v17, %v1264_v41  ;;  %v8771_v60 = vrot.slane %v8770_v54, 5  ;;  %v1411_v56 = vrot.slane %v8772_v58, 2  ;;  %v8584_v6 = vrot.slane %v8767_v13, 1  ;;  %v8773_v47 = vld [vmem:[#allocation31_spill] sm:$0xff]  ;;  %v8776_v22 = vld [vmem:[#allocation33_spill] sm:$0xff] }
 0x1fa   : > { %v7231_v31 = vsel %vm1087_vm9, %v8581_v42, %v8769_v0  ;;  %v7244_v57 = vsel %vm1087_vm9, %v1049_v63, %v1050_v51  ;;  %v8775_v41 = vrot.slane %v8774_v55, 5  ;;  %v8782_v38 = vld [vmem:[#allocation39_spill] sm:$0xff]  ;;  %v1330_v40 = vrot.slane %v8795_v20, 1 }
 0x1fb   : > { %v1124_v17 = vsel %vm1087_vm9, %v8771_v60, %v1048_v37  ;;  %v1426_v63 = vsel %vm1419_vm7, %v1411_v56, %v8582_v46  ;;  %v1328_v60 = vrot.slane %v8772_v58, 1  ;;  %v1427_v55 = vsel %vm1419_vm7, %v1410_v43, %v1411_v56  ;;  %v8785_v37 = vld [vmem:[#allocation42_spill] sm:$0xff] }
 0x1fc   : > { %4847 = vrot.lane.b32.xlu0 %v4846_v5, %s5113_s18  ;;  %v7250_v34 = vsel %vm1087_vm9, %v1050_v51, %v8775_v41  ;;  %v7256_v54 = vpop.f32.mrb[96].mxu0  ;;  %v8778_v51 = vld [vmem:[#allocation34_spill] sm:$0xff]  ;;  %v4866_v46 = vpack.i.bf16 %v1426_v63, %v1427_v55  ;;  %v4370_v43 = vunpack.i.h.bf16 %v8779_v16  ;;  %v8783_v56 = vrot.slane %v6266_v23, 1  ;;  %v8784_v41 = vld [vmem:[#allocation40_spill] sm:$0xff]  ;;  %v8786_v16 = vld [vmem:[#allocation49_spill] sm:$0xff] }
 0x1fd   : > { %4842 = vrot.lane.b32.xlu1 %v8753_v15, %s5115_s20  ;;  %8777 = vst [vmem:[#allocation13_spill] sm:$0xff] %v7256_v54  ;;  %v4851_v15 = vpack.i.bf16 %v6240_v3, %v6211_v28  ;;  %v4072_v9 = vpop.f32.mrb[97].mxu0  ;;  %v1343_v0 = vsel %vm1336_vm3, %v1328_v60, %v8584_v6  ;;  %v2617_v63 = vsel %vm2610_vm8, %v1124_v17, %v4369_v45  ;;  %v4399_v55 = vunpack.i.l.bf16 %v8786_v16 }
 0x1fe   : > { %v7271_v14 = vpop.f32.mrb[98].mxu0  ;;  %v1344_v6 = vsel %vm1336_vm3, %v8783_v56, %v1328_v60  ;;  %v2618_v45 = vsel %vm2610_vm8, %v1123_v8, %v4370_v43  ;;  %v8790_v17 = vrot.slane %v6178_v29, 6  ;;  %v8792_v56 = vld [vmem:[#allocation45_spill] sm:$0xff]  ;;  %v4400_v53 = vunpack.i.h.bf16 %v8786_v16 }
 0x1ff   : > { %8780 = vst [vmem:[#allocation5_spill] sm:$0xff] %v7271_v14  ;;  %v4073_v42 = vpop.f32.mrb[99].mxu0  ;;  %v8788_v14 = vld [vmem:[#allocation43_spill] sm:$0xff]  ;;  %v4380_v49 = vunpack.i.h.bf16 %v8792_v56  ;;  %v8808_v39 = vrot.slane %v6240_v3, 6  ;;  %v8809_v29 = vrot.slane %v8767_v13, 2 }
 0x200   : > { %4857 = vrot.lane.b32.xlu0 %v6951_v1, %s5114_s19  ;;  %v1159_v1 = vrot.slane %v6211_v28, 6  ;;  %v7297_v42 = vpack.i.bf16 %v1343_v0, %v1344_v6  ;;  %v4375_v9 = vunpack.i.h.bf16 %v8788_v14  ;;  %v4374_v54 = vunpack.i.l.bf16 %v8788_v14 }
 0x201   : > { %4852 = vrot.lane.b32.xlu1 %v4851_v15, %s5112_s16  ;;  %v8787_v15 = vrot.slane %v6240_v3, 6  ;;  %v1244_v0 = vrot.slane %v6266_v23, 7 }
 0x202   : > { %v1181_v6 = vsel %vm1170_vm5, %v8790_v17, %v1159_v1  ;;  %v2659_v14 = vsel %vm2652_vm10, %v2617_v63, %v4374_v54  ;;  %v8796_v54 = vld [vmem:[#allocation46_spill] sm:$0xff] }
 0x203   : > { %v1180_v60 = vsel %vm1170_vm5, %v1159_v1, %v8787_v15  ;;  %v8791_v15 = vld [vmem:[#allocation41_spill] sm:$0xff]  ;;  %v2701_v32 = vsel %vm2694_vm11, %v2659_v14, %v4399_v55  ;;  %v8794_v1 = vrot.slane %v8772_v58, 7  ;;  %v4886_v55 = vpack.i.bf16 %v8772_v58, %v6266_v23 }
 0x204   : > { %4867 = vrot.lane.b32.xlu0 %v4866_v46, %s5117_s22  ;;  %v7312_v46 = vpop.f32.mrb[100].mxu0  ;;  %v4871_v8 = vpack.i.bf16 %v1180_v60, %v1181_v6  ;;  %v8798_v14 = vrot.slane %v6240_v3, 7  ;;  %v8800_v6 = vld [vmem:[#allocation51_spill] sm:$0xff]  ;;  %v8590_v3 = vrot.slane %v6369_v27, 5 }
 0x205   : > { %4862 = vrot.lane.b32.xlu1 %v7297_v42, %s5118_s23  ;;  %8789 = vst [vmem:[#allocation6_spill] sm:$0xff] %v7312_v46  ;;  %v4076_v43 = vpop.f32.mrb[101].mxu0  ;;  %v4379_v46 = vunpack.i.l.bf16 %v8792_v56  ;;  %v1261_v17 = vsel %vm1253_vm4, %v1244_v0, %v8794_v1  ;;  %v8797_v56 = vld [vmem:[#allocation48_spill] sm:$0xff]  ;;  %v8799_v1 = vrot.slane %v8791_v15, 1 }
 0x206   : > { %v7326_v33 = vpop.f32.mrb[102].mxu0  ;;  %v1262_v43 = vsel %vm1253_vm4, %v8798_v14, %v1244_v0  ;;  %v8801_v14 = vrot.slane %v8767_v13, 1  ;;  %v1413_v0 = vrot.slane %v8795_v20, 2 }
 0x207   : > { %8793 = vst [vmem:[#allocation8_spill] sm:$0xff] %v7326_v33  ;;  %v4077_v60 = vpop.f32.mrb[103].mxu0  ;;  %v1341_v63 = vsel %vm1336_vm3, %v1330_v40, %v8799_v1  ;;  %v7355_v16 = vpack.i.bf16 %v1261_v17, %v1262_v43  ;;  %v8806_v33 = vld [vmem:[#allocation50_spill] sm:$0xff] }
 0x208   : > { %4877 = vrot.lane.b32.xlu0 %v4846_v5, %s5115_s20  ;;  %v2660_v5 = vsel %vm2652_vm10, %v2618_v45, %v4375_v9  ;;  %v7352_v60 = vsel %vm2736_vm12, %v2701_v32, %v4379_v46  ;;  %v1342_v1 = vsel %vm1336_vm3, %v8801_v14, %v1330_v40  ;;  %v1161_v9 = vrot.slane %v6266_v23, 6 }
 0x209   : > { %4872 = vrot.lane.b32.xlu1 %v4871_v8, %s5116_s21  ;;  %v2702_v8 = vsel %vm2694_vm11, %v2660_v5, %v4400_v53  ;;  %v1414_v45 = vrot.slane %v8791_v15, 2  ;;  %v8802_v5 = vld [vmem:[#allocation52_spill] sm:$0xff]  ;;  %v7369_v17 = vpack.i.bf16 %v1341_v63, %v1342_v1  ;;  %v8804_v40 = vrot.slane %v8772_v58, 6  ;;  %v8805_v63 = vld [vmem:[#allocation47_spill] sm:$0xff] }
 0x20a   : > { %v4405_v32 = vunpack.i.h.bf16 %v8802_v5  ;;  %v4404_v46 = vunpack.i.l.bf16 %v8802_v5  ;;  %v1083_v1 = vrot.slane %v8805_v63, 5  ;;  %v1246_v23 = vrot.slane %v8767_v13, 7 }
 0x20b   : > { %v1178_v14 = vsel %vm1170_vm5, %v1161_v9, %v8804_v40  ;;  %v1179_v40 = vsel %vm1170_vm5, %v8808_v39, %v1161_v9  ;;  %v1424_v53 = vsel %vm1419_vm7, %v1413_v0, %v1414_v45  ;;  %v1415_v39 = vrot.slane %v6355_v35, 2 }
 0x20c   : > { %4887 = vrot.lane.b32.xlu0 %v4886_v55, %s5112_s16  ;;  %v7372_v55 = vsel %vm2736_vm12, %v2702_v8, %v4380_v49  ;;  %v7374_v43 = vpop.f32.mrb[104].mxu0  ;;  %v1084_v49 = vrot.slane %v8806_v33, 5  ;;  %v7399_v28 = vsel %vm2610_vm8, %v7244_v57, %v4404_v46  ;;  %v7407_v9 = vsel %vm2610_vm8, %v7250_v34, %v4405_v32 }
 0x20d   : > { %4882 = vrot.lane.b32.xlu1 %v7355_v16, %s5113_s18  ;;  %8803 = vst [vmem:[#allocation31_spill] sm:$0xff] %v7374_v43  ;;  %v4080_v5 = vpop.f32.mrb[105].mxu0  ;;  %v8810_v57 = vrot.slane %v8795_v20, 7  ;;  %v1332_v46 = vrot.slane %v6355_v35, 1  ;;  %v1089_v34 = vsel %vm1087_vm9, %v8590_v3, %v1083_v1  ;;  %v8814_v3 = vrot.slane %v8766_v48, 5 }
 0x20e   : > { %v7387_v43 = vpop.f32.mrb[106].mxu0  ;;  %v1425_v5 = vsel %vm1419_vm7, %v8809_v29, %v1413_v0  ;;  %v1088_v32 = vsel %vm1087_vm9, %v1083_v1, %v1084_v49  ;;  %v8811_v29 = vrot.slane %v6369_v27, 2 }
 0x20f   : > { %8807 = vst [vmem:[#allocation14_spill] sm:$0xff] %v7387_v43  ;;  %v4081_v8 = vpop.f32.mrb[107].mxu0  ;;  %v4906_v43 = vpack.i.bf16 %v1178_v14, %v1179_v40  ;;  %v4901_v14 = vpack.i.bf16 %v1424_v53, %v1425_v5  ;;  %v8813_v53 = vrot.slane %v6369_v27, 1 }
 0x210   : > { %4897 = vrot.lane.b32.xlu0 %v7369_v17, %s5118_s23  ;;  %v1422_v0 = vsel %vm1419_vm7, %v1415_v39, %v8811_v29  ;;  %v8812_v8 = vrot.slane %v8772_v58, 7  ;;  %v7445_v29 = vsel %vm1087_vm9, %v1084_v49, %v8814_v3 }
 0x211   : > { %4892 = vrot.lane.b32.xlu1 %v7297_v42, %s5114_s19  ;;  %v1259_v42 = vsel %vm1253_vm4, %v1246_v23, %v8810_v57 }
 0x212   : > { %v1260_v40 = vsel %vm1253_vm4, %v8812_v8, %v1246_v23  ;;  %v1423_v23 = vsel %vm1419_vm7, %v1414_v45, %v1415_v39  ;;  %v1163_v8 = vrot.slane %v8767_v13, 6  ;;  %v8817_v45 = vld [vmem:[#allocation17_spill] sm:$0xff] }
 0x213   : > { %v4628_v1 = vpop.permute.xlu0 %4627  ;;  %v7439_v57 = vpack.i.bf16 %v1259_v42, %v1260_v40  ;;  %v8816_v42 = vrot.slane %v8791_v15, 1  ;;  %v1062_v39 = vrot.slane %v8817_v45, 5  ;;  %v8821_v45 = vrot.slane %v8772_v58, 6 }
 0x214   : > { %4907 = vrot.lane.b32.xlu0 %v4906_v43, %s5116_s21  ;;  %v1339_v43 = vsel %vm1336_vm3, %v1332_v46, %v8813_v53  ;;  %v7450_v25 = vpop.f32.mrb[108].mxu0  ;;  %v4921_v53 = vpack.i.bf16 %v8795_v20, %v8767_v13  ;;  %v4623_v5 = vpop.permute.xlu1 %4622 }
 0x215   : > { %4902 = vrot.lane.b32.xlu1 %v4901_v14, %s5117_s22  ;;  %8815 = vst [vmem:[#allocation33_spill] sm:$0xff] %v7450_v25  ;;  %v4936_v14 = vpack.i.bf16 %v1422_v0, %v1423_v23  ;;  %v1340_v40 = vsel %vm1336_vm3, %v8816_v42, %v1332_v46  ;;  %v4084_v3 = vpop.f32.mrb[109].mxu0  ;;  %v4625_v7 = vunpack.i.h.bf16 %v4623_v5  ;;  %v4624_v61 = vunpack.i.l.bf16 %v4623_v5 }
 0x216   : > { %v7460_v49 = vpack.i.bf16 %v1339_v43, %v1340_v40  ;;  %v7464_v13 = vpop.f32.mrb[110].mxu0  ;;  %v8820_v0 = vrot.slane %v8795_v20, 6  ;;  %v1248_v23 = vrot.slane %v8791_v15, 7  ;;  %v4630_v42 = vunpack.i.h.bf16 %v4628_v1 }
 0x217   : > { %8819 = vst [vmem:[#allocation34_spill] sm:$0xff] %v7464_v13  ;;  %v4629_v3 = vunpack.i.l.bf16 %v4628_v1  ;;  %v4638_v43 = vpop.permute.xlu0 %4637  ;;  %v4085_v40 = vpop.f32.mrb[111].mxu0  ;;  %v7479_v5 = vsel %vm1170_vm5, %v8821_v45, %v1163_v8  ;;  %v2612_v13 = vsel %vm2610_vm8, %v1088_v32, %v4625_v7  ;;  %v8822_v1 = vrot.slane %v6355_v35, 7 }
 0x218   : > { %4917 = vrot.lane.b32.xlu0 %v7439_v57, %s5113_s18  ;;  %v7470_v46 = vsel %vm1170_vm5, %v1163_v8, %v8820_v0  ;;  %v2611_v0 = vsel %vm2610_vm8, %v1089_v34, %v4624_v61  ;;  %v1165_v40 = vrot.slane %v8791_v15, 6  ;;  %v4640_v36 = vunpack.i.h.bf16 %v4638_v43  ;;  %v4633_v58 = vpop.permute.xlu1 %4632 }
 0x219   : > { %4912 = vrot.lane.b32.xlu1 %v7355_v16, %s5115_s20  ;;  %v1257_v16 = vsel %vm1253_vm4, %v1248_v23, %v8822_v1  ;;  %v4941_v8 = vpack.i.bf16 %v7470_v46, %v7479_v5  ;;  %v8823_v45 = vrot.slane %v8818_v59, 5  ;;  %v4635_v34 = vunpack.i.h.bf16 %v4633_v58  ;;  %v8824_v1 = vld [vmem:[#allocation16_spill] sm:$0xff] }
 0x21a   : > { %v4634_v32 = vunpack.i.l.bf16 %v4633_v58  ;;  %v8825_v25 = vrot.slane %v8824_v1, 5  ;;  %v4639_v5 = vunpack.i.l.bf16 %v4638_v43  ;;  %v2653_v59 = vsel %vm2652_vm10, %v2611_v0, %v4629_v3 }
 0x21b   : > { %v7498_v7 = vsel %vm1087_vm9, %v1062_v39, %v8823_v45  ;;  %v2654_v45 = vsel %vm2652_vm10, %v2612_v13, %v4630_v42  ;;  %v4643_v61 = vpop.permute.xlu0 %4642  ;;  %v8827_v3 = vunpack.i.l.bf16 %v8773_v47  ;;  %v8829_v0 = vrot.slane %v6355_v35, 6 }
 0x21c   : > { %4927 = vrot.lane.b32.xlu0 %v7369_v17, %s5114_s19  ;;  %v7505_v50 = vsel %vm1087_vm9, %v8825_v25, %v1062_v39  ;;  %v8826_v17 = vrot.slane %v8795_v20, 7  ;;  %v2695_v1 = vsel %vm2694_vm11, %v2653_v59, %v4634_v32  ;;  %v2696_v25 = vsel %vm2694_vm11, %v2654_v45, %v4635_v34  ;;  %v7518_v12 = vpop.f32.mrb[112].mxu0  ;;  %v4648_v43 = vpop.permute.xlu1 %4647 }
 0x21d   : > { %4922 = vrot.lane.b32.xlu1 %v4921_v53, %s5112_s16  ;;  %v4645_v39 = vunpack.i.h.bf16 %v4643_v61  ;;  %v4644_v52 = vunpack.i.l.bf16 %v4643_v61  ;;  %v2737_v13 = vsel %vm2736_vm12, %v2695_v1, %v8827_v3  ;;  %v8828_v53 = vunpack.i.h.bf16 %v8773_v47  ;;  %v4088_v59 = vpop.f32.mrb[113].mxu0 }
 0x21e   : > { %v1258_v46 = vsel %vm1253_vm4, %v8826_v17, %v1248_v23  ;;  %v2614_v23 = vsel %vm2610_vm8, %v7231_v31, %v4640_v36  ;;  %v8830_v36 = vunpack.i.l.bf16 %v8781_v26  ;;  %v8831_v61 = vunpack.i.h.bf16 %v8781_v26  ;;  %v7545_v32 = vpop.f32.mrb[114].mxu0 }
 0x21f   : > { %v7514_v58 = vpack.i.bf16 %v1257_v16, %v1258_v46  ;;  %v2738_v42 = vsel %vm2736_vm12, %v2696_v25, %v8828_v53  ;;  %v7533_v16 = vsel %vm1170_vm5, %v1165_v40, %v8829_v0  ;;  %v2798_v34 = vsel %vm2778_vm13, %v7167_v4, %v4645_v39  ;;  %v4658_v3 = vpop.permute.xlu0 %4657  ;;  %v4089_v4 = vpop.f32.mrb[115].mxu0 }
 0x220   : > { %4937 = vrot.lane.b32.xlu0 %v4936_v14, %s5117_s22  ;;  %v2779_v31 = vsel %vm2778_vm13, %v2737_v13, %v8830_v36  ;;  %v2780_v47 = vsel %vm2778_vm13, %v2738_v42, %v8831_v61  ;;  %v2797_v14 = vsel %vm2778_vm13, %v7164_v24, %v4644_v52  ;;  %v8832_v17 = vunpack.i.l.bf16 %v8784_v41 }
 0x221   : > { %v8833_v45 = vunpack.i.h.bf16 %v8784_v41  ;;  %v4650_v25 = vunpack.i.h.bf16 %v4648_v43  ;;  %v4649_v26 = vunpack.i.l.bf16 %v4648_v43  ;;  %4932 = vrot.lane.b32.xlu1 %v7460_v49, %s5118_s23  ;;  %v2613_v24 = vsel %vm2610_vm8, %v7445_v29, %v4639_v5  ;;  %v4653_v0 = vpop.permute.xlu1 %4652 }
 0x222   : > { %v2821_v46 = vsel %vm2820_vm14, %v2779_v31, %v8832_v17  ;;  %v4660_v52 = vunpack.i.h.bf16 %v4658_v3  ;;  %v8834_v39 = vunpack.i.l.bf16 %v8782_v38  ;;  %v8835_v53 = vunpack.i.h.bf16 %v8782_v38  ;;  %v8838_v17 = vld [vmem:[#allocation55_spill] sm:$0xff] }
 0x223   : > { %v2822_v1 = vsel %vm2820_vm14, %v2780_v47, %v8833_v45  ;;  %v2656_v42 = vsel %vm2652_vm10, %v2614_v23, %v4650_v25  ;;  %v2655_v43 = vsel %vm2652_vm10, %v2613_v24, %v4649_v26  ;;  %v4659_v59 = vunpack.i.l.bf16 %v4658_v3  ;;  %v4668_v25 = vpop.permute.xlu0 %4667 }
 0x224   : > { %v2863_v13 = vsel %vm2862_vm15, %v2821_v46, %v8834_v39  ;;  %v2864_v41 = vsel %vm2862_vm15, %v2822_v1, %v8835_v53  ;;  %4947 = vrot.lane.b32.xlu0 %v7439_v57, %s5115_s20  ;;  %v8836_v29 = vunpack.i.h.bf16 %v8778_v51  ;;  %v8837_v31 = vunpack.i.l.bf16 %v8778_v51 }
 0x225   : > { %v2904_v36 = vpack.c.bf16 %v2864_v41, %v2863_v13  ;;  %v4655_v61 = vunpack.i.h.bf16 %v4653_v0  ;;  %v4654_v47 = vunpack.i.l.bf16 %v4653_v0  ;;  %v4415_v23 = vunpack.i.h.bf16 %v8838_v17  ;;  %4942 = vrot.lane.b32.xlu1 %v4941_v8, %s5116_s21  ;;  %v7587_v13 = vpop.f32.mrb[0].mxu1  ;;  %v4663_v53 = vpop.permute.xlu1 %4662 }
 0x226   : > { %v2698_v5 = vsel %vm2694_vm11, %v2656_v42, %v8836_v29  ;;  %v2697_v38 = vsel %vm2694_vm11, %v2655_v43, %v8837_v31  ;;  %v8839_v46 = vunpack.i.h.bf16 %v8776_v22  ;;  %v8840_v1 = vunpack.i.l.bf16 %v8776_v22  ;;  %v4092_v8 = vpop.f32.mrb[1].mxu1 }
 0x227   : > { %4159 = vmatmul.mubr.bf16.vlgmr.msra.gmra.mrb[52].mxu1 %v2904_v36  ;;  %v8841_v51 = vrot.slane %v8795_v20, 6  ;;  %v2840_v3 = vsel %vm2820_vm14, %v2798_v34, %v4655_v61  ;;  %v2839_v4 = vsel %vm2820_vm14, %v2797_v14, %v4654_v47  ;;  %v4670_v24 = vunpack.i.h.bf16 %v4668_v25  ;;  %v4678_v47 = vpop.permute.xlu0 %4677 }
 0x228   : > { %v2740_v45 = vsel %vm2736_vm12, %v2698_v5, %v8839_v46  ;;  %v2739_v57 = vsel %vm2736_vm12, %v2697_v38, %v8840_v1  ;;  %v4669_v39 = vunpack.i.l.bf16 %v4668_v25  ;;  %v8842_v22 = vmov 0.0   ;;  %v7607_v5 = vpop.f32.mrb[2].mxu1  ;;  %v8850_v25 = vld [vmem:[#allocation56_spill] sm:$0xff] }
 0x229   : > { %v1175_v26 = vsel %vm1170_vm5, %v8841_v51, %v1165_v40  ;;  %4162 = vmatprep.mubr.msk.bf16.mxu1 %vm5110_vm0, %v8842_v22  ;;  %v8843_v41 = vpack.i.bf16 %v6355_v35, %v8791_v15  ;;  %v8844_v40 = vunpack.i.l.bf16 %v8785_v37  ;;  %v8845_v14 = vunpack.i.h.bf16 %v8785_v37  ;;  %4952 = vrot.lane.b32.xlu1 %v7514_v58, %s5113_s18 }
 0x22a   : > { %v7602_v43 = vsel %vm2862_vm15, %v2839_v4, %v4659_v59  ;;  %v7605_v0 = vsel %vm2862_vm15, %v2840_v3, %v4660_v52  ;;  %v4665_v36 = vunpack.i.h.bf16 %v4663_v53  ;;  %v4664_v29 = vunpack.i.l.bf16 %v4663_v53  ;;  %v4093_v59 = vpop.f32.mrb[3].mxu1 }
 0x22b   : > { %4957 = vrot.lane.b32.xlu0 %v8843_v41, %s5112_s16  ;;  %v2781_v34 = vsel %vm2778_vm13, %v2739_v57, %v8844_v40  ;;  %v2782_v42 = vsel %vm2778_vm13, %v2740_v45, %v8845_v14  ;;  %v8846_v31 = vunpack.i.l.bf16 %v8797_v56  ;;  %v8847_v61 = vunpack.i.h.bf16 %v8797_v56  ;;  %v8854_v59 = vld [vmem:[#allocation60_spill] sm:$0xff] }
 0x22c   : > { %v4966_v52 = vpack.i.bf16 %v7533_v16, %v1175_v26  ;;  %v8848_v46 = vunpack.i.l.bf16 %v8796_v54  ;;  %v8849_v1 = vunpack.i.h.bf16 %v8796_v54  ;;  %v4435_v51 = vunpack.i.h.bf16 %v8850_v25  ;;  %v4673_v26 = vpop.permute.xlu1 %4672 }
 0x22d   : > { %v2823_v38 = vsel %vm2820_vm14, %v2781_v34, %v8846_v31  ;;  %v2824_v37 = vsel %vm2820_vm14, %v2782_v42, %v8847_v61  ;;  %v4434_v3 = vunpack.i.l.bf16 %v8850_v25  ;;  %v2632_v4 = vsel %vm2610_vm8, %v7498_v7, %v4665_v36  ;;  %4962 = vrot.lane.b32.xlu1 %v7460_v49, %s5114_s19  ;;  %v4688_v31 = vpop.permute.xlu0 %4687 }
 0x22e   : > { %v2865_v45 = vsel %vm2862_vm15, %v2823_v38, %v8848_v46  ;;  %v2866_v57 = vsel %vm2862_vm15, %v2824_v37, %v8849_v1  ;;  %v2631_v16 = vsel %vm2610_vm8, %v7505_v50, %v4664_v29  ;;  %v2674_v54 = vsel %vm2652_vm10, %v2632_v4, %v4670_v24  ;;  %v7650_v37 = vpop.f32.mrb[4].mxu1 }
 0x22f   : > { %v2673_v53 = vsel %vm2652_vm10, %v2631_v16, %v4669_v39  ;;  %4967 = vrot.lane.b32.xlu0 %v4966_v52, %s5116_s21  ;;  %v2905_v8 = vpack.c.bf16 %v2866_v57, %v2865_v45  ;;  %v8851_v41 = vunpack.i.l.bf16 %v8800_v6  ;;  %v4675_v34 = vunpack.i.h.bf16 %v4673_v26  ;;  %v8853_v39 = vld [vmem:[#allocation57_spill] sm:$0xff]  ;;  %v4096_v46 = vpop.f32.mrb[5].mxu1 }
 0x230   : > { %v4674_v14 = vunpack.i.l.bf16 %v4673_v26  ;;  %v1335_v7 = vrot.slane %v8806_v33, 1  ;;  %v8852_v42 = vunpack.i.h.bf16 %v8800_v6  ;;  %v4430_v36 = vunpack.i.h.bf16 %v8853_v39  ;;  %v4683_v52 = vpop.permute.xlu1 %4682  ;;  %v7667_v4 = vpop.f32.mrb[6].mxu1  ;;  %v8859_v46 = vld [vmem:[#allocation61_spill] sm:$0xff] }
 0x231   : > { %v2661_v40 = vsel %vm2652_vm10, %v7399_v28, %v8851_v41  ;;  %v4680_v24 = vunpack.i.h.bf16 %v4678_v47  ;;  %v4679_v29 = vunpack.i.l.bf16 %v4678_v47  ;;  %4163 = vmatmul.mubr.bf16.gmra.mrb[56].mxu1 %v2905_v8  ;;  %v4429_v28 = vunpack.i.l.bf16 %v8853_v39  ;;  %4972 = vrot.lane.b32.xlu1 %v7514_v58, %s5115_s20 }
 0x232   : > { %v2662_v50 = vsel %vm2652_vm10, %v7407_v9, %v8852_v42  ;;  %v2715_v38 = vsel %vm2694_vm11, %v2673_v53, %v4674_v14  ;;  %v2716_v61 = vsel %vm2694_vm11, %v2674_v54, %v4675_v34  ;;  %4166 = vmatprep.mubr.msk.bf16.mxu1 %vm5110_vm0, %v8842_v22  ;;  %v1334_v6 = vrot.slane %v8805_v63, 1  ;;  %v7677_v54 = vpop.permute.xlu0 %4697  ;;  %v8856_v14 = vld [vmem:[#allocation59_spill] sm:$0xff] }
 0x233   : > { %v7656_v9 = vsel %vm2694_vm11, %v2662_v50, %v4435_v51  ;;  %v7659_v49 = vsel %vm2694_vm11, %v2661_v40, %v4434_v3  ;;  %v4455_v47 = vunpack.i.h.bf16 %v8854_v59  ;;  %v8855_v45 = vpack.i.bf16 %v8730_v30, %v6978_v11  ;;  %v4097_v30 = vpop.f32.mrb[7].mxu1 }
 0x234   : > { %v4454_v1 = vunpack.i.l.bf16 %v8854_v59  ;;  %v4685_v57 = vunpack.i.h.bf16 %v4683_v52  ;;  %v4684_v25 = vunpack.i.l.bf16 %v4683_v52  ;;  %v1337_v51 = vsel %vm1336_vm3, %v1334_v6, %v1335_v7  ;;  %v4693_v50 = vpop.permute.xlu1 %4692 }
 0x235   : > { %4977 = vrot.lane.b32.xlu0 %v8855_v45, %s5113_s18  ;;  %v4690_v3 = vunpack.i.h.bf16 %v4688_v31  ;;  %v4689_v16 = vunpack.i.l.bf16 %v4688_v31  ;;  %v2757_v26 = vsel %vm2736_vm12, %v2715_v38, %v4679_v29  ;;  %v2758_v53 = vsel %vm2736_vm12, %v2716_v61, %v4680_v24 }
 0x236   : > { %v2786_v8 = vsel %vm2778_vm13, %v7372_v55, %v4430_v36  ;;  %v2785_v41 = vsel %vm2778_vm13, %v7352_v60, %v4429_v28  ;;  %v2799_v40 = vsel %vm2778_vm13, %v2757_v26, %v4684_v25  ;;  %v2800_v34 = vsel %vm2778_vm13, %v2758_v53, %v4685_v57  ;;  %v7700_v28 = vpop.permute.xlu0 %4707  ;;  %v8892_v26 = vld [vmem:[#allocation69_spill] sm:$0xff] }
 0x237   : > { %v4460_v42 = vunpack.i.h.bf16 %v8856_v14  ;;  %v4981_v58 = vpack.i.bf16 %v8805_v63, %v6369_v27  ;;  %v8857_v39 = vrot.slane %v6369_v27, 1  ;;  %v1418_v60 = vrot.slane %v8806_v33, 2 }
 0x238   : > { %v4695_v36 = vunpack.i.h.bf16 %v4693_v50  ;;  %v4694_v24 = vunpack.i.l.bf16 %v4693_v50  ;;  %v2827_v31 = vsel %vm2820_vm14, %v2785_v41, %v4454_v1  ;;  %v1417_v38 = vrot.slane %v8805_v63, 2  ;;  %v7708_v1 = vpop.f32.mrb[8].mxu1 }
 0x239   : > { %1829 = vrot.lane.b32.xlu0 %v6978_v11, %s5115_s20  ;;  %v1338_v55 = vsel %vm1336_vm3, %v8857_v39, %v1334_v6  ;;  %4982 = vrot.lane.b32.xlu1 %v4981_v58, %s5112_s16  ;;  %v8858_v11 = vpack.c.bf16 %v7023_v19, %v7018_v62  ;;  %v2828_v61 = vsel %vm2820_vm14, %v2786_v8, %v4455_v47  ;;  %v4459_v52 = vunpack.i.l.bf16 %v8856_v14  ;;  %v7719_v47 = vpop.permute.xlu1 %4702  ;;  %v4100_v57 = vpop.f32.mrb[9].mxu1  ;;  %v8864_v14 = vld [vmem:[#allocation15_spill] sm:$0xff] }
 0x23a   : > { %v4986_v29 = vpack.i.bf16 %v1337_v51, %v1338_v55  ;;  %v2841_v6 = vsel %vm2820_vm14, %v2799_v40, %v4689_v16  ;;  %v2842_v59 = vsel %vm2820_vm14, %v2800_v34, %v4690_v3  ;;  %v4465_v45 = vunpack.i.h.bf16 %v8859_v46  ;;  %8860 = vst [vmem:[#allocation44_spill] sm:$0xff] %v7708_v1  ;;  %v7732_v53 = vpop.f32.mrb[10].mxu1  ;;  %v7742_v55 = vpop.permute.xlu0 %4717 }
 0x23b   : > { %4167 = vmatmul.mubr.bf16.gmra.mrb[60].mxu1 %v8858_v11  ;;  %v7713_v62 = vsel %vm2862_vm15, %v2841_v6, %v4694_v24  ;;  %v7716_v19 = vsel %vm2862_vm15, %v2842_v59, %v4695_v36  ;;  %v4464_v63 = vunpack.i.l.bf16 %v8859_v46  ;;  %v8861_v25 = vrot.slane %v6369_v27, 6  ;;  %8863 = vst [vmem:[#allocation36_spill] sm:$0xff] %v7732_v53  ;;  %v4101_v39 = vpop.f32.mrb[11].mxu1  ;;  %v8867_v46 = vld [vmem:[#allocation62_spill] sm:$0xff] }
 0x23c   : > { %4170 = vmatprep.mubr.msk.bf16.mxu1 %vm5110_vm0, %v8842_v22  ;;  %v8862_v51 = vrot.slane %v6355_v35, 6  ;;  %v1420_v16 = vsel %vm1419_vm7, %v1417_v38, %v1418_v60  ;;  %v2869_v30 = vsel %vm2862_vm15, %v2827_v31, %v4459_v52  ;;  %v2870_v8 = vsel %vm2862_vm15, %v2828_v61, %v4460_v42 }
 0x23d   : > { %4987 = vrot.lane.b32.xlu0 %v4986_v29, %s5118_s23  ;;  %v1378_v41 = vrot.slane %v8766_v48, 2  ;;  %v1379_v40 = vrot.slane %v8768_v10, 2  ;;  %v4414_v34 = vunpack.i.l.bf16 %v8838_v17  ;;  %v4490_v50 = vunpack.i.h.bf16 %v8864_v14  ;;  %v7756_v11 = vpop.permute.xlu1 %4712 }
 0x23e   : > { %v1173_v3 = vsel %vm1170_vm5, %v8862_v51, %v8861_v25  ;;  %v4489_v58 = vunpack.i.l.bf16 %v8864_v14  ;;  %v8865_v36 = vrot.slane %v6369_v27, 2  ;;  %v2746_v31 = vsel %vm2736_vm12, %v7656_v9, %v4415_v23  ;;  %v7770_v23 = vpop.permute.xlu0 %4727  ;;  %v8869_v25 = vld [vmem:[#allocation9_spill] sm:$0xff] }
 0x23f   : > { %1665 = vrot.lane.b32.xlu1 %v1173_v3, %s5116_s21  ;;  %v1460_v24 = vsel %vm1419_vm7, %v1418_v60, %v1378_v41  ;;  %v2745_v10 = vsel %vm2736_vm12, %v7659_v49, %v4414_v34  ;;  %v2907_v6 = vpack.c.bf16 %v2870_v8, %v2869_v30  ;;  %v2788_v59 = vsel %vm2778_vm13, %v2746_v31, %v4465_v45  ;;  %s269_s21 = sand.u32 1, %s5099_s25  }
 0x240   : > { %v1421_v42 = vsel %vm1419_vm7, %v8865_v36, %v1417_v38  ;;  %v2787_v38 = vsel %vm2778_vm13, %v2745_v10, %v4464_v63  ;;  %v1459_v60 = vsel %vm1419_vm7, %v1378_v41, %v1379_v40  ;;  %v8866_v49 = vrot.slane %v8766_v48, 1  ;;  %v7776_v48 = vpop.f32.mrb[12].mxu1 }
 0x241   : > { %4997 = vrot.lane.b32.xlu0 %v4986_v29, %s5114_s19  ;;  %v4991_v61 = vpack.i.bf16 %v1420_v16, %v1421_v42  ;;  %v5006_v9 = vpack.i.bf16 %v1459_v60, %v1460_v24  ;;  %v2829_v29 = vsel %vm2820_vm14, %v2787_v38, %v4489_v58  ;;  %v2830_v52 = vsel %vm2820_vm14, %v2788_v59, %v4490_v50  ;;  %v4104_v57 = vpop.f32.mrb[13].mxu1  ;;  %v8871_v50 = vld [vmem:[#allocation53_spill] sm:$0xff]  ;;  %v8873_v24 = vld [vmem:[#allocation10_spill] sm:$0xff] }
 0x242   : > { %v1377_v17 = vsel %vm1336_vm3, %v1335_v7, %v8866_v49  ;;  %v4495_v45 = vunpack.i.h.bf16 %v8867_v46  ;;  %v4494_v63 = vunpack.i.l.bf16 %v8867_v46  ;;  %8868 = vst [vmem:[#allocation39_spill] sm:$0xff] %v7776_v48  ;;  %v7780_v7 = vpop.permute.xlu1 %4722  ;;  %v7784_v3 = vpop.f32.mrb[14].mxu1  ;;  %v8877_v60 = vpack.c.bf16 %v7143_v18, %v7140_v2  ;;  %v8880_v2 = vld [vmem:[#allocation65_spill] sm:$0xff]  ;;  %v8901_v48 = vld [vmem:[#allocation24_spill] sm:$0xff] }
 0x243   : > { %4992 = vrot.lane.b32.xlu1 %v4991_v61, %s5117_s22  ;;  %4171 = vmatmul.mubr.bf16.gmra.mrb[64].mxu1 %v2907_v6  ;;  %v5001_v51 = vpack.i.bf16 %v8869_v25, %v1377_v17  ;;  %8870 = vst [vmem:[#allocation40_spill] sm:$0xff] %v7784_v3  ;;  %v4105_v8 = vpop.f32.mrb[15].mxu1  ;;  %v7789_v41 = vpop.permute.xlu0 %4737  ;;  %v8875_v6 = vld [vmem:[#allocation7_spill] sm:$0xff]  ;;  %v8881_v18 = vpack.c.bf16 %v7180_v21, %v8880_v2  ;;  %v8885_v21 = vld [vmem:[#allocation58_spill] sm:$0xff]  ;;  %v4724_v53 = vunpack.i.l.bf16 %v7780_v7 }
 0x244   : > { %4174 = vmatprep.mubr.msk.bf16.mxu1 %vm5110_vm0, %v8842_v22  ;;  %v2871_v16 = vsel %vm2862_vm15, %v2829_v29, %v4494_v63  ;;  %v2872_v30 = vsel %vm2862_vm15, %v2830_v52, %v4495_v45  ;;  %v7799_v39 = vpop.f32.mrb[16].mxu1  ;;  %v8876_v59 = vrot.slane %v8875_v6, 2  ;;  %v8889_v2 = vld [vmem:[#allocation19_spill] sm:$0xff] }
 0x245   : > { %5007 = vrot.lane.b32.xlu0 %v5006_v9, %s5117_s22  ;;  %v2908_v14 = vpack.c.bf16 %v2872_v30, %v2871_v16  ;;  %8872 = vst [vmem:[#allocation42_spill] sm:$0xff] %v7799_v39  ;;  %v4108_v42 = vpop.f32.mrb[17].mxu1  ;;  %v4715_v39 = vunpack.i.h.bf16 %v7756_v11 }
 0x246   : > { %v7791_v34 = vpop.permute.xlu1 %4732  ;;  %v7807_v10 = vpop.f32.mrb[18].mxu1  ;;  %v1458_v38 = vsel %vm1419_vm7, %v1379_v40, %v8876_v59 }
 0x247   : > { %5002 = vrot.lane.b32.xlu1 %v5001_v51, %s5118_s23  ;;  %v7797_v58 = vpop.permute.xlu0 %4747  ;;  %8874 = vst [vmem:[#allocation49_spill] sm:$0xff] %v7807_v10 }
 0x249   : > { %2116 = vrot.lane.b32.xlu0 %v8806_v33, %s5112_s16  ;;  %v4109_v33 = vpop.f32.mrb[19].mxu1  ;;  %s5051_s16 = scalar_lea.vmem %s5050_s13, 32 }
 0x24a   : > { %v7803_v36 = vpop.permute.xlu1 %4742 }
 0x24b   : > { %1952 = vrot.lane.b32.xlu1 %v8871_v50, %s5113_s18  ;;  %4175 = vmatmul.mubr.bf16.gmra.mrb[68].mxu1 %v2908_v14  ;;  %v7810_v31 = vpop.permute.xlu0 %4757  ;;  %v8884_v50 = vld [vmem:[#allocation68_spill] sm:$0xff] }
 0x24c   : > { %4178 = vmatprep.mubr.msk.bf16.mxu1 %vm5110_vm0, %v8842_v22  ;;  %v7824_v9 = vpop.f32.mrb[20].mxu1  ;;  %v8886_v42 = vpack.c.bf16 %v8884_v50, %v8885_v21  ;;  %v4700_v50 = vunpack.i.h.bf16 %v7677_v54  ;;  %v4699_v21 = vunpack.i.l.bf16 %v7677_v54 }
 0x24d   : > { %2403 = vrot.lane.b32.xlu0 %v8873_v24, %s5118_s23  ;;  %8878 = vst [vmem:[#allocation43_spill] sm:$0xff] %v7824_v9  ;;  %v4112_v29 = vpop.f32.mrb[21].mxu1  ;;  %s270_s23 = scalar_lea.vmem [#allocation2], %s269_s21 }
 0x24e   : > { %v7812_v61 = vpop.permute.xlu1 %4752  ;;  %v7830_v52 = vpop.f32.mrb[22].mxu1  ;;  %s3721_s14 = sshll.u32 %s270_s23, 4  ;;  %s8437_s14 = int_to_ptr.vmem [resolvable:$true] %s3721_s14 }
 0x24f   : > { %2280 = vrot.lane.b32.xlu1 %v1377_v17, %s5114_s19  ;;  %v7822_v49 = vpop.permute.xlu0 %4767  ;;  %8879 = vst [vmem:[#allocation41_spill] sm:$0xff] %v7830_v52  ;;  %v4113_v46 = vpop.f32.mrb[23].mxu1  ;;  %v4709_v52 = vunpack.i.l.bf16 %v7700_v28  ;;  %s5045_s8 = scalar_lea.vmem %s8437_s14, 16  ;;  %p5052_p0 = scmp.lt.s32.totalorder %s8437_s14, %s5050_s13 }
 0x250   : > { %p5046_p11 = scmp.ne.s32.totalorder %s8437_s14, %s5045_s8  ;;  %p5053_p1 = scmp.lt.s32.totalorder %s5051_s16, %s5045_s8 }
 0x252   : > { %v7828_v17 = vpop.permute.xlu1 %4762  ;;  %p5047_p12 = pnand %p5046_p11, %p5199_p5  ;;  %p5054_p2 = por %p5053_p1, %p5052_p0 }
 0x253   : > { %2567 = vrot.lane.b32.xlu1 %v1458_v38, %s5117_s22  ;;  %4179 = vmatmul.mubr.bf16.gmra.mrb[72].mxu1 %v8877_v60  ;;  %v7832_v40 = vpop.permute.xlu0 %4777  ;;  %s3860_s22 = sshll.u32 %s5182_s28, 4  ;;  %s3709_s28 = scalar_lea.sflag [#allocation3], %s269_s21 }
 0x254   : > { %4182 = vmatprep.mubr.msk.bf16.mxu1 %vm5110_vm0, %v8842_v22  ;;  %v7841_v57 = vpop.f32.mrb[24].mxu1  ;;  %s8435_s29 = scalar_lea.hbm %s8484_s7, %s3860_s22  ;;  %p5048_p13 = pneg %p5047_p12 }
 0x255   : > { %8882 = vst [vmem:[#allocation45_spill] sm:$0xff] %v7841_v57  ;;  %v4116_v51 = vpop.f32.mrb[25].mxu1  ;;  %v4710_v57 = vunpack.i.h.bf16 %v7700_v28  ;;  %v4734_v28 = vunpack.i.l.bf16 %v7791_v34 }
 0x256   : > { %v7834_v45 = vpop.permute.xlu1 %4772  ;;  %v7847_v16 = vpop.f32.mrb[26].mxu1  ;;  %v8890_v51 = vld [vmem:[#allocation20_spill] sm:$0xff]  ;;  %p5055_p3 = pnand %p5054_p2, %p5048_p13 }
 0x257   : > { %v7839_v63 = vpop.permute.xlu0 %4787  ;;  %8883 = vst [vmem:[#allocation38_spill] sm:$0xff] %v7847_v16  ;;  %v4117_v30 = vpop.f32.mrb[27].mxu1  ;;  %v8895_v16 = vld [vmem:[#allocation18_spill] sm:$0xff] }
 0x258   : > { %v1065_v30 = vrot.slane %v8890_v51, 5 }
 0x25a   : > { %v7845_v25 = vpop.permute.xlu1 %4782 }
 0x25b   : > { %4183 = vmatmul.mubr.bf16.gmra.mrb[76].mxu1 %v8881_v18  ;;  %v7849_v8 = vpop.permute.xlu0 %4797  ;;  %v1064_v18 = vrot.slane %v8889_v2, 5 }
 0x25c   : > { %4186 = vmatprep.mubr.msk.bf16.mxu1 %vm5110_vm0, %v8842_v22  ;;  %v7858_v33 = vpop.f32.mrb[28].mxu1 }
 0x25d   : > { %8887 = vst [vmem:[#allocation46_spill] sm:$0xff] %v7858_v33  ;;  %v4120_v59 = vpop.f32.mrb[29].mxu1  ;;  %v1107_v54 = vsel %vm1087_vm9, %v1064_v18, %v1065_v30 }
 0x25e   : > { %v7851_v14 = vpop.permute.xlu1 %4792  ;;  %v7864_v38 = vpop.f32.mrb[30].mxu1 }
 0x25f   : > { %v7856_v24 = vpop.permute.xlu0 %4807  ;;  %8888 = vst [vmem:[#allocation48_spill] sm:$0xff] %v7864_v38  ;;  %v4121_v60 = vpop.f32.mrb[31].mxu1  ;;  %v4704_v38 = vunpack.i.l.bf16 %v7719_v47 }
 0x260   : > { %v4705_v60 = vunpack.i.h.bf16 %v7719_v47  ;;  %v2634_v47 = vsel %vm2610_vm8, %v1107_v54, %v4700_v50  ;;  %v8899_v50 = vld [vmem:[#allocation22_spill] sm:$0xff] }
 0x261   : > { %v1067_v54 = vrot.slane %v8899_v50, 5 }
 0x262   : > { %v7862_v6 = vpop.permute.xlu1 %4802  ;;  %v2676_v10 = vsel %vm2652_vm10, %v2634_v47, %v4705_v60  ;;  %v4725_v60 = vunpack.i.h.bf16 %v7780_v7 }
 0x263   : > { %4187 = vmatmul.mubr.bf16.gmra.mrb[80].mxu1 %v8886_v42  ;;  %v7866_v29 = vpop.permute.xlu0 %4817  ;;  %v8891_v42 = vld [vmem:[#allocation12_spill] sm:$0xff]  ;;  %v2718_v47 = vsel %vm2694_vm11, %v2676_v10, %v4710_v57 }
 0x264   : > { %4190 = vmatprep.mubr.msk.bf16.mxu1 %vm5110_vm0, %v8842_v22  ;;  %v8893_v56 = vpack.c.bf16 %v8891_v42, %v8892_v26  ;;  %v7881_v33 = vpop.f32.mrb[32].mxu1  ;;  %v8896_v26 = vrot.slane %v8895_v16, 5 }
 0x265   : > { %8894 = vst [vmem:[#allocation51_spill] sm:$0xff] %v7881_v33  ;;  %v4124_v51 = vpop.f32.mrb[33].mxu1 }
 0x266   : > { %v7868_v46 = vpop.permute.xlu1 %4812  ;;  %v7893_v42 = vpop.f32.mrb[34].mxu1 }
 0x267   : > { %v7877_v59 = vpop.permute.xlu0 %4827  ;;  %8897 = vst [vmem:[#allocation52_spill] sm:$0xff] %v7893_v42  ;;  %v4125_v9 = vpop.f32.mrb[35].mxu1 }
 0x268   : > { %v8900_v9 = vld [vmem:[#allocation23_spill] sm:$0xff] }
 0x269   : > { %v1068_v3 = vrot.slane %v8900_v9, 5  ;;  %v2760_v9 = vsel %vm2736_vm12, %v2718_v47, %v4715_v39 }
 0x26a   : > { %v7885_v2 = vpop.permute.xlu1 %4822 }
 0x26b   : > { %4191 = vmatmul.mubr.bf16.gmra.mrb[84].mxu1 %v8893_v56  ;;  %v1108_v56 = vsel %vm1087_vm9, %v8896_v26, %v1064_v18  ;;  %v7899_v51 = vpop.permute.xlu0 %4837  ;;  %v4714_v18 = vunpack.i.l.bf16 %v7756_v11  ;;  %v8898_v26 = vld [vmem:[#allocation21_spill] sm:$0xff] }
 0x26c   : > { %4194 = vmatprep.mubr.msk.bf16.mxu1 %vm5110_vm0, %v8842_v22  ;;  %v2633_v33 = vsel %vm2610_vm8, %v1108_v56, %v4699_v21  ;;  %v1066_v42 = vrot.slane %v8898_v26, 5  ;;  %v4735_v56 = vunpack.i.h.bf16 %v7791_v34  ;;  %v8902_v26 = vpack.c.bf16 %v7605_v0, %v7602_v43  ;;  %v7926_v1 = vpop.f32.mrb[36].mxu1 }
 0x26d   : > { %v2675_v16 = vsel %vm2652_vm10, %v2633_v33, %v4704_v38  ;;  %v4720_v33 = vunpack.i.h.bf16 %v7742_v55  ;;  %v4719_v38 = vunpack.i.l.bf16 %v7742_v55  ;;  %v4740_v55 = vunpack.i.h.bf16 %v7789_v41 }
 0x26e   : > { %v7907_v21 = vpop.permute.xlu1 %4832  ;;  %v2717_v11 = vsel %vm2694_vm11, %v2675_v16, %v4709_v52  ;;  %v4739_v43 = vunpack.i.l.bf16 %v7789_v41  ;;  %v1105_v0 = vsel %vm1087_vm9, %v1066_v42, %v1067_v54  ;;  %v1106_v10 = vsel %vm1087_vm9, %v1065_v30, %v1066_v42  ;;  %v4128_v52 = vpop.f32.mrb[37].mxu1 }
 0x26f   : > { %v7920_v50 = vpop.permute.xlu0 %4847  ;;  %v2759_v34 = vsel %vm2736_vm12, %v2717_v11, %v4714_v18  ;;  %v2636_v7 = vsel %vm2610_vm8, %v1105_v0, %v4735_v56  ;;  %v2635_v57 = vsel %vm2610_vm8, %v1106_v10, %v4734_v28  ;;  %v4745_v16 = vunpack.i.h.bf16 %v7803_v36  ;;  %v7942_v11 = vpop.f32.mrb[38].mxu1 }
 0x270   : > { %v4744_v18 = vunpack.i.l.bf16 %v7803_v36  ;;  %v2801_v41 = vsel %vm2778_vm13, %v2759_v34, %v4719_v38  ;;  %v2802_v47 = vsel %vm2778_vm13, %v2760_v9, %v4720_v33  ;;  %v1104_v42 = vsel %vm1087_vm9, %v1067_v54, %v1068_v3  ;;  %v4129_v56 = vpop.f32.mrb[39].mxu1 }
 0x271   : > { %v4730_v0 = vunpack.i.h.bf16 %v7770_v23  ;;  %v4729_v36 = vunpack.i.l.bf16 %v7770_v23  ;;  %v2843_v10 = vsel %vm2820_vm14, %v2801_v41, %v4724_v53  ;;  %v2844_v38 = vsel %vm2820_vm14, %v2802_v47, %v4725_v60  ;;  %v8904_v47 = vld [vmem:[#allocation25_spill] sm:$0xff]  ;;  %v8905_v56 = vld [vmem:[#allocation26_spill] sm:$0xff] }
 0x272   : > { %v7936_v39 = vpop.permute.xlu1 %4842  ;;  %v4750_v33 = vunpack.i.h.bf16 %v7797_v58  ;;  %v4749_v34 = vunpack.i.l.bf16 %v7797_v58  ;;  %v2677_v9 = vsel %vm2652_vm10, %v2635_v57, %v4739_v43  ;;  %v2678_v52 = vsel %vm2652_vm10, %v2636_v7, %v4740_v55 }
 0x273   : > { %4195 = vmatmul.mubr.bf16.gmra.mrb[88].mxu1 %v8902_v26  ;;  %v8903_v26 = vrot.slane %v8901_v48, 5  ;;  %v7952_v28 = vpop.permute.xlu0 %4857  ;;  %v2719_v54 = vsel %vm2694_vm11, %v2677_v9, %v4744_v18  ;;  %v4755_v23 = vunpack.i.h.bf16 %v7812_v61  ;;  %v4754_v53 = vunpack.i.l.bf16 %v7812_v61 }
 0x274   : > { %4198 = vmatprep.mubr.msk.bf16.mxu1 %vm5110_vm0, %v8842_v22  ;;  %v4770_v60 = vunpack.i.h.bf16 %v7822_v49  ;;  %v4769_v41 = vunpack.i.l.bf16 %v7822_v49  ;;  %v1070_v58 = vrot.slane %v8904_v47, 5  ;;  %v8906_v55 = vpack.c.bf16 %v7716_v19, %v7713_v62  ;;  %v7979_v18 = vpop.f32.mrb[40].mxu1 }
 0x275   : > { %v1103_v30 = vsel %vm1087_vm9, %v1068_v3, %v8903_v26  ;;  %v2720_v26 = vsel %vm2694_vm11, %v2678_v52, %v4745_v16  ;;  %v4775_v57 = vunpack.i.h.bf16 %v7834_v45  ;;  %v4774_v16 = vunpack.i.l.bf16 %v7834_v45  ;;  %8907 = vst [vmem:[#allocation47_spill] sm:$0xff] %v7979_v18  ;;  %v4132_v45 = vpop.f32.mrb[41].mxu1 }
 0x276   : > { %v7962_v3 = vpop.permute.xlu1 %4852  ;;  %v2885_v61 = vsel %vm2862_vm15, %v2843_v10, %v4729_v36  ;;  %v2886_v49 = vsel %vm2862_vm15, %v2844_v38, %v4730_v0  ;;  %v4760_v9 = vunpack.i.h.bf16 %v7810_v31  ;;  %v4759_v62 = vunpack.i.l.bf16 %v7810_v31  ;;  %v7995_v0 = vpop.f32.mrb[42].mxu1 }
 0x277   : > { %v7975_v7 = vpop.permute.xlu0 %4867  ;;  %v2761_v19 = vsel %vm2736_vm12, %v2719_v54, %v4749_v34  ;;  %v2762_v52 = vsel %vm2736_vm12, %v2720_v26, %v4750_v33  ;;  %v4765_v18 = vunpack.i.h.bf16 %v7828_v17  ;;  %v4764_v36 = vunpack.i.l.bf16 %v7828_v17  ;;  %v4133_v34 = vpop.f32.mrb[43].mxu1 }
 0x278   : > { %v2804_v43 = vsel %vm2778_vm13, %v2762_v52, %v4755_v23  ;;  %v2638_v10 = vsel %vm2610_vm8, %v1103_v30, %v4770_v60  ;;  %v2637_v31 = vsel %vm2610_vm8, %v1104_v42, %v4769_v41  ;;  %v4780_v38 = vunpack.i.h.bf16 %v7832_v40 }
 0x279   : > { %v4779_v33 = vunpack.i.l.bf16 %v7832_v40  ;;  %v2680_v26 = vsel %vm2652_vm10, %v2638_v10, %v4775_v57  ;;  %v2679_v23 = vsel %vm2652_vm10, %v2637_v31, %v4774_v16  ;;  %v4784_v17 = vunpack.i.l.bf16 %v7845_v25 }
 0x27a   : > { %v7989_v47 = vpop.permute.xlu1 %4862  ;;  %v2915_v42 = vpack.c.bf16 %v2886_v49, %v2885_v61  ;;  %v2846_v40 = vsel %vm2820_vm14, %v2804_v43, %v4760_v9  ;;  %v4805_v41 = vunpack.i.h.bf16 %v7862_v6  ;;  %v4804_v45 = vunpack.i.l.bf16 %v7862_v6 }
 0x27b   : > { %4199 = vmatmul.mubr.bf16.gmra.mrb[92].mxu1 %v8906_v55  ;;  %v2803_v55 = vsel %vm2778_vm13, %v2761_v19, %v4754_v53  ;;  %v8001_v54 = vpop.permute.xlu0 %4877  ;;  %v4785_v53 = vunpack.i.h.bf16 %v7845_v25  ;;  %v8908_v19 = vld [vmem:[#allocation27_spill] sm:$0xff]  ;;  %v2888_v16 = vsel %vm2862_vm15, %v2846_v40, %v4765_v18  ;;  %v4790_v10 = vunpack.i.h.bf16 %v7839_v63 }
 0x27c   : > { %4202 = vmatprep.mubr.msk.bf16.mxu1 %vm5110_vm0, %v8842_v22  ;;  %v1072_v52 = vrot.slane %v8908_v19, 5  ;;  %v2845_v60 = vsel %vm2820_vm14, %v2803_v55, %v4759_v62  ;;  %v4789_v25 = vunpack.i.l.bf16 %v7839_v63  ;;  %v2721_v31 = vsel %vm2694_vm11, %v2679_v23, %v4779_v33  ;;  %v8026_v18 = vpop.f32.mrb[44].mxu1 }
 0x27d   : > { %v2887_v57 = vsel %vm2862_vm15, %v2845_v60, %v4764_v36  ;;  %v2722_v61 = vsel %vm2694_vm11, %v2680_v26, %v4780_v38  ;;  %v2763_v43 = vsel %vm2736_vm12, %v2721_v31, %v4784_v17  ;;  %v4795_v6 = vunpack.i.h.bf16 %v7851_v14  ;;  %v4136_v26 = vpop.f32.mrb[45].mxu1  ;;  %v8911_v60 = vld [vmem:[#allocation28_spill] sm:$0xff] }
 0x27e   : > { %v8008_v30 = vpop.permute.xlu1 %4872  ;;  %v2764_v9 = vsel %vm2736_vm12, %v2722_v61, %v4785_v53  ;;  %v4794_v62 = vunpack.i.l.bf16 %v7851_v14  ;;  %v4810_v63 = vunpack.i.h.bf16 %v7856_v24  ;;  %v4809_v55 = vunpack.i.l.bf16 %v7856_v24  ;;  %v8046_v19 = vpop.f32.mrb[46].mxu1 }
 0x27f   : > { %v8020_v49 = vpop.permute.xlu0 %4887  ;;  %v8909_v36 = vrot.slane %v8905_v56, 5  ;;  %v8910_v33 = vrot.slane %v8901_v48, 5  ;;  %v4815_v17 = vunpack.i.h.bf16 %v7868_v46  ;;  %v4814_v24 = vunpack.i.l.bf16 %v7868_v46 }
 0x280   : > { %v2806_v48 = vsel %vm2778_vm13, %v2764_v9, %v4790_v10  ;;  %v1073_v40 = vrot.slane %v8911_v60, 5  ;;  %v2916_v61 = vpack.c.bf16 %v2888_v16, %v2887_v57  ;;  %v4845_v26 = vunpack.i.h.bf16 %v7936_v39 }
 0x281   : > { %v1101_v38 = vsel %vm1087_vm9, %v1070_v58, %v8909_v36  ;;  %v1102_v34 = vsel %vm1087_vm9, %v8910_v33, %v1070_v58  ;;  %v4137_v58 = vpop.f32.mrb[47].mxu1  ;;  %v2848_v46 = vsel %vm2820_vm14, %v2806_v48, %v4795_v6  ;;  %v4839_v33 = vunpack.i.l.bf16 %v7899_v51 }
 0x282   : > { %v8040_v14 = vpop.permute.xlu1 %4882  ;;  %v2640_v23 = vsel %vm2610_vm8, %v1101_v38, %v4805_v41  ;;  %v2639_v53 = vsel %vm2610_vm8, %v1102_v34, %v4804_v45  ;;  %v4800_v41 = vunpack.i.h.bf16 %v7849_v8  ;;  %v4799_v45 = vunpack.i.l.bf16 %v7849_v8 }
 0x283   : > { %4203 = vmatmul.mubr.bf16.gmra.mrb[96].mxu1 %v2915_v42  ;;  %v2805_v42 = vsel %vm2778_vm13, %v2763_v43, %v4789_v25  ;;  %v8051_v31 = vpop.permute.xlu0 %4897  ;;  %v4820_v38 = vunpack.i.h.bf16 %v7866_v29  ;;  %v4819_v25 = vunpack.i.l.bf16 %v7866_v29  ;;  %v2681_v10 = vsel %vm2652_vm10, %v2639_v53, %v4809_v55 }
 0x284   : > { %4206 = vmatprep.mubr.msk.bf16.mxu1 %vm5110_vm0, %v8842_v22  ;;  %v2847_v36 = vsel %vm2820_vm14, %v2805_v42, %v4794_v62  ;;  %v2682_v43 = vsel %vm2652_vm10, %v2640_v23, %v4810_v63  ;;  %v2723_v57 = vsel %vm2694_vm11, %v2681_v10, %v4814_v24  ;;  %v4825_v8 = vunpack.i.h.bf16 %v7885_v2  ;;  %v8081_v23 = vpop.f32.mrb[48].mxu1 }
 0x285   : > { %v2724_v16 = vsel %vm2694_vm11, %v2682_v43, %v4815_v17  ;;  %v4824_v62 = vunpack.i.l.bf16 %v7885_v2  ;;  %v1099_v6 = vsel %vm1087_vm9, %v1072_v52, %v1073_v40  ;;  %v8912_v29 = vrot.slane %v8905_v56, 5 }
 0x286   : > { %v8061_v9 = vpop.permute.xlu1 %4892  ;;  %v4840_v55 = vunpack.i.h.bf16 %v7899_v51  ;;  %v4844_v2 = vunpack.i.l.bf16 %v7936_v39  ;;  %v2889_v56 = vsel %vm2862_vm15, %v2847_v36, %v4799_v45  ;;  %v4830_v53 = vunpack.i.h.bf16 %v7877_v59  ;;  %v4140_v39 = vpop.f32.mrb[49].mxu1 }
 0x287   : > { %v1100_v63 = vsel %vm1087_vm9, %v8912_v29, %v1072_v52  ;;  %v8077_v34 = vpop.permute.xlu0 %4907  ;;  %v2890_v52 = vsel %vm2862_vm15, %v2848_v46, %v4800_v41  ;;  %v4829_v51 = vunpack.i.l.bf16 %v7877_v59  ;;  %v2765_v17 = vsel %vm2736_vm12, %v2723_v57, %v4819_v25  ;;  %v3230_v41 = vpop.f32.mrb[50].mxu1 }
 0x288   : > { %v2766_v24 = vsel %vm2736_vm12, %v2724_v16, %v4820_v38  ;;  %v2807_v48 = vsel %vm2778_vm13, %v2765_v17, %v4824_v62  ;;  %v4834_v45 = vunpack.i.l.bf16 %v7907_v21  ;;  %v2642_v36 = vsel %vm2610_vm8, %v1099_v6, %v4840_v55  ;;  %v4141_v25 = vpop.f32.mrb[51].mxu1  ;;  %v8914_v55 = vld [vmem:[#allocation30_spill] sm:$0xff] }
 0x289   : > { %v2808_v58 = vsel %vm2778_vm13, %v2766_v24, %v4825_v8  ;;  %v2641_v59 = vsel %vm2610_vm8, %v1100_v63, %v4839_v33  ;;  %v4850_v46 = vunpack.i.h.bf16 %v7920_v50  ;;  %v4849_v38 = vunpack.i.l.bf16 %v7920_v50  ;;  %v8913_v63 = vld [vmem:[#allocation29_spill] sm:$0xff] }
 0x28a   : > { %v8091_v42 = vpop.permute.xlu1 %4902  ;;  %v2684_v43 = vsel %vm2652_vm10, %v2642_v36, %v4845_v26  ;;  %v2683_v57 = vsel %vm2652_vm10, %v2641_v59, %v4844_v2  ;;  %v4855_v16 = vunpack.i.h.bf16 %v7962_v3  ;;  %v2917_v62 = vpack.c.bf16 %v2890_v52, %v2889_v56 }
 0x28b   : > { %4207 = vmatmul.mubr.bf16.gmra.mrb[100].mxu1 %v2916_v61  ;;  %v4835_v61 = vunpack.i.h.bf16 %v7907_v21  ;;  %v8101_v10 = vpop.permute.xlu0 %4917  ;;  %v4854_v21 = vunpack.i.l.bf16 %v7962_v3  ;;  %v2849_v6 = vsel %vm2820_vm14, %v2807_v48, %v4829_v51  ;;  %v2850_v29 = vsel %vm2820_vm14, %v2808_v58, %v4830_v53 }
 0x28c   : > { %4210 = vmatprep.mubr.msk.bf16.mxu1 %vm5110_vm0, %v8842_v22  ;;  %v1074_v50 = vrot.slane %v8913_v63, 5  ;;  %v1075_v33 = vrot.slane %v8914_v55, 5  ;;  %v2891_v17 = vsel %vm2862_vm15, %v2849_v6, %v4834_v45  ;;  %v4860_v2 = vunpack.i.h.bf16 %v7952_v28  ;;  %v8915_v6 = vld [vmem:[#allocation32_spill] sm:$0xff]  ;;  %v8916_v63 = vld [vmem:[#allocation35_spill] sm:$0xff] }
 0x28d   : > { %v2892_v26 = vsel %vm2862_vm15, %v2850_v29, %v4835_v61  ;;  %v4859_v24 = vunpack.i.l.bf16 %v7952_v28  ;;  %v2725_v3 = vsel %vm2694_vm11, %v2683_v57, %v4849_v38  ;;  %v2726_v56 = vsel %vm2694_vm11, %v2684_v43, %v4850_v46 }
 0x28e   : > { %v8107_v8 = vpop.permute.xlu1 %4912  ;;  %v2767_v53 = vsel %vm2736_vm12, %v2725_v3, %v4854_v21  ;;  %v2768_v51 = vsel %vm2736_vm12, %v2726_v56, %v4855_v16  ;;  %v4865_v39 = vunpack.i.h.bf16 %v7989_v47  ;;  %v4864_v48 = vunpack.i.l.bf16 %v7989_v47 }
 0x28f   : > { %v8119_v52 = vpop.permute.xlu0 %4927  ;;  %v4875_v28 = vunpack.i.h.bf16 %v8008_v30  ;;  %v4874_v58 = vunpack.i.l.bf16 %v8008_v30  ;;  %v1097_v45 = vsel %vm1087_vm9, %v1074_v50, %v1075_v33  ;;  %v1098_v41 = vsel %vm1087_vm9, %v1073_v40, %v1074_v50 }
 0x290   : > { %v2918_v36 = vpack.c.bf16 %v2892_v26, %v2891_v17  ;;  %v4870_v47 = vunpack.i.h.bf16 %v7975_v7  ;;  %v4869_v59 = vunpack.i.l.bf16 %v7975_v7  ;;  %v2809_v46 = vsel %vm2778_vm13, %v2767_v53, %v4859_v24 }
 0x291   : > { %v2810_v38 = vsel %vm2778_vm13, %v2768_v51, %v4860_v2  ;;  %v2851_v25 = vsel %vm2820_vm14, %v2809_v46, %v4864_v48  ;;  %v4880_v60 = vunpack.i.h.bf16 %v8001_v54  ;;  %v4879_v57 = vunpack.i.l.bf16 %v8001_v54 }
 0x292   : > { %v8129_v61 = vpop.permute.xlu1 %4922  ;;  %v2852_v43 = vsel %vm2820_vm14, %v2810_v38, %v4865_v39  ;;  %v2644_v40 = vsel %vm2610_vm8, %v1097_v45, %v4875_v28  ;;  %v2643_v16 = vsel %vm2610_vm8, %v1098_v41, %v4874_v58  ;;  %v4885_v7 = vunpack.i.h.bf16 %v8040_v14 }
 0x293   : > { %4211 = vmatmul.mubr.bf16.gmra.mrb[104].mxu1 %v2917_v62  ;;  %v8141_v30 = vpop.permute.xlu0 %4937  ;;  %v4884_v21 = vunpack.i.l.bf16 %v8040_v14  ;;  %v1076_v29 = vrot.slane %v8915_v6, 5  ;;  %v1077_v50 = vrot.slane %v8916_v63, 5  ;;  %v2893_v17 = vsel %vm2862_vm15, %v2851_v25, %v4869_v59 }
 0x294   : > { %4214 = vmatprep.mubr.msk.bf16.mxu1 %vm5110_vm0, %v8842_v22  ;;  %v2894_v54 = vsel %vm2862_vm15, %v2852_v43, %v4870_v47  ;;  %v4890_v26 = vunpack.i.h.bf16 %v8020_v49  ;;  %v4889_v2 = vunpack.i.l.bf16 %v8020_v49  ;;  %v2685_v24 = vsel %vm2652_vm10, %v2643_v16, %v4879_v57 }
 0x295   : > { %v2686_v14 = vsel %vm2652_vm10, %v2644_v40, %v4880_v60  ;;  %v2727_v3 = vsel %vm2694_vm11, %v2685_v24, %v4884_v21  ;;  %v4895_v53 = vunpack.i.h.bf16 %v8061_v9  ;;  %v4894_v51 = vunpack.i.l.bf16 %v8061_v9 }
 0x296   : > { %v8151_v62 = vpop.permute.xlu1 %4932  ;;  %v2728_v56 = vsel %vm2694_vm11, %v2686_v14, %v4885_v7  ;;  %v1096_v49 = vsel %vm1087_vm9, %v1075_v33, %v1076_v29  ;;  %v4910_v48 = vunpack.i.h.bf16 %v8077_v34  ;;  %v4909_v28 = vunpack.i.l.bf16 %v8077_v34 }
 0x297   : > { %v8155_v55 = vpop.permute.xlu0 %4947  ;;  %v1095_v58 = vsel %vm1087_vm9, %v1076_v29, %v1077_v50  ;;  %v4915_v45 = vunpack.i.h.bf16 %v8107_v8  ;;  %v4914_v41 = vunpack.i.l.bf16 %v8107_v8  ;;  %v2919_v9 = vpack.c.bf16 %v2894_v54, %v2893_v17  ;;  %v8917_v54 = vld [vmem:[#allocation37_spill] sm:$0xff] }
 0x298   : > { %v4900_v47 = vunpack.i.h.bf16 %v8051_v31  ;;  %v4899_v33 = vunpack.i.l.bf16 %v8051_v31  ;;  %v2769_v59 = vsel %vm2736_vm12, %v2727_v3, %v4889_v2  ;;  %v2770_v34 = vsel %vm2736_vm12, %v2728_v56, %v4890_v26 }
 0x299   : > { %v2811_v46 = vsel %vm2778_vm13, %v2769_v59, %v4894_v51  ;;  %v2812_v38 = vsel %vm2778_vm13, %v2770_v34, %v4895_v53  ;;  %v4905_v25 = vunpack.i.h.bf16 %v8091_v42  ;;  %v4904_v43 = vunpack.i.l.bf16 %v8091_v42 }
 0x29a   : > { %v8169_v39 = vpop.permute.xlu1 %4942  ;;  %v2646_v60 = vsel %vm2610_vm8, %v1095_v58, %v4910_v48  ;;  %v2645_v57 = vsel %vm2610_vm8, %v1096_v49, %v4909_v28  ;;  %v4920_v40 = vunpack.i.h.bf16 %v8101_v10  ;;  %v4919_v31 = vunpack.i.l.bf16 %v8101_v10 }
 0x29b   : > { %4215 = vmatmul.mubr.bf16.gmra.mrb[108].mxu1 %v2918_v36  ;;  %v2688_v16 = vsel %vm2652_vm10, %v2646_v60, %v4915_v45  ;;  %v2687_v7 = vsel %vm2652_vm10, %v2645_v57, %v4914_v41  ;;  %v4925_v21 = vunpack.i.h.bf16 %v8129_v61  ;;  %v4924_v6 = vunpack.i.l.bf16 %v8129_v61 }
 0x29c   : > { %4218 = vmatprep.mubr.msk.bf16.mxu1 %vm5110_vm0, %v8842_v22  ;;  %v2853_v42 = vsel %vm2820_vm14, %v2811_v46, %v4899_v33  ;;  %v2854_v17 = vsel %vm2820_vm14, %v2812_v38, %v4900_v47  ;;  %v1078_v10 = vrot.slane %v8917_v54, 5  ;;  %v1079_v26 = vrot.slane %v8795_v20, 5 }
 0x29d   : > { %v8181_v36 = vpop.permute.xlu0 %4957  ;;  %v2895_v24 = vsel %vm2862_vm15, %v2853_v42, %v4904_v43  ;;  %v2896_v61 = vsel %vm2862_vm15, %v2854_v17, %v4905_v25  ;;  %v4930_v14 = vunpack.i.h.bf16 %v8119_v52  ;;  %v4929_v3 = vunpack.i.l.bf16 %v8119_v52 }
 0x29e   : > { %v4953_v8 = vpop.permute.xlu1 %4952  ;;  %v2729_v56 = vsel %vm2694_vm11, %v2687_v7, %v4919_v31  ;;  %v2730_v53 = vsel %vm2694_vm11, %v2688_v16, %v4920_v40  ;;  %v4935_v20 = vunpack.i.h.bf16 %v8151_v62  ;;  %v4934_v48 = vunpack.i.l.bf16 %v8151_v62 }
 0x29f   : > { %v2771_v51 = vsel %vm2736_vm12, %v2729_v56, %v4924_v6  ;;  %v2772_v49 = vsel %vm2736_vm12, %v2730_v53, %v4925_v21  ;;  %v4945_v58 = vunpack.i.h.bf16 %v8169_v39  ;;  %v4944_v45 = vunpack.i.l.bf16 %v8169_v39 }
 0x2a0   : > { %v1093_v52 = vsel %vm1087_vm9, %v1078_v10, %v1079_v26  ;;  %v1094_v41 = vsel %vm1087_vm9, %v1077_v50, %v1078_v10  ;;  %v2920_v47 = vpack.c.bf16 %v2896_v61, %v2895_v24  ;;  %v4940_v33 = vunpack.i.h.bf16 %v8141_v30 }
 0x2a1   : > { %v8199_v29 = vpop.permute.xlu0 %4967  ;;  %v4939_v62 = vunpack.i.l.bf16 %v8141_v30  ;;  %v2813_v59 = vsel %vm2778_vm13, %v2771_v51, %v4929_v3  ;;  %v2814_v34 = vsel %vm2778_vm13, %v2772_v49, %v4930_v14  ;;  %v4950_v38 = vunpack.i.h.bf16 %v8155_v55 }
 0x2a2   : > { %v8207_v2 = vpop.permute.xlu1 %4962  ;;  %v2855_v39 = vsel %vm2820_vm14, %v2813_v59, %v4934_v48  ;;  %v2856_v46 = vsel %vm2820_vm14, %v2814_v34, %v4935_v20  ;;  %v4949_v63 = vunpack.i.l.bf16 %v8155_v55  ;;  %v2648_v25 = vsel %vm2610_vm8, %v1093_v52, %v4945_v58 }
 0x2a3   : > { %4219 = vmatmul.mubr.bf16.gmra.mrb[112].mxu1 %v2919_v9  ;;  %v2647_v43 = vsel %vm2610_vm8, %v1094_v41, %v4944_v45  ;;  %v4955_v30 = vunpack.i.h.bf16 %v4953_v8  ;;  %v4954_v60 = vunpack.i.l.bf16 %v4953_v8  ;;  %v1081_v57 = vrot.slane %v6355_v35, 5 }
 0x2a4   : > { %4222 = vmatprep.mubr.msk.bf16.mxu1 %vm5110_vm0, %v8842_v22  ;;  %v1080_v31 = vrot.slane %v8791_v15, 5  ;;  %v2897_v16 = vsel %vm2862_vm15, %v2855_v39, %v4939_v62  ;;  %v2898_v55 = vsel %vm2862_vm15, %v2856_v46, %v4940_v33  ;;  %v4960_v7 = vunpack.i.h.bf16 %v8181_v36 }
 0x2a5   : > { %v4959_v21 = vunpack.i.l.bf16 %v8181_v36  ;;  %v2689_v6 = vsel %vm2652_vm10, %v2647_v43, %v4949_v63  ;;  %v2690_v8 = vsel %vm2652_vm10, %v2648_v25, %v4950_v38  ;;  %v4970_v54 = vunpack.i.h.bf16 %v8199_v29 }
 0x2a6   : > { %v4973_v9 = vpop.permute.xlu1 %4972  ;;  %v2731_v17 = vsel %vm2694_vm11, %v2689_v6, %v4954_v60  ;;  %v2732_v35 = vsel %vm2694_vm11, %v2690_v8, %v4955_v30  ;;  %v4969_v15 = vunpack.i.l.bf16 %v8199_v29  ;;  %v1091_v10 = vsel %vm1087_vm9, %v1080_v31, %v1081_v57 }
 0x2a7   : > { %v8219_v28 = vpop.permute.xlu0 %4977  ;;  %v4975_v24 = vunpack.i.h.bf16 %v4973_v9  ;;  %v4974_v61 = vunpack.i.l.bf16 %v4973_v9  ;;  %v2921_v36 = vpack.c.bf16 %v2898_v55, %v2897_v16  ;;  %v1092_v3 = vsel %vm1087_vm9, %v1079_v26, %v1080_v31 }
 0x2a8   : > { %v4965_v56 = vunpack.i.h.bf16 %v8207_v2  ;;  %v4964_v53 = vunpack.i.l.bf16 %v8207_v2  ;;  %v8918_v51 = vrot.slane %v6369_v27, 5  ;;  %v2773_v29 = vsel %vm2736_vm12, %v2731_v17, %v4959_v21 }
 0x2a9   : > { %v2774_v20 = vsel %vm2736_vm12, %v2732_v35, %v4960_v7  ;;  %v2650_v52 = vsel %vm2610_vm8, %v1091_v10, %v4970_v54  ;;  %v2649_v26 = vsel %vm2610_vm8, %v1092_v3, %v4969_v15  ;;  %v4980_v41 = vunpack.i.h.bf16 %v8219_v28 }
 0x2aa   : > { %v1090_v49 = vsel %vm1087_vm9, %v1081_v57, %v8918_v51  ;;  %v4979_v2 = vunpack.i.l.bf16 %v8219_v28  ;;  %v2692_v27 = vsel %vm2652_vm10, %v2650_v52, %v4975_v24  ;;  %v2691_v9 = vsel %vm2652_vm10, %v2649_v26, %v4974_v61  ;;  %v8306_v26 = vld [vmem:[%s8481_s4] ss:$0 sm:$0xff] }
 0x2ab   : > { %4223 = vmatmul.mubr.bf16.gmra.mrb[116].mxu1 %v2920_v47  ;;  %v8237_v50 = vpop.permute.xlu0 %1829  ;;  %v4983_v40 = vpop.permute.xlu1 %4982  ;;  %v2815_v59 = vsel %vm2778_vm13, %v2773_v29, %v4964_v53  ;;  %v2816_v34 = vsel %vm2778_vm13, %v2774_v20, %v4965_v56  ;;  %v2734_v60 = vsel %vm2694_vm11, %v2692_v27, %v4980_v41  ;;  %v8919_v41 = vld [vmem:[#allocation54_spill] sm:$0xff] }
 0x2ac   : > { %4226 = vmatprep.mubr.msk.bf16.mxu1 %vm5110_vm0, %v8842_v22  ;;  %v4985_v47 = vunpack.i.h.bf16 %v4983_v40  ;;  %v4984_v33 = vunpack.i.l.bf16 %v4983_v40  ;;  %v2733_v30 = vsel %vm2694_vm11, %v2691_v9, %v4979_v2 }
 0x2ae   : > { %v2775_v31 = vsel %vm2736_vm12, %v2733_v30, %v4984_v33  ;;  %v2776_v16 = vsel %vm2736_vm12, %v2734_v60, %v4985_v47  ;;  %v8920_v33 = vld [vmem:[#allocation64_spill] sm:$0xff] }
 0x2af   : > { %v4988_v42 = vpop.permute.xlu0 %4987 }
 0x2b0   : > { %v4990_v48 = vunpack.i.h.bf16 %v4988_v42  ;;  %v4989_v58 = vunpack.i.l.bf16 %v4988_v42 }
 0x2b1   : > { %v1666_v14 = vpop.permute.xlu1 %1665 }
 0x2b2   : > { %v2857_v38 = vsel %vm2820_vm14, %v2815_v59, %v4989_v58  ;;  %v2858_v28 = vsel %vm2820_vm14, %v2816_v34, %v4990_v48  ;;  %v2651_v55 = vsel %vm2610_vm8, %v1090_v49, %v1666_v14 }
 0x2b3   : > { %4227 = vmatmul.mubr.bf16.gmra.mrb[120].mxu1 %v2921_v36  ;;  %v4998_v45 = vpop.permute.xlu0 %4997  ;;  %v2693_v61 = vsel %vm2652_vm10, %v2651_v55, %v8237_v50 }
 0x2b4   : > { %4230 = vmatprep.mubr.msk.bf16.mxu1 %vm5110_vm0, %v8842_v22  ;;  %v5000_v63 = vunpack.i.h.bf16 %v4998_v45  ;;  %v4999_v25 = vunpack.i.l.bf16 %v4998_v45 }
 0x2b5   : > { %v4993_v62 = vpop.permute.xlu1 %4992 }
 0x2b6   : > { %v4995_v39 = vunpack.i.h.bf16 %v4993_v62  ;;  %v4994_v46 = vunpack.i.l.bf16 %v4993_v62  ;;  %v2817_v35 = vsel %vm2778_vm13, %v2775_v31, %v4999_v25  ;;  %v2818_v54 = vsel %vm2778_vm13, %v2776_v16, %v5000_v63  ;;  %v8921_v63 = vld [vmem:[#allocation66_spill] sm:$0xff] }
 0x2b7   : > { %v5008_v43 = vpop.permute.xlu0 %5007 }
 0x2b8   : > { %v2899_v57 = vsel %vm2862_vm15, %v2857_v38, %v4994_v46  ;;  %v2900_v40 = vsel %vm2862_vm15, %v2858_v28, %v4995_v39  ;;  %v5010_v6 = vunpack.i.h.bf16 %v5008_v43  ;;  %v5009_v8 = vunpack.i.l.bf16 %v5008_v43 }
 0x2b9   : > { %v5003_v7 = vpop.permute.xlu1 %5002  ;;  %v2922_v21 = vpack.c.bf16 %v2900_v40, %v2899_v57  ;;  %v8922_v57 = vld [vmem:[#allocation63_spill] sm:$0xff] }
 0x2ba   : > { %v5005_v42 = vunpack.i.h.bf16 %v5003_v7  ;;  %v5004_v17 = vunpack.i.l.bf16 %v5003_v7 }
 0x2bb   : > { %4231 = vmatmul.mubr.bf16.gmra.mrb[124].mxu1 %v2922_v21  ;;  %v2117_v24 = vpop.permute.xlu0 %2116 }
 0x2bc   : > { %v2859_v15 = vsel %vm2820_vm14, %v2817_v35, %v5004_v17  ;;  %v2860_v10 = vsel %vm2820_vm14, %v2818_v54, %v5005_v42  ;;  %4234 = vmatprep.mubr.msk.bf16.mxu1 %vm5110_vm0, %v8842_v22  ;;  %v3858_v35 = vld.sshfl [vmem:[%s8483_s6] sm:$0x13 pattern:$0x75316420] }
 0x2bd   : > { %v1953_v14 = vpop.permute.xlu1 %1952  ;;  %v2901_v3 = vsel %vm2862_vm15, %v2859_v15, %v5009_v8  ;;  %v2902_v56 = vsel %vm2862_vm15, %v2860_v10, %v5010_v6  ;;  %v8923_v8 = vld [vmem:[#allocation67_spill] sm:$0xff] }
 0x2be   : > { %v2735_v36 = vsel %vm2694_vm11, %v2693_v61, %v1953_v14  ;;  %v2923_v49 = vpack.c.bf16 %v2902_v56, %v2901_v3  ;;  %v8924_v10 = vld [vmem:[#allocation11_spill] sm:$0xff]  ;;  %v5119_v14 = vmov 1966171168   ;;  %v3600_v56 = vcombine.high %v3858_v35, %v3858_v35 }
 0x2bf   : > { %v2777_v53 = vsel %vm2736_vm12, %v2735_v36, %v2117_v24  ;;  %v2404_v29 = vpop.permute.xlu0 %2403  ;;  %v3602_v36 = vunpack.c.l.s4 %v5119_v14 }
 0x2c1   : > { %v2281_v51 = vpop.permute.xlu1 %2280 }
 0x2c2   : > { %v2819_v20 = vsel %vm2778_vm13, %v2777_v53, %v2281_v51  ;;  %v3603_v53 = vunpack.c.0.s8 %v3602_v36 }
 0x2c3   : > { %4235 = vmatmul.mubr.bf16.gmra.mrb[128].mxu1 %v2923_v49  ;;  %v2861_v50 = vsel %vm2820_vm14, %v2819_v20, %v2404_v29 }
 0x2c4   : > { %4238 = vmatprep.mubr.msk.bf16.mxu1 %vm5110_vm0, %v8842_v22  ;;  %v3606_v29 = vsub.s32 %v3603_v53, %v5493_v44 }
 0x2c5   : > { %v2568_v48 = vpop.permute.xlu1 %2567 }
 0x2c6   : > { %v2903_v58 = vsel %vm2862_vm15, %v2861_v50, %v2568_v48  ;;  %v8925_v48 = vld [vmem:[#allocation13_spill] sm:$0xff] }
 0x2c7   : > { %v2924_v45 = vpack.c.bf16 %v2903_v58, %v2903_v58 }
 0x2cb   : > { %4239 = vmatmul.mubr.bf16.gmra.mrb[132].mxu1 %v2924_v45 }
 0x2fa   : > { %v3315_v52 = vpop.f32.mrb[52].mxu1 }
 0x2fb   : > { %v3316_v2 = vadd.f32 %v3315_v52, %v8919_v41  ;;  %v4160_v27 = vpop.f32.mrb[53].mxu1  ;;  %v8331_v52 = vrot.slane %v3858_v35, %v3606_v29  ;;  %v3614_v41 = vrot.slane %v3600_v56, %v3606_v29  ;;  %v8931_v56 = vld [vmem:[#allocation33_spill] sm:$0xff] }
 0x2fc   : > { %v3318_v9 = vpop.f32.mrb[54].mxu1 }
 0x2fd   : > { %v3488_v47 = vadd.f32 %v8306_v26, %v3316_v2  ;;  %v3319_v62 = vadd.f32 %v3318_v9, %v8920_v33  ;;  %v4161_v59 = vpop.f32.mrb[55].mxu1  ;;  %v8926_v9 = vld [vmem:[#allocation5_spill] sm:$0xff]  ;;  %3658 = vmatprep.mubr.bf16.mxu0 %v3614_v41 }
 0x2ff   : > { %v3489_v34 = vadd.f32 %v8306_v26, %v3319_v62  ;;  %v3529_v39 = vmax.f32 %v3488_v47, 0.0 }
 0x301   : > { %v3530_v46 = vmax.f32 %v3489_v34, 0.0 }
 0x303   : > { %v8312_v28 = vpack.c.bf16 %v3530_v46, %v3529_v39  ;;  %v8927_v46 = vld [vmem:[#allocation6_spill] sm:$0xff] }
 0x304   : > { %v3323_v38 = vpop.f32.mrb[56].mxu1 }
 0x305   : > { %v3324_v25 = vadd.f32 %v3323_v38, %v8921_v63  ;;  %v4164_v43 = vpop.f32.mrb[57].mxu1 }
 0x306   : > { %v3326_v30 = vpop.f32.mrb[58].mxu1 }
 0x307   : > { %v3490_v60 = vadd.f32 %v8306_v26, %v3324_v25  ;;  %v3327_v40 = vadd.f32 %v3326_v30, %v8922_v57  ;;  %v4165_v31 = vpop.f32.mrb[59].mxu1  ;;  %v8928_v30 = vld [vmem:[#allocation8_spill] sm:$0xff] }
 0x309   : > { %v3491_v16 = vadd.f32 %v8306_v26, %v3327_v40  ;;  %v3531_v55 = vmax.f32 %v3490_v60, 0.0 }
 0x30b   : > { %v3532_v7 = vmax.f32 %v3491_v16, 0.0 }
 0x30d   : > { %v8318_v6 = vpack.c.bf16 %v3532_v7, %v3531_v55 }
 0x30e   : > { %v3331_v21 = vpop.f32.mrb[60].mxu1 }
 0x30f   : > { %v3332_v42 = vadd.f32 %v3331_v21, %v8923_v8  ;;  %v4168_v17 = vpop.f32.mrb[61].mxu1  ;;  %v8929_v21 = vld [vmem:[#allocation31_spill] sm:$0xff] }
 0x310   : > { %v3334_v54 = vpop.f32.mrb[62].mxu1 }
 0x311   : > { %v3492_v15 = vadd.f32 %v8306_v26, %v3332_v42  ;;  %v3335_v24 = vadd.f32 %v3334_v54, %v8924_v10  ;;  %v4169_v61 = vpop.f32.mrb[63].mxu1  ;;  %v8930_v54 = vld [vmem:[#allocation14_spill] sm:$0xff] }
 0x313   : > { %v3493_v3 = vadd.f32 %v8306_v26, %v3335_v24  ;;  %v3533_v51 = vmax.f32 %v3492_v15, 0.0 }
 0x315   : > { %v3534_v49 = vmax.f32 %v3493_v3, 0.0 }
 0x316   : > { %v3339_v20 = vpop.f32.mrb[64].mxu1 }
 0x317   : > { %v8328_v50 = vpack.c.bf16 %v3534_v49, %v3533_v51  ;;  %v3340_v58 = vadd.f32 %v3339_v20, %v8925_v48  ;;  %v4172_v45 = vpop.f32.mrb[65].mxu1  ;;  %v8932_v20 = vld [vmem:[#allocation34_spill] sm:$0xff] }
 0x318   : > { %v3342_v2 = vpop.f32.mrb[66].mxu1 }
 0x319   : > { %v3494_v27 = vadd.f32 %v8306_v26, %v3340_v58  ;;  %v3343_v47 = vadd.f32 %v3342_v2, %v8926_v9  ;;  %v4173_v33 = vpop.f32.mrb[67].mxu1 }
 0x31b   : > { %v3495_v62 = vadd.f32 %v8306_v26, %v3343_v47  ;;  %v3535_v59 = vmax.f32 %v3494_v27, 0.0 }
 0x31d   : > { %v3536_v44 = vmax.f32 %v3495_v62, 0.0 }
 0x31e   : > { %v3347_v34 = vpop.f32.mrb[68].mxu1 }
 0x31f   : > { %v8336_v39 = vpack.c.bf16 %v3536_v44, %v3535_v59  ;;  %v3348_v38 = vadd.f32 %v3347_v34, %v8927_v46  ;;  %v4176_v63 = vpop.f32.mrb[69].mxu1 }
 0x320   : > { %v3350_v25 = vpop.f32.mrb[70].mxu1 }
 0x321   : > { %v3496_v43 = vadd.f32 %v8306_v26, %v3348_v38  ;;  %v3351_v60 = vadd.f32 %v3350_v25, %v8928_v30  ;;  %v4177_v57 = vpop.f32.mrb[71].mxu1 }
 0x323   : > { %v3497_v40 = vadd.f32 %v8306_v26, %v3351_v60  ;;  %v3537_v31 = vmax.f32 %v3496_v43, 0.0 }
 0x325   : > { %v3538_v16 = vmax.f32 %v3497_v40, 0.0 }
 0x326   : > { %v3355_v55 = vpop.f32.mrb[72].mxu1 }
 0x327   : > { %v8342_v7 = vpack.c.bf16 %v3538_v16, %v3537_v31  ;;  %v3356_v8 = vadd.f32 %v3355_v55, %v8929_v21  ;;  %v4180_v42 = vpop.f32.mrb[73].mxu1 }
 0x328   : > { %v3358_v17 = vpop.f32.mrb[74].mxu1 }
 0x329   : > { %v3498_v35 = vadd.f32 %v8306_v26, %v3356_v8  ;;  %v3359_v15 = vadd.f32 %v3358_v17, %v8930_v54  ;;  %v4181_v10 = vpop.f32.mrb[75].mxu1 }
 0x32b   : > { %v3499_v24 = vadd.f32 %v8306_v26, %v3359_v15  ;;  %v3539_v61 = vmax.f32 %v3498_v35, 0.0 }
 0x32d   : > { %v3540_v14 = vmax.f32 %v3499_v24, 0.0 }
 0x32e   : > { %v3363_v36 = vpop.f32.mrb[76].mxu1 }
 0x32f   : > { %v8348_v3 = vpack.c.bf16 %v3540_v14, %v3539_v61  ;;  %v3364_v53 = vadd.f32 %v3363_v36, %v8931_v56  ;;  %v4184_v51 = vpop.f32.mrb[77].mxu1  ;;  %v8933_v14 = vld [vmem:[#allocation44_spill] sm:$0xff] }
 0x330   : > { %v3366_v49 = vpop.f32.mrb[78].mxu1 }
 0x331   : > { %v3500_v29 = vadd.f32 %v8306_v26, %v3364_v53  ;;  %v3367_v48 = vadd.f32 %v3366_v49, %v8932_v20  ;;  %v4185_v58 = vpop.f32.mrb[79].mxu1  ;;  %v8934_v49 = vld [vmem:[#allocation36_spill] sm:$0xff] }
 0x333   : > { %v3501_v45 = vadd.f32 %v8306_v26, %v3367_v48  ;;  %v3541_v41 = vmax.f32 %v3500_v29, 0.0 }
 0x335   : > { %v3542_v2 = vmax.f32 %v3501_v45, 0.0  ;;  %v8935_v45 = vld [vmem:[#allocation39_spill] sm:$0xff] }
 0x336   : > { %v3371_v27 = vpop.f32.mrb[80].mxu1 }
 0x337   : > { %v8354_v9 = vpack.c.bf16 %v3542_v2, %v3541_v41  ;;  %v3372_v47 = vadd.f32 %v3371_v27, %v7518_v12  ;;  %v4188_v33 = vpop.f32.mrb[81].mxu1 }
 0x338   : > { %v3374_v62 = vpop.f32.mrb[82].mxu1 }
 0x339   : > { %v3502_v59 = vadd.f32 %v8306_v26, %v3372_v47  ;;  %v3375_v44 = vadd.f32 %v3374_v62, %v7545_v32  ;;  %v4189_v34 = vpop.f32.mrb[83].mxu1  ;;  %v8936_v62 = vld [vmem:[#allocation40_spill] sm:$0xff] }
 0x33b   : > { %v3503_v46 = vadd.f32 %v8306_v26, %v3375_v44  ;;  %v3543_v38 = vmax.f32 %v3502_v59, 0.0 }
 0x33d   : > { %v3544_v63 = vmax.f32 %v3503_v46, 0.0 }
 0x33e   : > { %v3379_v25 = vpop.f32.mrb[84].mxu1 }
 0x33f   : > { %v8360_v43 = vpack.c.bf16 %v3544_v63, %v3543_v38  ;;  %v3380_v30 = vadd.f32 %v3379_v25, %v7587_v13  ;;  %v4192_v60 = vpop.f32.mrb[85].mxu1  ;;  %v8937_v63 = vld [vmem:[#allocation42_spill] sm:$0xff] }
 0x340   : > { %v3382_v57 = vpop.f32.mrb[86].mxu1 }
 0x341   : > { %v3504_v12 = vadd.f32 %v8306_v26, %v3380_v30  ;;  %v3383_v40 = vadd.f32 %v3382_v57, %v7607_v5  ;;  %v4193_v31 = vpop.f32.mrb[87].mxu1 }
 0x343   : > { %v3505_v16 = vadd.f32 %v8306_v26, %v3383_v40  ;;  %v3545_v32 = vmax.f32 %v3504_v12, 0.0  ;;  %v8938_v40 = vld [vmem:[#allocation49_spill] sm:$0xff] }
 0x345   : > { %v3546_v55 = vmax.f32 %v3505_v16, 0.0 }
 0x346   : > { %v3387_v21 = vpop.f32.mrb[88].mxu1 }
 0x347   : > { %v3388_v8 = vadd.f32 %v3387_v21, %v7650_v37  ;;  %v4196_v42 = vpop.f32.mrb[89].mxu1  ;;  %v3578_v17 = vpack.c.bf16 %v3546_v55, %v3545_v32 }
 0x348   : > { %v3390_v35 = vpop.f32.mrb[90].mxu1 }
 0x349   : > { %v3506_v54 = vadd.f32 %v8306_v26, %v3388_v8  ;;  %v3391_v13 = vadd.f32 %v3390_v35, %v7667_v4  ;;  %v4197_v15 = vpop.f32.mrb[91].mxu1  ;;  %3938 = vmatprep.subr.bf16.mxu0 %v3578_v17  ;;  %v8939_v8 = vld [vmem:[#allocation43_spill] sm:$0xff] }
 0x34a   : > { %3939 = vmatpush3.bf16.msra.mxu0 %v8312_v28  ;;  %v8940_v15 = vld [vmem:[#allocation41_spill] sm:$0xff] }
 0x34b   : > { %v3507_v5 = vadd.f32 %v8306_v26, %v3391_v13  ;;  %v3547_v10 = vmax.f32 %v3506_v54, 0.0 }
 0x34d   : > { %v3548_v24 = vmax.f32 %v3507_v5, 0.0 }
 0x34e   : > { %v3395_v61 = vpop.f32.mrb[92].mxu1 }
 0x34f   : > { %v3396_v36 = vadd.f32 %v3395_v61, %v8933_v14  ;;  %v4200_v56 = vpop.f32.mrb[93].mxu1  ;;  %v3579_v37 = vpack.c.bf16 %v3548_v24, %v3547_v10 }
 0x350   : > { %v3398_v53 = vpop.f32.mrb[94].mxu1 }
 0x351   : > { %v3508_v51 = vadd.f32 %v8306_v26, %v3396_v36  ;;  %v3399_v29 = vadd.f32 %v3398_v53, %v8934_v49  ;;  %v4201_v20 = vpop.f32.mrb[95].mxu1  ;;  %3940 = vmatprep.subr.bf16.mxu0 %v3579_v37  ;;  %v8941_v36 = vld [vmem:[#allocation45_spill] sm:$0xff] }
 0x352   : > { %3941 = vmatpush3.bf16.msra.mxu0 %v8318_v6 }
 0x353   : > { %v3509_v4 = vadd.f32 %v8306_v26, %v3399_v29  ;;  %v3549_v28 = vmax.f32 %v3508_v51, 0.0  ;;  %v8942_v29 = vld [vmem:[#allocation38_spill] sm:$0xff] }
 0x355   : > { %v3550_v48 = vmax.f32 %v3509_v4, 0.0 }
 0x356   : > { %v3403_v58 = vpop.f32.mrb[96].mxu1 }
 0x357   : > { %v3404_v41 = vadd.f32 %v3403_v58, %v8935_v45  ;;  %v4204_v2 = vpop.f32.mrb[97].mxu1  ;;  %v3580_v27 = vpack.c.bf16 %v3550_v48, %v3549_v28  ;;  %v8943_v45 = vld [vmem:[#allocation46_spill] sm:$0xff] }
 0x358   : > { %v3406_v47 = vpop.f32.mrb[98].mxu1 }
 0x359   : > { %v3510_v33 = vadd.f32 %v8306_v26, %v3404_v41  ;;  %v3407_v59 = vadd.f32 %v3406_v47, %v8936_v62  ;;  %v4205_v44 = vpop.f32.mrb[99].mxu1  ;;  %3942 = vmatprep.subr.bf16.mxu0 %v3580_v27  ;;  %v8944_v62 = vld [vmem:[#allocation48_spill] sm:$0xff] }
 0x35a   : > { %3943 = vmatpush3.bf16.msra.mxu0 %v8328_v50 }
 0x35b   : > { %v3511_v6 = vadd.f32 %v8306_v26, %v3407_v59  ;;  %v3551_v34 = vmax.f32 %v3510_v33, 0.0 }
 0x35d   : > { %v3552_v46 = vmax.f32 %v3511_v6, 0.0 }
 0x35e   : > { %v3411_v38 = vpop.f32.mrb[100].mxu1 }
 0x35f   : > { %v3412_v25 = vadd.f32 %v3411_v38, %v8937_v63  ;;  %v4208_v30 = vpop.f32.mrb[101].mxu1  ;;  %v3581_v60 = vpack.c.bf16 %v3552_v46, %v3551_v34  ;;  %v8945_v38 = vld [vmem:[#allocation51_spill] sm:$0xff] }
 0x360   : > { %v3414_v57 = vpop.f32.mrb[102].mxu1 }
 0x361   : > { %v3512_v12 = vadd.f32 %v8306_v26, %v3412_v25  ;;  %v3415_v31 = vadd.f32 %v3414_v57, %v8938_v40  ;;  %v4209_v16 = vpop.f32.mrb[103].mxu1  ;;  %3944 = vmatprep.subr.bf16.mxu0 %v3581_v60 }
 0x362   : > { %3945 = vmatpush3.bf16.msra.mxu0 %v8336_v39 }
 0x363   : > { %v3513_v50 = vadd.f32 %v8306_v26, %v3415_v31  ;;  %v3553_v32 = vmax.f32 %v3512_v12, 0.0  ;;  %v8946_v12 = vld [vmem:[#allocation52_spill] sm:$0xff] }
 0x365   : > { %v3554_v55 = vmax.f32 %v3513_v50, 0.0 }
 0x366   : > { %v3419_v21 = vpop.f32.mrb[104].mxu1 }
 0x367   : > { %v3420_v42 = vadd.f32 %v3419_v21, %v8939_v8  ;;  %v4212_v17 = vpop.f32.mrb[105].mxu1  ;;  %v3582_v35 = vpack.c.bf16 %v3554_v55, %v3553_v32 }
 0x368   : > { %v3422_v54 = vpop.f32.mrb[106].mxu1 }
 0x369   : > { %v3514_v13 = vadd.f32 %v8306_v26, %v3420_v42  ;;  %v3423_v5 = vadd.f32 %v3422_v54, %v8940_v15  ;;  %v4213_v10 = vpop.f32.mrb[107].mxu1  ;;  %3946 = vmatprep.subr.bf16.mxu0 %v3582_v35 }
 0x36a   : > { %3947 = vmatpush3.bf16.msra.mxu0 %v8342_v7 }
 0x36b   : > { %v3515_v39 = vadd.f32 %v8306_v26, %v3423_v5  ;;  %v3555_v24 = vmax.f32 %v3514_v13, 0.0 }
 0x36d   : > { %v3556_v61 = vmax.f32 %v3515_v39, 0.0  ;;  %v8947_v39 = vld [vmem:[#allocation47_spill] sm:$0xff] }
 0x36e   : > { %v3427_v14 = vpop.f32.mrb[108].mxu1 }
 0x36f   : > { %v3428_v56 = vadd.f32 %v3427_v14, %v8941_v36  ;;  %v4216_v37 = vpop.f32.mrb[109].mxu1  ;;  %v3583_v53 = vpack.c.bf16 %v3556_v61, %v3555_v24 }
 0x370   : > { %v3430_v51 = vpop.f32.mrb[110].mxu1 }
 0x371   : > { %v3516_v49 = vadd.f32 %v8306_v26, %v3428_v56  ;;  %v3431_v20 = vadd.f32 %v3430_v51, %v8942_v29  ;;  %v4217_v4 = vpop.f32.mrb[111].mxu1  ;;  %3948 = vmatprep.subr.bf16.mxu0 %v3583_v53 }
 0x372   : > { %3949 = vmatpush3.bf16.msra.mxu0 %v8348_v3 }
 0x373   : > { %v3517_v7 = vadd.f32 %v8306_v26, %v3431_v20  ;;  %v3557_v28 = vmax.f32 %v3516_v49, 0.0 }
 0x375   : > { %v3558_v48 = vmax.f32 %v3517_v7, 0.0 }
 0x376   : > { %v3435_v58 = vpop.f32.mrb[112].mxu1 }
 0x377   : > { %v3436_v41 = vadd.f32 %v3435_v58, %v8943_v45  ;;  %v4220_v2 = vpop.f32.mrb[113].mxu1  ;;  %v3584_v27 = vpack.c.bf16 %v3558_v48, %v3557_v28 }
 0x378   : > { %v3438_v47 = vpop.f32.mrb[114].mxu1 }
 0x379   : > { %v3518_v33 = vadd.f32 %v8306_v26, %v3436_v41  ;;  %v3439_v59 = vadd.f32 %v3438_v47, %v8944_v62  ;;  %v4221_v44 = vpop.f32.mrb[115].mxu1  ;;  %3950 = vmatprep.subr.bf16.mxu0 %v3584_v27 }
 0x37a   : > { %3951 = vmatpush3.bf16.msra.mxu0 %v8354_v9  ;;  %v3615_v44 = vcombine.high %v8331_v52, %v8331_v52 }
 0x37b   : > { %v3519_v3 = vadd.f32 %v8306_v26, %v3439_v59  ;;  %v3559_v6 = vmax.f32 %v3518_v33, 0.0 }
 0x37d   : > { %v3560_v34 = vmax.f32 %v3519_v3, 0.0 }
 0x37e   : > { %v3443_v46 = vpop.f32.mrb[116].mxu1 }
 0x37f   : > { %v3444_v63 = vadd.f32 %v3443_v46, %v8945_v38  ;;  %v4224_v25 = vpop.f32.mrb[117].mxu1  ;;  %v3585_v30 = vpack.c.bf16 %v3560_v34, %v3559_v6 }
 0x380   : > { %v3446_v60 = vpop.f32.mrb[118].mxu1 }
 0x381   : > { %v3520_v57 = vadd.f32 %v8306_v26, %v3444_v63  ;;  %v3447_v40 = vadd.f32 %v3446_v60, %v8946_v12  ;;  %v4225_v31 = vpop.f32.mrb[119].mxu1  ;;  %3952 = vmatprep.subr.bf16.mxu0 %v3585_v30 }
 0x382   : > { %3953 = vmatpush3.bf16.msra.mxu0 %v8360_v43 }
 0x383   : > { %v3521_v9 = vadd.f32 %v8306_v26, %v3447_v40  ;;  %4242 = vmatprep.subr.bf16.mxu0 %v8842_v22  ;;  %v3561_v16 = vmax.f32 %v3520_v57, 0.0 }
 0x385   : > { %v3562_v50 = vmax.f32 %v3521_v9, 0.0  ;;  %3659 = vmatmul.mubr.bf16.vlgmr.msra.gmra.mrb[116].mxu0 %v8331_v52 }
 0x386   : > { %v3451_v32 = vpop.f32.mrb[120].mxu1  ;;  %4252 = vmatprep.mubr.msk.bf16.mxu0 %vm5110_vm0, %v8842_v22  ;;  %vm3622_vm0 = vcmask 1043456  }
 0x387   : > { %v3586_v55 = vpack.c.bf16 %v3562_v50, %v3561_v16  ;;  %v3452_v21 = vadd.f32 %v3451_v32, %v7926_v1  ;;  %v4228_v8 = vpop.f32.mrb[121].mxu1 }
 0x388   : > { %v3454_v42 = vpop.f32.mrb[122].mxu1 }
 0x389   : > { %v3522_v17 = vadd.f32 %v8306_v26, %v3452_v21  ;;  %v3455_v43 = vadd.f32 %v3454_v42, %v7942_v11  ;;  %v4229_v35 = vpop.f32.mrb[123].mxu1  ;;  %4243 = vmatpush3.bf16.msra.mxu0 %v3586_v55 }
 0x38a   : > { %4244 = vmatprep.subr.bf16.mxu0 %v8842_v22 }
 0x38b   : > { %v3523_v54 = vadd.f32 %v8306_v26, %v3455_v43  ;;  %v3563_v13 = vmax.f32 %v3522_v17, 0.0 }
 0x38d   : > { %v3564_v15 = vmax.f32 %v3523_v54, 0.0 }
 0x38e   : > { %v3459_v5 = vpop.f32.mrb[124].mxu1 }
 0x38f   : > { %v3587_v10 = vpack.c.bf16 %v3564_v15, %v3563_v13  ;;  %v3460_v24 = vadd.f32 %v3459_v5, %v8947_v39  ;;  %v4232_v61 = vpop.f32.mrb[125].mxu1 }
 0x390   : > { %v3462_v1 = vpop.f32.mrb[126].mxu1 }
 0x391   : > { %v3524_v14 = vadd.f32 %v8306_v26, %v3460_v24  ;;  %v3463_v36 = vadd.f32 %v3462_v1, %v7995_v0  ;;  %v4233_v56 = vpop.f32.mrb[127].mxu1  ;;  %4245 = vmatpush3.bf16.msra.mxu0 %v3587_v10 }
 0x392   : > { %4246 = vmatprep.subr.bf16.mxu0 %v8842_v22 }
 0x393   : > { %v3525_v11 = vadd.f32 %v8306_v26, %v3463_v36  ;;  %v3565_v37 = vmax.f32 %v3524_v14, 0.0 }
 0x395   : > { %v3566_v53 = vmax.f32 %v3525_v11, 0.0 }
 0x396   : > { %v3467_v51 = vpop.f32.mrb[128].mxu1 }
 0x397   : > { %v3588_v49 = vpack.c.bf16 %v3566_v53, %v3565_v37  ;;  %v3468_v29 = vadd.f32 %v3467_v51, %v8026_v18  ;;  %v4236_v20 = vpop.f32.mrb[129].mxu1 }
 0x398   : > { %v3470_v4 = vpop.f32.mrb[130].mxu1 }
 0x399   : > { %v3526_v7 = vadd.f32 %v8306_v26, %v3468_v29  ;;  %v3471_v28 = vadd.f32 %v3470_v4, %v8046_v19  ;;  %v4237_v48 = vpop.f32.mrb[131].mxu1  ;;  %4247 = vmatpush3.bf16.msra.mxu0 %v3588_v49 }
 0x39a   : > { %4248 = vmatprep.subr.bf16.mxu0 %v8842_v22 }
 0x39b   : > { %v3527_v0 = vadd.f32 %v8306_v26, %v3471_v28  ;;  %v3567_v58 = vmax.f32 %v3526_v7, 0.0 }
 0x39d   : > { %v3568_v45 = vmax.f32 %v3527_v0, 0.0 }
 0x39e   : > { %v3475_v41 = vpop.f32.mrb[132].mxu1 }
 0x39f   : > { %v3589_v2 = vpack.c.bf16 %v3568_v45, %v3567_v58  ;;  %v3476_v27 = vadd.f32 %v3475_v41, %v8081_v23  ;;  %v4240_v47 = vpop.f32.mrb[133].mxu1 }
 0x3a0   : > { %v3478_v18 = vpop.f32.mrb[134].mxu1 }
 0x3a1   : > { %v3528_v33 = vadd.f32 %v8306_v26, %v3476_v27  ;;  %v4241_v62 = vpop.f32.mrb[135].mxu1  ;;  %4249 = vmatpush3.bf16.msra.mxu0 %v3589_v2 }
 0x3a2   : > { %4250 = vmatprep.subr.bf16.mxu0 %v8842_v22 }
 0x3a3   : > { %v3569_v19 = vmax.f32 %v3528_v33, 0.0 }
 0x3a5   : > { %v3590_v59 = vpack.c.bf16 %v3569_v19, %v3569_v19 }
 0x3a7   : > { %v3624_v3 = vsel %vm3622_vm0, %v3590_v59, 0 }
 0x3a8   : > { %4251 = vmatpush3.bf16.msra.mxu0 %v3624_v3 }
 0x3ab   : > { %4253 = vmatmul.mubr.msk.bf16.vlgmr.msra.gmra.mrb[120].mxu0 %vm3618_vm1, %v3615_v44 }
 0x458   : > { %v3954_v23 = vpop.f32.mrb[116].mxu0 }
 0x459   : > { %v3955_v6 = vpop.f32.mrb[117].mxu0 }
 0x45a   : > { %v3956_v34 = vadd.f32 %v3955_v6, %v3954_v23  ;;  %v3957_v26 = vpop.f32.mrb[118].mxu0 }
 0x45b   : > { %v3958_v46 = vpop.f32.mrb[119].mxu0 }
 0x47e   : > { %v3700_v22 = vpop.f32.mrb[120].mxu0 }
 0x47f   : > { %v3701_v38 = vadd.f32 %v3956_v34, %v3700_v22  ;;  %v4254_v63 = vpop.f32.mrb[121].mxu0 }
 0x480   : > { %v3703_v52 = vpop.f32.mrb[122].mxu0 }
 0x481   : > { %v4255_v25 = vpop.f32.mrb[123].mxu0  ;;  %3707 = vst.msk [vmem:[%s270_s23] sm:$0x1] %vm3706_vm2, %v3701_v38 }
 0x482   : > { %5058 = shalt.err (!%p5055_p3)
}
 0x483   : > { %s5059_s18 = scalar_lea.hbm %s8435_s29, 16  ;;  %s5063_s21 = scalar_lea.hbm %s8484_s7, 32 }
 0x484   : > { %p5060_p4 = scmp.ne.s32.totalorder %s8435_s29, %s5059_s18  ;;  %p5064_p9 = scmp.lt.u32.totalorder %s8435_s29, %s8484_s7 }
 0x485   : > { %p5065_p10 = scmp.lt.u32.totalorder %s5063_s21, %s5059_s18  ;;  %p5067_p12 = scmp.lt.u32.totalorder %s5059_s18, %s8435_s29 }
 0x486   : > { %p5061_p7 = pnand %p5060_p4, %p5199_p5 }
 0x487   : > { %p5066_p11 = por %p5065_p10, %p5064_p9 }
 0x488   : > { %p5062_p8 = pneg %p5061_p7 }
 0x489   : > { %p5068_p13 = por %p5067_p12, %p5066_p11 }
 0x48b   : > { %p5069_p0 = pnand %p5068_p13, %p5062_p8 }
 0x48d   : > { %5072 = shalt.err (!%p5069_p0)
}
 0x48e   : > { %4259 = dma.vmem_to_hbm [thread:$0]  (%p5199_p5), %s8437_s14, 16, %s8435_s29, %s3709_s28  }
 0x48f PF: > { %p4265_p1 = scmp.ge.s32.totalorder %s5107_s27, 2  ;;  %s3733_s17 = sand.u32 1, %s5095_s24  }
 0x490   : > { %s3734_s15 = scalar_lea.sflag [#allocation3], %s3733_s17 }
 0x491   : > { %p4262_p2 = pnand %p4265_p1, %p5203_p6 }
 0x493   : > { %5090 = dma.done.wait (!%p4262_p2), %s3734_s15, 16  }
 0x494   : > { %5092 = vsyncadd (!%p4262_p2), %s3734_s15, 4294967280  ;;  %p17_p3 = scmp.ge.s32.totalorder %s5186_s30, 4   ;;  %s8948_s24 = smov %s5099_s25 }
 0x495   : > { %s8949_s25 = smov %s5103_s26  ;;  %s8950_s26 = smov %s5197_s10 }
 0x496   : > { %s8951_s27 = smov %s5186_s30  ;;  %19 = sbr.rel (!%p17_p3) target bundleno = 3 (0x3), region = 83 }
 0x49d   :  { %3738 = vsyncpa [#allocation3], 1 }
 0x49e   :  { %3740 = vsyncpa [#allocation3 + $0x1], 1 }

</bundles_post_ra>
